<compile_context>
chip_gen: v7x
topology: tpu7x:2x2x1
jax: 0.10.0
libtpu: 0.0.40
codegen_flags: <defaults>
</compile_context>

<pallas_src>
import functools
import math

import jax
import jax.numpy as jnp
from jax.experimental import pallas as pl
from jax.experimental.pallas import tpu as pltpu

EPS = 1e-5        # nn.LayerNorm default epsilon
NEG_INF = -1e9


def _round_up(n, m):
    return ((n + m - 1) // m) * m


# ---------------------------------------------------------------------------
# in-kernel helpers (operate on jnp values already loaded from VMEM refs)
# ---------------------------------------------------------------------------
def _layer_norm(v, gamma, beta):
    """v: (S, D) f32; gamma/beta: (1, D) f32."""
    mu = jnp.mean(v, axis=-1, keepdims=True)
    var = jnp.mean((v - mu) ** 2, axis=-1, keepdims=True)
    return (v - mu) * jax.lax.rsqrt(var + EPS) * gamma + beta


def _build_kv(x_norm, wk, bk, wv, bv, k_ref, v_ref, num_heads, cd):
    """x_norm: (Sk, D) f32.  Full-width K/V projections, then per-head slices are
    written into the (H, Sk, dh) VMEM caches (once per batch element)."""
    H = num_heads
    D = x_norm.shape[-1]
    dh = D // H
    x_c = x_norm.astype(cd)
    k = (jnp.dot(x_c, wk, preferred_element_type=jnp.float32) + bk).astype(cd)
    v = (jnp.dot(x_c, wv, preferred_element_type=jnp.float32) + bv).astype(cd)
    for h in range(H):
        sl = slice(h * dh, (h + 1) * dh)
        k_ref[h] = k[:, sl]
        v_ref[h] = v[:, sl]


def _mha(x_norm, k_ref, v_ref, bias, wq, bq, wo, bo, num_heads, cd):
    """x_norm: (tq, D) f32 (already layer-normed); k_ref/v_ref: (H, Sk, dh) VMEM refs
    (in cd); bias: additive f32 mask (tq, Sk) or (1, Sk); wq/wo: (D, D) in cd with
    1/sqrt(dh) folded into wq; bq/bo: (1, D) f32.  Returns (tq, D) f32."""
    H = num_heads
    tq, D = x_norm.shape
    dh = D // H

    # full-width query projection (scale pre-folded into wq/bq by the wrapper)
    q = jnp.dot(x_norm.astype(cd), wq, preferred_element_type=jnp.float32) + bq

    outs = []
    for h in range(H):
        q_h = q[:, h * dh:(h + 1) * dh].astype(cd)          # (tq, dh)
        k_h = k_ref[h]                                       # (Sk, dh)
        v_h = v_ref[h]                                       # (Sk, dh)
        # scores: (tq, dh) x (Sk, dh)^T -> (tq, Sk), f32 accumulation
        s = jax.lax.dot_general(q_h, k_h, (((1,), (1,)), ((), ())),
                                preferred_element_type=jnp.float32)
        s = s + bias
        m = jnp.max(s, axis=-1, keepdims=True)
        p = jnp.exp(s - m)
        denom = jnp.sum(p, axis=-1, keepdims=True)
        p = p * pl.reciprocal(denom, approx=True)            # EUP slot
        outs.append(jnp.dot(p.astype(cd), v_h, preferred_element_type=jnp.float32))

    o = jnp.concatenate(outs, axis=-1)                        # (tq, D) f32
    # single full-width output projection against the original (D, D) Wo
    return jnp.dot(o.astype(cd), wo, preferred_element_type=jnp.float32) + bo


# ---------------------------------------------------------------------------
# fused decoder-layer kernel: grid = (batch, query-tile)
# ---------------------------------------------------------------------------
def decoder_layer_kernel(
    xq_ref, xf_ref, enc_ref, lab_ref, pb_ref,
    ln1_g, ln1_b,
    sa_wq, sa_bq, sa_wk, sa_bk, sa_wv, sa_bv, sa_wo, sa_bo,
    ln2_g, ln2_b,
    ca_wq, ca_bq, ca_wk, ca_bk, ca_wv, ca_bv, ca_wo, ca_bo,
    ln3_g, ln3_b,
    ff_w1, ff_b1, ff_w2, ff_b2,
    out_ref,
    ks_ref, vs_ref, kc_ref, vc_ref,
    *, num_heads, matmul_dtype, causal,
):
    H = num_heads
    cd = matmul_dtype
    qt = pl.program_id(1)
    tq = xq_ref.shape[1]
    sk_self = ks_ref.shape[1]

    # ---- once per batch element: K/V caches for self- and cross-attention ----
    @pl.when(qt == 0)
    def _():
        xf = xf_ref[0].astype(jnp.float32)                    # (Sd_pad, D)
        xf_n = _layer_norm(xf, ln1_g[...], ln1_b[...])
        _build_kv(xf_n, sa_wk[...], sa_bk[...], sa_wv[...], sa_bv[...],
                  ks_ref, vs_ref, H, cd)

        enc = enc_ref[0].astype(jnp.float32)                  # (Se, D)
        enc_n = _layer_norm(enc, ln2_g[...], ln2_b[...])      # module LNs encoder output too
        _build_kv(enc_n, ca_wk[...], ca_bk[...], ca_wv[...], ca_bv[...],
                  kc_ref, vc_ref, H, cd)

    # ---- per query tile ----
    x = xq_ref[0].astype(jnp.float32)                         # (tq, D)

    if causal:
        # generate the look-ahead additive bias in-kernel (no O(Sd^2) HBM traffic)
        rows = jax.lax.broadcasted_iota(jnp.int32, (tq, sk_self), 0) + qt * tq
        cols = jax.lax.broadcasted_iota(jnp.int32, (tq, sk_self), 1)
        la_bias = jnp.where(cols <= rows, 0.0, NEG_INF)
    else:
        la_bias = lab_ref[0]                                  # (tq, Sd_pad) additive
    pad_bias = pb_ref[0]                                      # (1, Se)      additive

    # TODO(synk): dropout1/2/3 are identity (eval mode); no RNG dropout applied.

    # sublayer 1: pre-LN masked self attention + residual
    h = _layer_norm(x, ln1_g[...], ln1_b[...])
    h = _mha(h, ks_ref, vs_ref, la_bias,
             sa_wq[...], sa_bq[...], sa_wo[...], sa_bo[...], H, cd)
    x = x + h

    # sublayer 2: pre-LN encoder-decoder attention + residual
    h = _layer_norm(x, ln2_g[...], ln2_b[...])
    h = _mha(h, kc_ref, vc_ref, pad_bias,
             ca_wq[...], ca_bq[...], ca_wo[...], ca_bo[...], H, cd)
    x = x + h

    # sublayer 3: pre-LN position-wise FFN + residual
    h = _layer_norm(x, ln3_g[...], ln3_b[...])
    h = jnp.dot(h.astype(cd), ff_w1[...], preferred_element_type=jnp.float32) + ff_b1[...]
    h = jnp.maximum(h, 0.0)
    h = jnp.dot(h.astype(cd), ff_w2[...], preferred_element_type=jnp.float32) + ff_b2[...]
    x = x + h

    out_ref[0] = x.astype(out_ref.dtype)


# ---------------------------------------------------------------------------
# wrapper
# ---------------------------------------------------------------------------
def decoder_layer(x, encoder_output, look_ahead_mask, padding_mask, params, num_heads,
                  matmul_dtype=jnp.bfloat16, q_tile=256, causal_mask=False):
    B, Sd, D = x.shape
    _, Se, _ = encoder_output.shape
    H = num_heads
    assert D % H == 0
    dh = D // H
    F = params["ff_w1"].shape[1]
    cd = jnp.dtype(matmul_dtype)
    f32 = jnp.float32
    scale = 1.0 / math.sqrt(dh)

    # --- query tiling: tq multiple of 8; pad Sd up to a multiple of tq (padded keys
    #     are masked, padded query rows are sliced off) ---
    tq = min(q_tile, _round_up(Sd, 8))
    tq = max(8, (tq // 8) * 8)
    Sd_pad = _round_up(Sd, tq)
    n_qt = Sd_pad // tq

    x_in = x if Sd_pad == Sd else jnp.pad(x, ((0, 0), (0, Sd_pad - Sd), (0, 0)))

    # padding mask -> additive f32 bias (1 = attend -> 0 ; 0 = masked -> -1e9)
    pad_bias = (padding_mask.reshape(B, 1, Se).astype(f32) - 1.0) * (-NEG_INF)

    if causal_mask:
        # bias is generated in-kernel; tiny placeholder keeps the signature uniform
        la_bias = jnp.zeros((1, 8, 128), f32)
        la_spec = pl.BlockSpec((1, 8, 128), lambda b, q: (0, 0, 0))
    else:
        la_bias = (look_ahead_mask.reshape(B, Sd, Sd).astype(f32) - 1.0) * (-NEG_INF)
        if Sd_pad != Sd:
            la_bias = jnp.pad(la_bias, ((0, 0), (0, Sd_pad - Sd), (0, Sd_pad - Sd)),
                              constant_values=NEG_INF)
        la_spec = pl.BlockSpec((1, tq, Sd_pad), lambda b, q: (b, q, 0))

    # --- weights: matmul operands cast to matmul_dtype once here; 1/sqrt(dh) folded
    #     into Wq/bq; biases and LayerNorm params stay f32 ---
    def wcast(w):
        return w.astype(cd)

    weights = [
        params["ln1_g"].astype(f32), params["ln1_b"].astype(f32),
        wcast(params["sa_wq"] * scale), (params["sa_bq"] * scale).astype(f32),
        wcast(params["sa_wk"]), params["sa_bk"].astype(f32),
        wcast(params["sa_wv"]), params["sa_bv"].astype(f32),
        wcast(params["sa_wo"]), params["sa_bo"].astype(f32),
        params["ln2_g"].astype(f32), params["ln2_b"].astype(f32),
        wcast(params["ca_wq"] * scale), (params["ca_bq"] * scale).astype(f32),
        wcast(params["ca_wk"]), params["ca_bk"].astype(f32),
        wcast(params["ca_wv"]), params["ca_bv"].astype(f32),
        wcast(params["ca_wo"]), params["ca_bo"].astype(f32),
        params["ln3_g"].astype(f32), params["ln3_b"].astype(f32),
        wcast(params["ff_w1"]), params["ff_b1"].astype(f32),
        wcast(params["ff_w2"]), params["ff_b2"].astype(f32),
    ]

    def wspec(arr):
        nd = arr.ndim
        return pl.BlockSpec(arr.shape, lambda b, q, _nd=nd: (0,) * _nd)

    in_specs = [
        pl.BlockSpec((1, tq, D), lambda b, q: (b, q, 0)),      # x (query tile)
        pl.BlockSpec((1, Sd_pad, D), lambda b, q: (b, 0, 0)),  # x (full, self-attn K/V)
        pl.BlockSpec((1, Se, D), lambda b, q: (b, 0, 0)),      # encoder_output
        la_spec,                                               # look-ahead additive bias
        pl.BlockSpec((1, 1, Se), lambda b, q: (b, 0, 0)),      # padding additive bias
    ] + [wspec(w) for w in weights]

    # --- cost / VMEM budgeting ---
    flops = 2 * B * (
        4 * Sd_pad * D * D                 # self-attn q,k,v,o projections
        + 2 * Sd_pad * Sd_pad * D          # self-attn scores + weighted values
        + 2 * Sd_pad * D * D               # cross-attn q,o projections
        + 2 * Se * D * D                   # cross-attn k,v projections
        + 2 * Sd_pad * Se * D              # cross-attn scores + weighted values
        + 2 * Sd_pad * D * F               # FFN
    )
    transcendentals = B * H * Sd_pad * (Sd_pad + Se)
    weight_bytes = sum(int(w.size) * w.dtype.itemsize for w in weights)
    bytes_accessed = int(
        2 * x_in.size * x_in.dtype.itemsize
        + encoder_output.size * encoder_output.dtype.itemsize
        + la_bias.size * 4 + pad_bias.size * 4
        + weight_bytes + B * Sd_pad * D * x.dtype.itemsize)

    itm = cd.itemsize
    scratch_bytes = 2 * (H * Sd_pad * dh + H * Se * dh) * itm
    block_bytes = 2 * ((tq * D + Sd_pad * D + Se * D + Se) * x_in.dtype.itemsize
                       + (8 * 128 if causal_mask else tq * Sd_pad) * 4
                       + tq * D * x.dtype.itemsize)
    work_bytes = 4 * (tq * max(Sd_pad, Se) * 4 + tq * F * 4 + Sd_pad * D * 4 + Se * D * 4)
    # cap at 100 MiB (v5e/v6e have 128 MiB; on v7x pick sizes so this stays < ~56 MiB)
    vmem_limit_bytes = int(min(100 * 2**20,
                               max(32 * 2**20,
                                   scratch_bytes + block_bytes + 2 * weight_bytes
                                   + work_bytes + (4 << 20))))

    kernel = functools.partial(decoder_layer_kernel, num_heads=H,
                               matmul_dtype=cd, causal=causal_mask)

    out = pl.pallas_call(
        kernel,
        out_shape=jax.ShapeDtypeStruct((B, Sd_pad, D), x.dtype),
        grid=(B, n_qt),
        in_specs=in_specs,
        out_specs=pl.BlockSpec((1, tq, D), lambda b, q: (b, q, 0)),
        scratch_shapes=[
            pltpu.VMEM((H, Sd_pad, dh), cd),   # self-attn K cache
            pltpu.VMEM((H, Sd_pad, dh), cd),   # self-attn V cache
            pltpu.VMEM((H, Se, dh), cd),       # cross-attn K cache
            pltpu.VMEM((H, Se, dh), cd),       # cross-attn V cache
        ],
        compiler_params=pltpu.CompilerParams(
            dimension_semantics=("parallel", "arbitrary"),
            vmem_limit_bytes=vmem_limit_bytes),
        cost_estimate=pl.CostEstimate(flops=int(flops),
                                      transcendentals=int(transcendentals),
                                      bytes_accessed=int(bytes_accessed)),
    )(x_in, x_in, encoder_output, la_bias, pad_bias, *weights)

    if Sd_pad != Sd:
        out = out[:, :Sd]
    return out


# ---------------------------------------------------------------------------
# pure-JAX reference (for correctness check)
# ---------------------------------------------------------------------------
def _ref_forward(x, enc, lam, pm, p, num_heads):
    def ln(v, g, b):
        mu = v.mean(-1, keepdims=True)
        var = ((v - mu) ** 2).mean(-1, keepdims=True)
        return (v - mu) / jnp.sqrt(var + EPS) * g[0] + b[0]

    def mha(q_in, kv_in, mask, pfx):
        B, Sq, D = q_in.shape
        Sk = kv_in.shape[1]
        dh = D // num_heads
        q = q_in @ p[pfx + "wq"] + p[pfx + "bq"][0]
        k = kv_in @ p[pfx + "wk"] + p[pfx + "bk"][0]
        v = kv_in @ p[pfx + "wv"] + p[pfx + "bv"][0]
        q = q.reshape(B, Sq, num_heads, dh).transpose(0, 2, 1, 3)
        k = k.reshape(B, Sk, num_heads, dh).transpose(0, 2, 1, 3)
        v = v.reshape(B, Sk, num_heads, dh).transpose(0, 2, 1, 3)
        s = jnp.einsum("bhqd,bhkd->bhqk", q, k) / math.sqrt(dh)
        s = jnp.where(mask[:, None] == 0, NEG_INF, s)
        a = jax.nn.softmax(s, axis=-1)
        o = jnp.einsum("bhqk,bhkd->bhqd", a, v).transpose(0, 2, 1, 3).reshape(B, Sq, D)
        return o @ p[pfx + "wo"] + p[pfx + "bo"][0]

    orig = x
    h = ln(x, p["ln1_g"], p["ln1_b"])
    x = orig + mha(h, h, lam, "sa_")
    orig = x
    qn = ln(x, p["ln2_g"], p["ln2_b"])
    en = ln(enc, p["ln2_g"], p["ln2_b"])
    x = orig + mha(qn, en, pm, "ca_")
    orig = x
    h = ln(x, p["ln3_g"], p["ln3_b"])
    h = jnp.maximum(h @ p["ff_w1"] + p["ff_b1"][0], 0.0) @ p["ff_w2"] + p["ff_b2"][0]
    return orig + h


# ---------------------------------------------------------------------------
if __name__ == "__main__":
    B, Sd, Se = 2, 16, 16
    D, F, H = 32, 64, 4

    keys = jax.random.split(jax.random.PRNGKey(0), 32)
    ki = iter(keys)

    def w(shape, scale=0.1):
        return jax.random.normal(next(ki), shape, dtype=jnp.float32) * scale

    params = {
        "ln1_g": jnp.ones((1, D), jnp.float32), "ln1_b": jnp.zeros((1, D), jnp.float32),
        "sa_wq": w((D, D)), "sa_bq": w((1, D)), "sa_wk": w((D, D)), "sa_bk": w((1, D)),
        "sa_wv": w((D, D)), "sa_bv": w((1, D)), "sa_wo": w((D, D)), "sa_bo": w((1, D)),
        "ln2_g": jnp.ones((1, D), jnp.float32), "ln2_b": jnp.zeros((1, D), jnp.float32),
        "ca_wq": w((D, D)), "ca_bq": w((1, D)), "ca_wk": w((D, D)), "ca_bk": w((1, D)),
        "ca_wv": w((D, D)), "ca_bv": w((1, D)), "ca_wo": w((D, D)), "ca_bo": w((1, D)),
        "ln3_g": jnp.ones((1, D), jnp.float32), "ln3_b": jnp.zeros((1, D), jnp.float32),
        "ff_w1": w((D, F)), "ff_b1": w((1, F)), "ff_w2": w((F, D)), "ff_b2": w((1, D)),
    }

    x = jax.random.normal(next(ki), (B, Sd, D), dtype=jnp.float32)
    enc = jax.random.normal(next(ki), (B, Se, D), dtype=jnp.float32)

    # look-ahead mask: lower-triangular (1 = attend), shape [B,1,Sd,Sd]
    la = jnp.tril(jnp.ones((Sd, Sd), jnp.float32))[None, None].repeat(B, axis=0)
    # padding mask: mask out the last 3 encoder positions, shape [B,1,1,Se]
    pm = jnp.ones((B, 1, 1, Se), jnp.float32).at[:, :, :, Se - 3:].set(0.0)

    ref = _ref_forward(x, enc, la.reshape(B, Sd, Sd), pm.reshape(B, 1, Se), params, H)

    # 1) f32 MXU path, arbitrary streamed mask; q_tile=8 exercises multi-tile grid + KV reuse
    out1 = jax.block_until_ready(decoder_layer(x, enc, la, pm, params, num_heads=H,
                                               matmul_dtype=jnp.float32, q_tile=8,
                                               causal_mask=False))
    assert out1.shape == (B, Sd, D)
    assert jnp.allclose(out1, ref, atol=5e-3, rtol=5e-3), float(jnp.abs(out1 - ref).max())

    # 2) f32 MXU path, look-ahead bias generated in-kernel from iota (mask is causal here)
    out2 = jax.block_until_ready(decoder_layer(x, enc, la, pm, params, num_heads=H,
                                               matmul_dtype=jnp.float32, q_tile=8,
                                               causal_mask=True))
    assert jnp.allclose(out2, ref, atol=5e-3, rtol=5e-3), float(jnp.abs(out2 - ref).max())

    # 3) bf16 MXU path with f32 accumulation — recommended on v5e/v6e/v7x
    out3 = jax.block_until_ready(decoder_layer(x, enc, la, pm, params, num_heads=H,
                                               matmul_dtype=jnp.bfloat16, q_tile=8,
                                               causal_mask=True))
    assert jnp.allclose(out3, ref, atol=5e-2, rtol=5e-2), float(jnp.abs(out3 - ref).max())

    print("KERNEL_OK")
</pallas_src>

<mosaic_0001>
module attributes {stable_mosaic.version = 11 : i64} {
  func.func @decoder_layer_kernel(%arg0: i32, %arg1: i32, %arg2: memref<1x8x32xf32, #tpu.memory_space<vmem>>, %arg3: memref<1x16x32xf32, #tpu.memory_space<vmem>>, %arg4: memref<1x16x32xf32, #tpu.memory_space<vmem>>, %arg5: memref<1x8x16xf32, #tpu.memory_space<vmem>>, %arg6: memref<1x1x16xf32, #tpu.memory_space<vmem>>, %arg7: memref<1x32xf32, #tpu.memory_space<vmem>>, %arg8: memref<1x32xf32, #tpu.memory_space<vmem>>, %arg9: memref<32x32xf32, #tpu.memory_space<vmem>>, %arg10: memref<1x32xf32, #tpu.memory_space<vmem>>, %arg11: memref<32x32xf32, #tpu.memory_space<vmem>>, %arg12: memref<1x32xf32, #tpu.memory_space<vmem>>, %arg13: memref<32x32xf32, #tpu.memory_space<vmem>>, %arg14: memref<1x32xf32, #tpu.memory_space<vmem>>, %arg15: memref<32x32xf32, #tpu.memory_space<vmem>>, %arg16: memref<1x32xf32, #tpu.memory_space<vmem>>, %arg17: memref<1x32xf32, #tpu.memory_space<vmem>>, %arg18: memref<1x32xf32, #tpu.memory_space<vmem>>, %arg19: memref<32x32xf32, #tpu.memory_space<vmem>>, %arg20: memref<1x32xf32, #tpu.memory_space<vmem>>, %arg21: memref<32x32xf32, #tpu.memory_space<vmem>>, %arg22: memref<1x32xf32, #tpu.memory_space<vmem>>, %arg23: memref<32x32xf32, #tpu.memory_space<vmem>>, %arg24: memref<1x32xf32, #tpu.memory_space<vmem>>, %arg25: memref<32x32xf32, #tpu.memory_space<vmem>>, %arg26: memref<1x32xf32, #tpu.memory_space<vmem>>, %arg27: memref<1x32xf32, #tpu.memory_space<vmem>>, %arg28: memref<1x32xf32, #tpu.memory_space<vmem>>, %arg29: memref<32x64xf32, #tpu.memory_space<vmem>>, %arg30: memref<1x64xf32, #tpu.memory_space<vmem>>, %arg31: memref<64x32xf32, #tpu.memory_space<vmem>>, %arg32: memref<1x32xf32, #tpu.memory_space<vmem>>, %arg33: memref<1x8x32xf32, #tpu.memory_space<vmem>>, %arg34: memref<4x16x8xf32, #tpu.memory_space<vmem>>, %arg35: memref<4x16x8xf32, #tpu.memory_space<vmem>>, %arg36: memref<4x16x8xf32, #tpu.memory_space<vmem>>, %arg37: memref<4x16x8xf32, #tpu.memory_space<vmem>>) attributes {dimension_semantics = [#tpu.dimension_semantics<parallel>, #tpu.dimension_semantics<arbitrary>], iteration_bounds = array<i64: 2, 2>, scalar_prefetch = 0 : i64, scratch_operands = 4 : i64, tpu.core_type = #tpu.core_type<tc>, window_params = [{transform_indices = @transform_0, window_bounds = array<i64: 1, 8, 32>}, {transform_indices = @transform_1, window_bounds = array<i64: 1, 16, 32>}, {transform_indices = @transform_2, window_bounds = array<i64: 1, 16, 32>}, {transform_indices = @transform_3, window_bounds = array<i64: 1, 8, 16>}, {transform_indices = @transform_4, window_bounds = array<i64: 1, 1, 16>}, {pipeline_mode = #tpu.pipeline_mode<synchronous>, transform_indices = @transform_5, window_bounds = array<i64: 1, 32>}, {pipeline_mode = #tpu.pipeline_mode<synchronous>, transform_indices = @transform_6, window_bounds = array<i64: 1, 32>}, {pipeline_mode = #tpu.pipeline_mode<synchronous>, transform_indices = @transform_7, window_bounds = array<i64: 32, 32>}, {pipeline_mode = #tpu.pipeline_mode<synchronous>, transform_indices = @transform_8, window_bounds = array<i64: 1, 32>}, {pipeline_mode = #tpu.pipeline_mode<synchronous>, transform_indices = @transform_9, window_bounds = array<i64: 32, 32>}, {pipeline_mode = #tpu.pipeline_mode<synchronous>, transform_indices = @transform_10, window_bounds = array<i64: 1, 32>}, {pipeline_mode = #tpu.pipeline_mode<synchronous>, transform_indices = @transform_11, window_bounds = array<i64: 32, 32>}, {pipeline_mode = #tpu.pipeline_mode<synchronous>, transform_indices = @transform_12, window_bounds = array<i64: 1, 32>}, {pipeline_mode = #tpu.pipeline_mode<synchronous>, transform_indices = @transform_13, window_bounds = array<i64: 32, 32>}, {pipeline_mode = #tpu.pipeline_mode<synchronous>, transform_indices = @transform_14, window_bounds = array<i64: 1, 32>}, {pipeline_mode = #tpu.pipeline_mode<synchronous>, transform_indices = @transform_15, window_bounds = array<i64: 1, 32>}, {pipeline_mode = #tpu.pipeline_mode<synchronous>, transform_indices = @transform_16, window_bounds = array<i64: 1, 32>}, {pipeline_mode = #tpu.pipeline_mode<synchronous>, transform_indices = @transform_17, window_bounds = array<i64: 32, 32>}, {pipeline_mode = #tpu.pipeline_mode<synchronous>, transform_indices = @transform_18, window_bounds = array<i64: 1, 32>}, {pipeline_mode = #tpu.pipeline_mode<synchronous>, transform_indices = @transform_19, window_bounds = array<i64: 32, 32>}, {pipeline_mode = #tpu.pipeline_mode<synchronous>, transform_indices = @transform_20, window_bounds = array<i64: 1, 32>}, {pipeline_mode = #tpu.pipeline_mode<synchronous>, transform_indices = @transform_21, window_bounds = array<i64: 32, 32>}, {pipeline_mode = #tpu.pipeline_mode<synchronous>, transform_indices = @transform_22, window_bounds = array<i64: 1, 32>}, {pipeline_mode = #tpu.pipeline_mode<synchronous>, transform_indices = @transform_23, window_bounds = array<i64: 32, 32>}, {pipeline_mode = #tpu.pipeline_mode<synchronous>, transform_indices = @transform_24, window_bounds = array<i64: 1, 32>}, {pipeline_mode = #tpu.pipeline_mode<synchronous>, transform_indices = @transform_25, window_bounds = array<i64: 1, 32>}, {pipeline_mode = #tpu.pipeline_mode<synchronous>, transform_indices = @transform_26, window_bounds = array<i64: 1, 32>}, {pipeline_mode = #tpu.pipeline_mode<synchronous>, transform_indices = @transform_27, window_bounds = array<i64: 32, 64>}, {pipeline_mode = #tpu.pipeline_mode<synchronous>, transform_indices = @transform_28, window_bounds = array<i64: 1, 64>}, {pipeline_mode = #tpu.pipeline_mode<synchronous>, transform_indices = @transform_29, window_bounds = array<i64: 64, 32>}, {pipeline_mode = #tpu.pipeline_mode<synchronous>, transform_indices = @transform_30, window_bounds = array<i64: 1, 32>}, {transform_indices = @transform_31, window_bounds = array<i64: 1, 8, 32>}]} {
    %c0_i32 = arith.constant 0 : i32
    %0 = arith.cmpi eq, %arg1, %c0_i32 : i32
    %1 = arith.extui %0 : i1 to i32
    %c0_i32_0 = arith.constant 0 : i32
    %2 = arith.cmpi ne, %1, %c0_i32_0 : i32
    scf.if %2 {
      %c0_146 = arith.constant 0 : index
      %c0_147 = arith.constant 0 : index
      %c0_148 = arith.constant 0 : index
      %269 = vector.load %arg3[%c0_146, %c0_147, %c0_148] : memref<1x16x32xf32, #tpu.memory_space<vmem>>, vector<1x16x32xf32>
      %270 = vector.shape_cast %269 : vector<1x16x32xf32> to vector<16x32xf32>
      %c0_149 = arith.constant 0 : index
      %c0_150 = arith.constant 0 : index
      %271 = vector.load %arg7[%c0_149, %c0_150] : memref<1x32xf32, #tpu.memory_space<vmem>>, vector<1x32xf32>
      %c0_151 = arith.constant 0 : index
      %c0_152 = arith.constant 0 : index
      %272 = vector.load %arg8[%c0_151, %c0_152] : memref<1x32xf32, #tpu.memory_space<vmem>>, vector<1x32xf32>
      %cst_153 = arith.constant dense<0.000000e+00> : vector<16xf32>
      %273 = vector.multi_reduction <add>, %270, %cst_153 [1] : vector<16x32xf32> to vector<16xf32>
      %274 = vector.shape_cast %273 : vector<16xf32> to vector<16x1xf32>
      %cst_154 = arith.constant 3.200000e+01 : f32
      %275 = vector.broadcast %cst_154 : f32 to vector<16x1xf32>
      %276 = arith.divf %274, %275 : vector<16x1xf32>
      %277 = vector.broadcast %276 : vector<16x1xf32> to vector<16x32xf32>
      %278 = arith.subf %270, %277 : vector<16x32xf32>
      %279 = arith.mulf %278, %278 : vector<16x32xf32>
      %cst_155 = arith.constant dense<0.000000e+00> : vector<16xf32>
      %280 = vector.multi_reduction <add>, %279, %cst_155 [1] : vector<16x32xf32> to vector<16xf32>
      %281 = vector.shape_cast %280 : vector<16xf32> to vector<16x1xf32>
      %cst_156 = arith.constant 3.200000e+01 : f32
      %282 = vector.broadcast %cst_156 : f32 to vector<16x1xf32>
      %283 = arith.divf %281, %282 : vector<16x1xf32>
      %284 = vector.broadcast %276 : vector<16x1xf32> to vector<16x32xf32>
      %285 = arith.subf %270, %284 : vector<16x32xf32>
      %cst_157 = arith.constant 9.99999974E-6 : f32
      %286 = vector.broadcast %cst_157 : f32 to vector<16x1xf32>
      %287 = arith.addf %283, %286 : vector<16x1xf32>
      %288 = math.rsqrt %287 : vector<16x1xf32>
      %289 = vector.broadcast %288 : vector<16x1xf32> to vector<16x32xf32>
      %290 = arith.mulf %285, %289 : vector<16x32xf32>
      %291 = vector.broadcast %271 : vector<1x32xf32> to vector<16x32xf32>
      %292 = arith.mulf %290, %291 : vector<16x32xf32>
      %293 = vector.broadcast %272 : vector<1x32xf32> to vector<16x32xf32>
      %294 = arith.addf %292, %293 : vector<16x32xf32>
      %c0_158 = arith.constant 0 : index
      %c0_159 = arith.constant 0 : index
      %295 = vector.load %arg11[%c0_158, %c0_159] : memref<32x32xf32, #tpu.memory_space<vmem>>, vector<32x32xf32>
      %c0_160 = arith.constant 0 : index
      %c0_161 = arith.constant 0 : index
      %296 = vector.load %arg12[%c0_160, %c0_161] : memref<1x32xf32, #tpu.memory_space<vmem>>, vector<1x32xf32>
      %c0_162 = arith.constant 0 : index
      %c0_163 = arith.constant 0 : index
      %297 = vector.load %arg13[%c0_162, %c0_163] : memref<32x32xf32, #tpu.memory_space<vmem>>, vector<32x32xf32>
      %c0_164 = arith.constant 0 : index
      %c0_165 = arith.constant 0 : index
      %298 = vector.load %arg14[%c0_164, %c0_165] : memref<1x32xf32, #tpu.memory_space<vmem>>, vector<1x32xf32>
      %cst_166 = arith.constant dense<0.000000e+00> : vector<16x32xf32>
      %299 = tpu.matmul %294, %295, %cst_166 {dimension_numbers = #tpu.dot_dimension_numbers<[1], [0], [0], [1], [0, 0, 1, 1], [], []>} : vector<16x32xf32>, vector<32x32xf32>, vector<16x32xf32> -> vector<16x32xf32>
      %300 = vector.broadcast %296 : vector<1x32xf32> to vector<16x32xf32>
      %301 = arith.addf %299, %300 : vector<16x32xf32>
      %cst_167 = arith.constant dense<0.000000e+00> : vector<16x32xf32>
      %302 = tpu.matmul %294, %297, %cst_167 {dimension_numbers = #tpu.dot_dimension_numbers<[1], [0], [0], [1], [0, 0, 1, 1], [], []>} : vector<16x32xf32>, vector<32x32xf32>, vector<16x32xf32> -> vector<16x32xf32>
      %303 = vector.broadcast %298 : vector<1x32xf32> to vector<16x32xf32>
      %304 = arith.addf %302, %303 : vector<16x32xf32>
      %305 = vector.extract_strided_slice %301 {offsets = [0, 0], sizes = [16, 8], strides = [1, 1]} : vector<16x32xf32> to vector<16x8xf32>
      %c0_168 = arith.constant 0 : index
      %c0_169 = arith.constant 0 : index
      %c0_170 = arith.constant 0 : index
      %306 = vector.load %arg34[%c0_168, %c0_169, %c0_170] : memref<4x16x8xf32, #tpu.memory_space<vmem>>, vector<1x16x8xf32>
      %307 = vector.shape_cast %306 : vector<1x16x8xf32> to vector<16x8xf32>
      %308 = vector.shape_cast %305 : vector<16x8xf32> to vector<1x16x8xf32>
      tpu.vector_store %arg34[%c0_168, %c0_169, %c0_170], %308 {strides = array<i32>} : memref<4x16x8xf32, #tpu.memory_space<vmem>>, vector<1x16x8xf32>,
      %309 = vector.extract_strided_slice %304 {offsets = [0, 0], sizes = [16, 8], strides = [1, 1]} : vector<16x32xf32> to vector<16x8xf32>
      %c0_171 = arith.constant 0 : index
      %c0_172 = arith.constant 0 : index
      %c0_173 = arith.constant 0 : index
      %310 = vector.load %arg35[%c0_171, %c0_172, %c0_173] : memref<4x16x8xf32, #tpu.memory_space<vmem>>, vector<1x16x8xf32>
      %311 = vector.shape_cast %310 : vector<1x16x8xf32> to vector<16x8xf32>
      %312 = vector.shape_cast %309 : vector<16x8xf32> to vector<1x16x8xf32>
      tpu.vector_store %arg35[%c0_171, %c0_172, %c0_173], %312 {strides = array<i32>} : memref<4x16x8xf32, #tpu.memory_space<vmem>>, vector<1x16x8xf32>,
      %313 = vector.extract_strided_slice %301 {offsets = [0, 8], sizes = [16, 8], strides = [1, 1]} : vector<16x32xf32> to vector<16x8xf32>
      %c1_174 = arith.constant 1 : index
      %c0_175 = arith.constant 0 : index
      %c0_176 = arith.constant 0 : index
      %314 = vector.load %arg34[%c1_174, %c0_175, %c0_176] : memref<4x16x8xf32, #tpu.memory_space<vmem>>, vector<1x16x8xf32>
      %315 = vector.shape_cast %314 : vector<1x16x8xf32> to vector<16x8xf32>
      %316 = vector.shape_cast %313 : vector<16x8xf32> to vector<1x16x8xf32>
      tpu.vector_store %arg34[%c1_174, %c0_175, %c0_176], %316 {strides = array<i32>} : memref<4x16x8xf32, #tpu.memory_space<vmem>>, vector<1x16x8xf32>,
      %317 = vector.extract_strided_slice %304 {offsets = [0, 8], sizes = [16, 8], strides = [1, 1]} : vector<16x32xf32> to vector<16x8xf32>
      %c1_177 = arith.constant 1 : index
      %c0_178 = arith.constant 0 : index
      %c0_179 = arith.constant 0 : index
      %318 = vector.load %arg35[%c1_177, %c0_178, %c0_179] : memref<4x16x8xf32, #tpu.memory_space<vmem>>, vector<1x16x8xf32>
      %319 = vector.shape_cast %318 : vector<1x16x8xf32> to vector<16x8xf32>
      %320 = vector.shape_cast %317 : vector<16x8xf32> to vector<1x16x8xf32>
      tpu.vector_store %arg35[%c1_177, %c0_178, %c0_179], %320 {strides = array<i32>} : memref<4x16x8xf32, #tpu.memory_space<vmem>>, vector<1x16x8xf32>,
      %321 = vector.extract_strided_slice %301 {offsets = [0, 16], sizes = [16, 8], strides = [1, 1]} : vector<16x32xf32> to vector<16x8xf32>
      %c2_180 = arith.constant 2 : index
      %c0_181 = arith.constant 0 : index
      %c0_182 = arith.constant 0 : index
      %322 = vector.load %arg34[%c2_180, %c0_181, %c0_182] : memref<4x16x8xf32, #tpu.memory_space<vmem>>, vector<1x16x8xf32>
      %323 = vector.shape_cast %322 : vector<1x16x8xf32> to vector<16x8xf32>
      %324 = vector.shape_cast %321 : vector<16x8xf32> to vector<1x16x8xf32>
      tpu.vector_store %arg34[%c2_180, %c0_181, %c0_182], %324 {strides = array<i32>} : memref<4x16x8xf32, #tpu.memory_space<vmem>>, vector<1x16x8xf32>,
      %325 = vector.extract_strided_slice %304 {offsets = [0, 16], sizes = [16, 8], strides = [1, 1]} : vector<16x32xf32> to vector<16x8xf32>
      %c2_183 = arith.constant 2 : index
      %c0_184 = arith.constant 0 : index
      %c0_185 = arith.constant 0 : index
      %326 = vector.load %arg35[%c2_183, %c0_184, %c0_185] : memref<4x16x8xf32, #tpu.memory_space<vmem>>, vector<1x16x8xf32>
      %327 = vector.shape_cast %326 : vector<1x16x8xf32> to vector<16x8xf32>
      %328 = vector.shape_cast %325 : vector<16x8xf32> to vector<1x16x8xf32>
      tpu.vector_store %arg35[%c2_183, %c0_184, %c0_185], %328 {strides = array<i32>} : memref<4x16x8xf32, #tpu.memory_space<vmem>>, vector<1x16x8xf32>,
      %329 = vector.extract_strided_slice %301 {offsets = [0, 24], sizes = [16, 8], strides = [1, 1]} : vector<16x32xf32> to vector<16x8xf32>
      %c3_186 = arith.constant 3 : index
      %c0_187 = arith.constant 0 : index
      %c0_188 = arith.constant 0 : index
      %330 = vector.load %arg34[%c3_186, %c0_187, %c0_188] : memref<4x16x8xf32, #tpu.memory_space<vmem>>, vector<1x16x8xf32>
      %331 = vector.shape_cast %330 : vector<1x16x8xf32> to vector<16x8xf32>
      %332 = vector.shape_cast %329 : vector<16x8xf32> to vector<1x16x8xf32>
      tpu.vector_store %arg34[%c3_186, %c0_187, %c0_188], %332 {strides = array<i32>} : memref<4x16x8xf32, #tpu.memory_space<vmem>>, vector<1x16x8xf32>,
      %333 = vector.extract_strided_slice %304 {offsets = [0, 24], sizes = [16, 8], strides = [1, 1]} : vector<16x32xf32> to vector<16x8xf32>
      %c3_189 = arith.constant 3 : index
      %c0_190 = arith.constant 0 : index
      %c0_191 = arith.constant 0 : index
      %334 = vector.load %arg35[%c3_189, %c0_190, %c0_191] : memref<4x16x8xf32, #tpu.memory_space<vmem>>, vector<1x16x8xf32>
      %335 = vector.shape_cast %334 : vector<1x16x8xf32> to vector<16x8xf32>
      %336 = vector.shape_cast %333 : vector<16x8xf32> to vector<1x16x8xf32>
      tpu.vector_store %arg35[%c3_189, %c0_190, %c0_191], %336 {strides = array<i32>} : memref<4x16x8xf32, #tpu.memory_space<vmem>>, vector<1x16x8xf32>,
      %c0_192 = arith.constant 0 : index
      %c0_193 = arith.constant 0 : index
      %c0_194 = arith.constant 0 : index
      %337 = vector.load %arg4[%c0_192, %c0_193, %c0_194] : memref<1x16x32xf32, #tpu.memory_space<vmem>>, vector<1x16x32xf32>
      %338 = vector.shape_cast %337 : vector<1x16x32xf32> to vector<16x32xf32>
      %c0_195 = arith.constant 0 : index
      %c0_196 = arith.constant 0 : index
      %339 = vector.load %arg17[%c0_195, %c0_196] : memref<1x32xf32, #tpu.memory_space<vmem>>, vector<1x32xf32>
      %c0_197 = arith.constant 0 : index
      %c0_198 = arith.constant 0 : index
      %340 = vector.load %arg18[%c0_197, %c0_198] : memref<1x32xf32, #tpu.memory_space<vmem>>, vector<1x32xf32>
      %cst_199 = arith.constant dense<0.000000e+00> : vector<16xf32>
      %341 = vector.multi_reduction <add>, %338, %cst_199 [1] : vector<16x32xf32> to vector<16xf32>
      %342 = vector.shape_cast %341 : vector<16xf32> to vector<16x1xf32>
      %cst_200 = arith.constant 3.200000e+01 : f32
      %343 = vector.broadcast %cst_200 : f32 to vector<16x1xf32>
      %344 = arith.divf %342, %343 : vector<16x1xf32>
      %345 = vector.broadcast %344 : vector<16x1xf32> to vector<16x32xf32>
      %346 = arith.subf %338, %345 : vector<16x32xf32>
      %347 = arith.mulf %346, %346 : vector<16x32xf32>
      %cst_201 = arith.constant dense<0.000000e+00> : vector<16xf32>
      %348 = vector.multi_reduction <add>, %347, %cst_201 [1] : vector<16x32xf32> to vector<16xf32>
      %349 = vector.shape_cast %348 : vector<16xf32> to vector<16x1xf32>
      %cst_202 = arith.constant 3.200000e+01 : f32
      %350 = vector.broadcast %cst_202 : f32 to vector<16x1xf32>
      %351 = arith.divf %349, %350 : vector<16x1xf32>
      %352 = vector.broadcast %344 : vector<16x1xf32> to vector<16x32xf32>
      %353 = arith.subf %338, %352 : vector<16x32xf32>
      %cst_203 = arith.constant 9.99999974E-6 : f32
      %354 = vector.broadcast %cst_203 : f32 to vector<16x1xf32>
      %355 = arith.addf %351, %354 : vector<16x1xf32>
      %356 = math.rsqrt %355 : vector<16x1xf32>
      %357 = vector.broadcast %356 : vector<16x1xf32> to vector<16x32xf32>
      %358 = arith.mulf %353, %357 : vector<16x32xf32>
      %359 = vector.broadcast %339 : vector<1x32xf32> to vector<16x32xf32>
      %360 = arith.mulf %358, %359 : vector<16x32xf32>
      %361 = vector.broadcast %340 : vector<1x32xf32> to vector<16x32xf32>
      %362 = arith.addf %360, %361 : vector<16x32xf32>
      %c0_204 = arith.constant 0 : index
      %c0_205 = arith.constant 0 : index
      %363 = vector.load %arg21[%c0_204, %c0_205] : memref<32x32xf32, #tpu.memory_space<vmem>>, vector<32x32xf32>
      %c0_206 = arith.constant 0 : index
      %c0_207 = arith.constant 0 : index
      %364 = vector.load %arg22[%c0_206, %c0_207] : memref<1x32xf32, #tpu.memory_space<vmem>>, vector<1x32xf32>
      %c0_208 = arith.constant 0 : index
      %c0_209 = arith.constant 0 : index
      %365 = vector.load %arg23[%c0_208, %c0_209] : memref<32x32xf32, #tpu.memory_space<vmem>>, vector<32x32xf32>
      %c0_210 = arith.constant 0 : index
      %c0_211 = arith.constant 0 : index
      %366 = vector.load %arg24[%c0_210, %c0_211] : memref<1x32xf32, #tpu.memory_space<vmem>>, vector<1x32xf32>
      %cst_212 = arith.constant dense<0.000000e+00> : vector<16x32xf32>
      %367 = tpu.matmul %362, %363, %cst_212 {dimension_numbers = #tpu.dot_dimension_numbers<[1], [0], [0], [1], [0, 0, 1, 1], [], []>} : vector<16x32xf32>, vector<32x32xf32>, vector<16x32xf32> -> vector<16x32xf32>
      %368 = vector.broadcast %364 : vector<1x32xf32> to vector<16x32xf32>
      %369 = arith.addf %367, %368 : vector<16x32xf32>
      %cst_213 = arith.constant dense<0.000000e+00> : vector<16x32xf32>
      %370 = tpu.matmul %362, %365, %cst_213 {dimension_numbers = #tpu.dot_dimension_numbers<[1], [0], [0], [1], [0, 0, 1, 1], [], []>} : vector<16x32xf32>, vector<32x32xf32>, vector<16x32xf32> -> vector<16x32xf32>
      %371 = vector.broadcast %366 : vector<1x32xf32> to vector<16x32xf32>
      %372 = arith.addf %370, %371 : vector<16x32xf32>
      %373 = vector.extract_strided_slice %369 {offsets = [0, 0], sizes = [16, 8], strides = [1, 1]} : vector<16x32xf32> to vector<16x8xf32>
      %c0_214 = arith.constant 0 : index
      %c0_215 = arith.constant 0 : index
      %c0_216 = arith.constant 0 : index
      %374 = vector.load %arg36[%c0_214, %c0_215, %c0_216] : memref<4x16x8xf32, #tpu.memory_space<vmem>>, vector<1x16x8xf32>
      %375 = vector.shape_cast %374 : vector<1x16x8xf32> to vector<16x8xf32>
      %376 = vector.shape_cast %373 : vector<16x8xf32> to vector<1x16x8xf32>
      tpu.vector_store %arg36[%c0_214, %c0_215, %c0_216], %376 {strides = array<i32>} : memref<4x16x8xf32, #tpu.memory_space<vmem>>, vector<1x16x8xf32>,
      %377 = vector.extract_strided_slice %372 {offsets = [0, 0], sizes = [16, 8], strides = [1, 1]} : vector<16x32xf32> to vector<16x8xf32>
      %c0_217 = arith.constant 0 : index
      %c0_218 = arith.constant 0 : index
      %c0_219 = arith.constant 0 : index
      %378 = vector.load %arg37[%c0_217, %c0_218, %c0_219] : memref<4x16x8xf32, #tpu.memory_space<vmem>>, vector<1x16x8xf32>
      %379 = vector.shape_cast %378 : vector<1x16x8xf32> to vector<16x8xf32>
      %380 = vector.shape_cast %377 : vector<16x8xf32> to vector<1x16x8xf32>
      tpu.vector_store %arg37[%c0_217, %c0_218, %c0_219], %380 {strides = array<i32>} : memref<4x16x8xf32, #tpu.memory_space<vmem>>, vector<1x16x8xf32>,
      %381 = vector.extract_strided_slice %369 {offsets = [0, 8], sizes = [16, 8], strides = [1, 1]} : vector<16x32xf32> to vector<16x8xf32>
      %c1_220 = arith.constant 1 : index
      %c0_221 = arith.constant 0 : index
      %c0_222 = arith.constant 0 : index
      %382 = vector.load %arg36[%c1_220, %c0_221, %c0_222] : memref<4x16x8xf32, #tpu.memory_space<vmem>>, vector<1x16x8xf32>
      %383 = vector.shape_cast %382 : vector<1x16x8xf32> to vector<16x8xf32>
      %384 = vector.shape_cast %381 : vector<16x8xf32> to vector<1x16x8xf32>
      tpu.vector_store %arg36[%c1_220, %c0_221, %c0_222], %384 {strides = array<i32>} : memref<4x16x8xf32, #tpu.memory_space<vmem>>, vector<1x16x8xf32>,
      %385 = vector.extract_strided_slice %372 {offsets = [0, 8], sizes = [16, 8], strides = [1, 1]} : vector<16x32xf32> to vector<16x8xf32>
      %c1_223 = arith.constant 1 : index
      %c0_224 = arith.constant 0 : index
      %c0_225 = arith.constant 0 : index
      %386 = vector.load %arg37[%c1_223, %c0_224, %c0_225] : memref<4x16x8xf32, #tpu.memory_space<vmem>>, vector<1x16x8xf32>
      %387 = vector.shape_cast %386 : vector<1x16x8xf32> to vector<16x8xf32>
      %388 = vector.shape_cast %385 : vector<16x8xf32> to vector<1x16x8xf32>
      tpu.vector_store %arg37[%c1_223, %c0_224, %c0_225], %388 {strides = array<i32>} : memref<4x16x8xf32, #tpu.memory_space<vmem>>, vector<1x16x8xf32>,
      %389 = vector.extract_strided_slice %369 {offsets = [0, 16], sizes = [16, 8], strides = [1, 1]} : vector<16x32xf32> to vector<16x8xf32>
      %c2_226 = arith.constant 2 : index
      %c0_227 = arith.constant 0 : index
      %c0_228 = arith.constant 0 : index
      %390 = vector.load %arg36[%c2_226, %c0_227, %c0_228] : memref<4x16x8xf32, #tpu.memory_space<vmem>>, vector<1x16x8xf32>
      %391 = vector.shape_cast %390 : vector<1x16x8xf32> to vector<16x8xf32>
      %392 = vector.shape_cast %389 : vector<16x8xf32> to vector<1x16x8xf32>
      tpu.vector_store %arg36[%c2_226, %c0_227, %c0_228], %392 {strides = array<i32>} : memref<4x16x8xf32, #tpu.memory_space<vmem>>, vector<1x16x8xf32>,
      %393 = vector.extract_strided_slice %372 {offsets = [0, 16], sizes = [16, 8], strides = [1, 1]} : vector<16x32xf32> to vector<16x8xf32>
      %c2_229 = arith.constant 2 : index
      %c0_230 = arith.constant 0 : index
      %c0_231 = arith.constant 0 : index
      %394 = vector.load %arg37[%c2_229, %c0_230, %c0_231] : memref<4x16x8xf32, #tpu.memory_space<vmem>>, vector<1x16x8xf32>
      %395 = vector.shape_cast %394 : vector<1x16x8xf32> to vector<16x8xf32>
      %396 = vector.shape_cast %393 : vector<16x8xf32> to vector<1x16x8xf32>
      tpu.vector_store %arg37[%c2_229, %c0_230, %c0_231], %396 {strides = array<i32>} : memref<4x16x8xf32, #tpu.memory_space<vmem>>, vector<1x16x8xf32>,
      %397 = vector.extract_strided_slice %369 {offsets = [0, 24], sizes = [16, 8], strides = [1, 1]} : vector<16x32xf32> to vector<16x8xf32>
      %c3_232 = arith.constant 3 : index
      %c0_233 = arith.constant 0 : index
      %c0_234 = arith.constant 0 : index
      %398 = vector.load %arg36[%c3_232, %c0_233, %c0_234] : memref<4x16x8xf32, #tpu.memory_space<vmem>>, vector<1x16x8xf32>
      %399 = vector.shape_cast %398 : vector<1x16x8xf32> to vector<16x8xf32>
      %400 = vector.shape_cast %397 : vector<16x8xf32> to vector<1x16x8xf32>
      tpu.vector_store %arg36[%c3_232, %c0_233, %c0_234], %400 {strides = array<i32>} : memref<4x16x8xf32, #tpu.memory_space<vmem>>, vector<1x16x8xf32>,
      %401 = vector.extract_strided_slice %372 {offsets = [0, 24], sizes = [16, 8], strides = [1, 1]} : vector<16x32xf32> to vector<16x8xf32>
      %c3_235 = arith.constant 3 : index
      %c0_236 = arith.constant 0 : index
      %c0_237 = arith.constant 0 : index
      %402 = vector.load %arg37[%c3_235, %c0_236, %c0_237] : memref<4x16x8xf32, #tpu.memory_space<vmem>>, vector<1x16x8xf32>
      %403 = vector.shape_cast %402 : vector<1x16x8xf32> to vector<16x8xf32>
      %404 = vector.shape_cast %401 : vector<16x8xf32> to vector<1x16x8xf32>
      tpu.vector_store %arg37[%c3_235, %c0_236, %c0_237], %404 {strides = array<i32>} : memref<4x16x8xf32, #tpu.memory_space<vmem>>, vector<1x16x8xf32>,
    } else {
    }
    %c0 = arith.constant 0 : index
    %c0_1 = arith.constant 0 : index
    %c0_2 = arith.constant 0 : index
    %3 = vector.load %arg2[%c0, %c0_1, %c0_2] : memref<1x8x32xf32, #tpu.memory_space<vmem>>, vector<1x8x32xf32>
    %4 = vector.shape_cast %3 : vector<1x8x32xf32> to vector<8x32xf32>
    %c0_3 = arith.constant 0 : index
    %c0_4 = arith.constant 0 : index
    %c0_5 = arith.constant 0 : index
    %5 = vector.load %arg5[%c0_3, %c0_4, %c0_5] : memref<1x8x16xf32, #tpu.memory_space<vmem>>, vector<1x8x16xf32>
    %6 = vector.shape_cast %5 : vector<1x8x16xf32> to vector<8x16xf32>
    %c0_6 = arith.constant 0 : index
    %c0_7 = arith.constant 0 : index
    %c0_8 = arith.constant 0 : index
    %7 = vector.load %arg6[%c0_6, %c0_7, %c0_8] : memref<1x1x16xf32, #tpu.memory_space<vmem>>, vector<1x1x16xf32>
    %8 = vector.shape_cast %7 : vector<1x1x16xf32> to vector<1x16xf32>
    %c0_9 = arith.constant 0 : index
    %c0_10 = arith.constant 0 : index
    %9 = vector.load %arg7[%c0_9, %c0_10] : memref<1x32xf32, #tpu.memory_space<vmem>>, vector<1x32xf32>
    %c0_11 = arith.constant 0 : index
    %c0_12 = arith.constant 0 : index
    %10 = vector.load %arg8[%c0_11, %c0_12] : memref<1x32xf32, #tpu.memory_space<vmem>>, vector<1x32xf32>
    %cst = arith.constant dense<0.000000e+00> : vector<8xf32>
    %11 = vector.multi_reduction <add>, %4, %cst [1] : vector<8x32xf32> to vector<8xf32>
    %12 = vector.shape_cast %11 : vector<8xf32> to vector<8x1xf32>
    %cst_13 = arith.constant 3.200000e+01 : f32
    %13 = vector.broadcast %cst_13 : f32 to vector<8x1xf32>
    %14 = arith.divf %12, %13 : vector<8x1xf32>
    %15 = vector.broadcast %14 : vector<8x1xf32> to vector<8x32xf32>
    %16 = arith.subf %4, %15 : vector<8x32xf32>
    %17 = arith.mulf %16, %16 : vector<8x32xf32>
    %cst_14 = arith.constant dense<0.000000e+00> : vector<8xf32>
    %18 = vector.multi_reduction <add>, %17, %cst_14 [1] : vector<8x32xf32> to vector<8xf32>
    %19 = vector.shape_cast %18 : vector<8xf32> to vector<8x1xf32>
    %cst_15 = arith.constant 3.200000e+01 : f32
    %20 = vector.broadcast %cst_15 : f32 to vector<8x1xf32>
    %21 = arith.divf %19, %20 : vector<8x1xf32>
    %22 = vector.broadcast %14 : vector<8x1xf32> to vector<8x32xf32>
    %23 = arith.subf %4, %22 : vector<8x32xf32>
    %cst_16 = arith.constant 9.99999974E-6 : f32
    %24 = vector.broadcast %cst_16 : f32 to vector<8x1xf32>
    %25 = arith.addf %21, %24 : vector<8x1xf32>
    %26 = math.rsqrt %25 : vector<8x1xf32>
    %27 = vector.broadcast %26 : vector<8x1xf32> to vector<8x32xf32>
    %28 = arith.mulf %23, %27 : vector<8x32xf32>
    %29 = vector.broadcast %9 : vector<1x32xf32> to vector<8x32xf32>
    %30 = arith.mulf %28, %29 : vector<8x32xf32>
    %31 = vector.broadcast %10 : vector<1x32xf32> to vector<8x32xf32>
    %32 = arith.addf %30, %31 : vector<8x32xf32>
    %c0_17 = arith.constant 0 : index
    %c0_18 = arith.constant 0 : index
    %33 = vector.load %arg9[%c0_17, %c0_18] : memref<32x32xf32, #tpu.memory_space<vmem>>, vector<32x32xf32>
    %c0_19 = arith.constant 0 : index
    %c0_20 = arith.constant 0 : index
    %34 = vector.load %arg10[%c0_19, %c0_20] : memref<1x32xf32, #tpu.memory_space<vmem>>, vector<1x32xf32>
    %c0_21 = arith.constant 0 : index
    %c0_22 = arith.constant 0 : index
    %35 = vector.load %arg15[%c0_21, %c0_22] : memref<32x32xf32, #tpu.memory_space<vmem>>, vector<32x32xf32>
    %c0_23 = arith.constant 0 : index
    %c0_24 = arith.constant 0 : index
    %36 = vector.load %arg16[%c0_23, %c0_24] : memref<1x32xf32, #tpu.memory_space<vmem>>, vector<1x32xf32>
    %cst_25 = arith.constant dense<0.000000e+00> : vector<8x32xf32>
    %37 = tpu.matmul %32, %33, %cst_25 {dimension_numbers = #tpu.dot_dimension_numbers<[1], [0], [0], [1], [0, 0, 1, 1], [], []>} : vector<8x32xf32>, vector<32x32xf32>, vector<8x32xf32> -> vector<8x32xf32>
    %38 = vector.broadcast %34 : vector<1x32xf32> to vector<8x32xf32>
    %39 = arith.addf %37, %38 : vector<8x32xf32>
    %40 = vector.extract_strided_slice %39 {offsets = [0, 0], sizes = [8, 8], strides = [1, 1]} : vector<8x32xf32> to vector<8x8xf32>
    %c0_26 = arith.constant 0 : index
    %c0_27 = arith.constant 0 : index
    %c0_28 = arith.constant 0 : index
    %41 = vector.load %arg34[%c0_26, %c0_27, %c0_28] : memref<4x16x8xf32, #tpu.memory_space<vmem>>, vector<1x16x8xf32>
    %42 = vector.shape_cast %41 : vector<1x16x8xf32> to vector<16x8xf32>
    %c0_29 = arith.constant 0 : index
    %c0_30 = arith.constant 0 : index
    %c0_31 = arith.constant 0 : index
    %43 = vector.load %arg35[%c0_29, %c0_30, %c0_31] : memref<4x16x8xf32, #tpu.memory_space<vmem>>, vector<1x16x8xf32>
    %44 = vector.shape_cast %43 : vector<1x16x8xf32> to vector<16x8xf32>
    %cst_32 = arith.constant dense<0.000000e+00> : vector<8x16xf32>
    %45 = tpu.matmul %40, %42, %cst_32 {dimension_numbers = #tpu.dot_dimension_numbers<[1], [1], [0], [0], [0, 0, 1, 0], [], []>} : vector<8x8xf32>, vector<16x8xf32>, vector<8x16xf32> -> vector<8x16xf32>
    %46 = arith.addf %45, %6 : vector<8x16xf32>
    %cst_33 = arith.constant dense<0xFF800000> : vector<8xf32>
    %47 = vector.multi_reduction <maximumf>, %46, %cst_33 [1] : vector<8x16xf32> to vector<8xf32>
    %48 = vector.shape_cast %47 : vector<8xf32> to vector<8x1xf32>
    %49 = vector.broadcast %48 : vector<8x1xf32> to vector<8x16xf32>
    %50 = arith.subf %46, %49 : vector<8x16xf32>
    %51 = math.exp %50 : vector<8x16xf32>
    %cst_34 = arith.constant dense<0.000000e+00> : vector<8xf32>
    %52 = vector.multi_reduction <add>, %51, %cst_34 [1] : vector<8x16xf32> to vector<8xf32>
    %53 = vector.shape_cast %52 : vector<8xf32> to vector<8x1xf32>
    %54 = tpu.reciprocal %53 {approx = true} : vector<8x1xf32> -> vector<8x1xf32>
    %55 = vector.broadcast %54 : vector<8x1xf32> to vector<8x16xf32>
    %56 = arith.mulf %51, %55 : vector<8x16xf32>
    %cst_35 = arith.constant dense<0.000000e+00> : vector<8x8xf32>
    %57 = tpu.matmul %56, %44, %cst_35 {dimension_numbers = #tpu.dot_dimension_numbers<[1], [0], [0], [1], [0, 0, 1, 1], [], []>} : vector<8x16xf32>, vector<16x8xf32>, vector<8x8xf32> -> vector<8x8xf32>
    %58 = vector.extract_strided_slice %39 {offsets = [0, 8], sizes = [8, 8], strides = [1, 1]} : vector<8x32xf32> to vector<8x8xf32>
    %c1 = arith.constant 1 : index
    %c0_36 = arith.constant 0 : index
    %c0_37 = arith.constant 0 : index
    %59 = vector.load %arg34[%c1, %c0_36, %c0_37] : memref<4x16x8xf32, #tpu.memory_space<vmem>>, vector<1x16x8xf32>
    %60 = vector.shape_cast %59 : vector<1x16x8xf32> to vector<16x8xf32>
    %c1_38 = arith.constant 1 : index
    %c0_39 = arith.constant 0 : index
    %c0_40 = arith.constant 0 : index
    %61 = vector.load %arg35[%c1_38, %c0_39, %c0_40] : memref<4x16x8xf32, #tpu.memory_space<vmem>>, vector<1x16x8xf32>
    %62 = vector.shape_cast %61 : vector<1x16x8xf32> to vector<16x8xf32>
    %cst_41 = arith.constant dense<0.000000e+00> : vector<8x16xf32>
    %63 = tpu.matmul %58, %60, %cst_41 {dimension_numbers = #tpu.dot_dimension_numbers<[1], [1], [0], [0], [0, 0, 1, 0], [], []>} : vector<8x8xf32>, vector<16x8xf32>, vector<8x16xf32> -> vector<8x16xf32>
    %64 = arith.addf %63, %6 : vector<8x16xf32>
    %cst_42 = arith.constant dense<0xFF800000> : vector<8xf32>
    %65 = vector.multi_reduction <maximumf>, %64, %cst_42 [1] : vector<8x16xf32> to vector<8xf32>
    %66 = vector.shape_cast %65 : vector<8xf32> to vector<8x1xf32>
    %67 = vector.broadcast %66 : vector<8x1xf32> to vector<8x16xf32>
    %68 = arith.subf %64, %67 : vector<8x16xf32>
    %69 = math.exp %68 : vector<8x16xf32>
    %cst_43 = arith.constant dense<0.000000e+00> : vector<8xf32>
    %70 = vector.multi_reduction <add>, %69, %cst_43 [1] : vector<8x16xf32> to vector<8xf32>
    %71 = vector.shape_cast %70 : vector<8xf32> to vector<8x1xf32>
    %72 = tpu.reciprocal %71 {approx = true} : vector<8x1xf32> -> vector<8x1xf32>
    %73 = vector.broadcast %72 : vector<8x1xf32> to vector<8x16xf32>
    %74 = arith.mulf %69, %73 : vector<8x16xf32>
    %cst_44 = arith.constant dense<0.000000e+00> : vector<8x8xf32>
    %75 = tpu.matmul %74, %62, %cst_44 {dimension_numbers = #tpu.dot_dimension_numbers<[1], [0], [0], [1], [0, 0, 1, 1], [], []>} : vector<8x16xf32>, vector<16x8xf32>, vector<8x8xf32> -> vector<8x8xf32>
    %76 = vector.extract_strided_slice %39 {offsets = [0, 16], sizes = [8, 8], strides = [1, 1]} : vector<8x32xf32> to vector<8x8xf32>
    %c2 = arith.constant 2 : index
    %c0_45 = arith.constant 0 : index
    %c0_46 = arith.constant 0 : index
    %77 = vector.load %arg34[%c2, %c0_45, %c0_46] : memref<4x16x8xf32, #tpu.memory_space<vmem>>, vector<1x16x8xf32>
    %78 = vector.shape_cast %77 : vector<1x16x8xf32> to vector<16x8xf32>
    %c2_47 = arith.constant 2 : index
    %c0_48 = arith.constant 0 : index
    %c0_49 = arith.constant 0 : index
    %79 = vector.load %arg35[%c2_47, %c0_48, %c0_49] : memref<4x16x8xf32, #tpu.memory_space<vmem>>, vector<1x16x8xf32>
    %80 = vector.shape_cast %79 : vector<1x16x8xf32> to vector<16x8xf32>
    %cst_50 = arith.constant dense<0.000000e+00> : vector<8x16xf32>
    %81 = tpu.matmul %76, %78, %cst_50 {dimension_numbers = #tpu.dot_dimension_numbers<[1], [1], [0], [0], [0, 0, 1, 0], [], []>} : vector<8x8xf32>, vector<16x8xf32>, vector<8x16xf32> -> vector<8x16xf32>
    %82 = arith.addf %81, %6 : vector<8x16xf32>
    %cst_51 = arith.constant dense<0xFF800000> : vector<8xf32>
    %83 = vector.multi_reduction <maximumf>, %82, %cst_51 [1] : vector<8x16xf32> to vector<8xf32>
    %84 = vector.shape_cast %83 : vector<8xf32> to vector<8x1xf32>
    %85 = vector.broadcast %84 : vector<8x1xf32> to vector<8x16xf32>
    %86 = arith.subf %82, %85 : vector<8x16xf32>
    %87 = math.exp %86 : vector<8x16xf32>
    %cst_52 = arith.constant dense<0.000000e+00> : vector<8xf32>
    %88 = vector.multi_reduction <add>, %87, %cst_52 [1] : vector<8x16xf32> to vector<8xf32>
    %89 = vector.shape_cast %88 : vector<8xf32> to vector<8x1xf32>
    %90 = tpu.reciprocal %89 {approx = true} : vector<8x1xf32> -> vector<8x1xf32>
    %91 = vector.broadcast %90 : vector<8x1xf32> to vector<8x16xf32>
    %92 = arith.mulf %87, %91 : vector<8x16xf32>
    %cst_53 = arith.constant dense<0.000000e+00> : vector<8x8xf32>
    %93 = tpu.matmul %92, %80, %cst_53 {dimension_numbers = #tpu.dot_dimension_numbers<[1], [0], [0], [1], [0, 0, 1, 1], [], []>} : vector<8x16xf32>, vector<16x8xf32>, vector<8x8xf32> -> vector<8x8xf32>
    %94 = vector.extract_strided_slice %39 {offsets = [0, 24], sizes = [8, 8], strides = [1, 1]} : vector<8x32xf32> to vector<8x8xf32>
    %c3 = arith.constant 3 : index
    %c0_54 = arith.constant 0 : index
    %c0_55 = arith.constant 0 : index
    %95 = vector.load %arg34[%c3, %c0_54, %c0_55] : memref<4x16x8xf32, #tpu.memory_space<vmem>>, vector<1x16x8xf32>
    %96 = vector.shape_cast %95 : vector<1x16x8xf32> to vector<16x8xf32>
    %c3_56 = arith.constant 3 : index
    %c0_57 = arith.constant 0 : index
    %c0_58 = arith.constant 0 : index
    %97 = vector.load %arg35[%c3_56, %c0_57, %c0_58] : memref<4x16x8xf32, #tpu.memory_space<vmem>>, vector<1x16x8xf32>
    %98 = vector.shape_cast %97 : vector<1x16x8xf32> to vector<16x8xf32>
    %cst_59 = arith.constant dense<0.000000e+00> : vector<8x16xf32>
    %99 = tpu.matmul %94, %96, %cst_59 {dimension_numbers = #tpu.dot_dimension_numbers<[1], [1], [0], [0], [0, 0, 1, 0], [], []>} : vector<8x8xf32>, vector<16x8xf32>, vector<8x16xf32> -> vector<8x16xf32>
    %100 = arith.addf %99, %6 : vector<8x16xf32>
    %cst_60 = arith.constant dense<0xFF800000> : vector<8xf32>
    %101 = vector.multi_reduction <maximumf>, %100, %cst_60 [1] : vector<8x16xf32> to vector<8xf32>
    %102 = vector.shape_cast %101 : vector<8xf32> to vector<8x1xf32>
    %103 = vector.broadcast %102 : vector<8x1xf32> to vector<8x16xf32>
    %104 = arith.subf %100, %103 : vector<8x16xf32>
    %105 = math.exp %104 : vector<8x16xf32>
    %cst_61 = arith.constant dense<0.000000e+00> : vector<8xf32>
    %106 = vector.multi_reduction <add>, %105, %cst_61 [1] : vector<8x16xf32> to vector<8xf32>
    %107 = vector.shape_cast %106 : vector<8xf32> to vector<8x1xf32>
    %108 = tpu.reciprocal %107 {approx = true} : vector<8x1xf32> -> vector<8x1xf32>
    %109 = vector.broadcast %108 : vector<8x1xf32> to vector<8x16xf32>
    %110 = arith.mulf %105, %109 : vector<8x16xf32>
    %cst_62 = arith.constant dense<0.000000e+00> : vector<8x8xf32>
    %111 = tpu.matmul %110, %98, %cst_62 {dimension_numbers = #tpu.dot_dimension_numbers<[1], [0], [0], [1], [0, 0, 1, 1], [], []>} : vector<8x16xf32>, vector<16x8xf32>, vector<8x8xf32> -> vector<8x8xf32>
    %112 = tpu.concatenate %57, %75, %93, %111 in 1 : vector<8x8xf32>, vector<8x8xf32>, vector<8x8xf32>, vector<8x8xf32> -> vector<8x32xf32>
    %cst_63 = arith.constant dense<0.000000e+00> : vector<8x32xf32>
    %113 = tpu.matmul %112, %35, %cst_63 {dimension_numbers = #tpu.dot_dimension_numbers<[1], [0], [0], [1], [0, 0, 1, 1], [], []>} : vector<8x32xf32>, vector<32x32xf32>, vector<8x32xf32> -> vector<8x32xf32>
    %114 = vector.broadcast %36 : vector<1x32xf32> to vector<8x32xf32>
    %115 = arith.addf %113, %114 : vector<8x32xf32>
    %116 = arith.addf %4, %115 : vector<8x32xf32>
    %c0_64 = arith.constant 0 : index
    %c0_65 = arith.constant 0 : index
    %117 = vector.load %arg17[%c0_64, %c0_65] : memref<1x32xf32, #tpu.memory_space<vmem>>, vector<1x32xf32>
    %c0_66 = arith.constant 0 : index
    %c0_67 = arith.constant 0 : index
    %118 = vector.load %arg18[%c0_66, %c0_67] : memref<1x32xf32, #tpu.memory_space<vmem>>, vector<1x32xf32>
    %cst_68 = arith.constant dense<0.000000e+00> : vector<8xf32>
    %119 = vector.multi_reduction <add>, %116, %cst_68 [1] : vector<8x32xf32> to vector<8xf32>
    %120 = vector.shape_cast %119 : vector<8xf32> to vector<8x1xf32>
    %cst_69 = arith.constant 3.200000e+01 : f32
    %121 = vector.broadcast %cst_69 : f32 to vector<8x1xf32>
    %122 = arith.divf %120, %121 : vector<8x1xf32>
    %123 = vector.broadcast %122 : vector<8x1xf32> to vector<8x32xf32>
    %124 = arith.subf %116, %123 : vector<8x32xf32>
    %125 = arith.mulf %124, %124 : vector<8x32xf32>
    %cst_70 = arith.constant dense<0.000000e+00> : vector<8xf32>
    %126 = vector.multi_reduction <add>, %125, %cst_70 [1] : vector<8x32xf32> to vector<8xf32>
    %127 = vector.shape_cast %126 : vector<8xf32> to vector<8x1xf32>
    %cst_71 = arith.constant 3.200000e+01 : f32
    %128 = vector.broadcast %cst_71 : f32 to vector<8x1xf32>
    %129 = arith.divf %127, %128 : vector<8x1xf32>
    %130 = vector.broadcast %122 : vector<8x1xf32> to vector<8x32xf32>
    %131 = arith.subf %116, %130 : vector<8x32xf32>
    %cst_72 = arith.constant 9.99999974E-6 : f32
    %132 = vector.broadcast %cst_72 : f32 to vector<8x1xf32>
    %133 = arith.addf %129, %132 : vector<8x1xf32>
    %134 = math.rsqrt %133 : vector<8x1xf32>
    %135 = vector.broadcast %134 : vector<8x1xf32> to vector<8x32xf32>
    %136 = arith.mulf %131, %135 : vector<8x32xf32>
    %137 = vector.broadcast %117 : vector<1x32xf32> to vector<8x32xf32>
    %138 = arith.mulf %136, %137 : vector<8x32xf32>
    %139 = vector.broadcast %118 : vector<1x32xf32> to vector<8x32xf32>
    %140 = arith.addf %138, %139 : vector<8x32xf32>
    %c0_73 = arith.constant 0 : index
    %c0_74 = arith.constant 0 : index
    %141 = vector.load %arg19[%c0_73, %c0_74] : memref<32x32xf32, #tpu.memory_space<vmem>>, vector<32x32xf32>
    %c0_75 = arith.constant 0 : index
    %c0_76 = arith.constant 0 : index
    %142 = vector.load %arg20[%c0_75, %c0_76] : memref<1x32xf32, #tpu.memory_space<vmem>>, vector<1x32xf32>
    %c0_77 = arith.constant 0 : index
    %c0_78 = arith.constant 0 : index
    %143 = vector.load %arg25[%c0_77, %c0_78] : memref<32x32xf32, #tpu.memory_space<vmem>>, vector<32x32xf32>
    %c0_79 = arith.constant 0 : index
    %c0_80 = arith.constant 0 : index
    %144 = vector.load %arg26[%c0_79, %c0_80] : memref<1x32xf32, #tpu.memory_space<vmem>>, vector<1x32xf32>
    %cst_81 = arith.constant dense<0.000000e+00> : vector<8x32xf32>
    %145 = tpu.matmul %140, %141, %cst_81 {dimension_numbers = #tpu.dot_dimension_numbers<[1], [0], [0], [1], [0, 0, 1, 1], [], []>} : vector<8x32xf32>, vector<32x32xf32>, vector<8x32xf32> -> vector<8x32xf32>
    %146 = vector.broadcast %142 : vector<1x32xf32> to vector<8x32xf32>
    %147 = arith.addf %145, %146 : vector<8x32xf32>
    %148 = vector.extract_strided_slice %147 {offsets = [0, 0], sizes = [8, 8], strides = [1, 1]} : vector<8x32xf32> to vector<8x8xf32>
    %c0_82 = arith.constant 0 : index
    %c0_83 = arith.constant 0 : index
    %c0_84 = arith.constant 0 : index
    %149 = vector.load %arg36[%c0_82, %c0_83, %c0_84] : memref<4x16x8xf32, #tpu.memory_space<vmem>>, vector<1x16x8xf32>
    %150 = vector.shape_cast %149 : vector<1x16x8xf32> to vector<16x8xf32>
    %c0_85 = arith.constant 0 : index
    %c0_86 = arith.constant 0 : index
    %c0_87 = arith.constant 0 : index
    %151 = vector.load %arg37[%c0_85, %c0_86, %c0_87] : memref<4x16x8xf32, #tpu.memory_space<vmem>>, vector<1x16x8xf32>
    %152 = vector.shape_cast %151 : vector<1x16x8xf32> to vector<16x8xf32>
    %cst_88 = arith.constant dense<0.000000e+00> : vector<8x16xf32>
    %153 = tpu.matmul %148, %150, %cst_88 {dimension_numbers = #tpu.dot_dimension_numbers<[1], [1], [0], [0], [0, 0, 1, 0], [], []>} : vector<8x8xf32>, vector<16x8xf32>, vector<8x16xf32> -> vector<8x16xf32>
    %154 = vector.broadcast %8 : vector<1x16xf32> to vector<8x16xf32>
    %155 = arith.addf %153, %154 : vector<8x16xf32>
    %cst_89 = arith.constant dense<0xFF800000> : vector<8xf32>
    %156 = vector.multi_reduction <maximumf>, %155, %cst_89 [1] : vector<8x16xf32> to vector<8xf32>
    %157 = vector.shape_cast %156 : vector<8xf32> to vector<8x1xf32>
    %158 = vector.broadcast %157 : vector<8x1xf32> to vector<8x16xf32>
    %159 = arith.subf %155, %158 : vector<8x16xf32>
    %160 = math.exp %159 : vector<8x16xf32>
    %cst_90 = arith.constant dense<0.000000e+00> : vector<8xf32>
    %161 = vector.multi_reduction <add>, %160, %cst_90 [1] : vector<8x16xf32> to vector<8xf32>
    %162 = vector.shape_cast %161 : vector<8xf32> to vector<8x1xf32>
    %163 = tpu.reciprocal %162 {approx = true} : vector<8x1xf32> -> vector<8x1xf32>
    %164 = vector.broadcast %163 : vector<8x1xf32> to vector<8x16xf32>
    %165 = arith.mulf %160, %164 : vector<8x16xf32>
    %cst_91 = arith.constant dense<0.000000e+00> : vector<8x8xf32>
    %166 = tpu.matmul %165, %152, %cst_91 {dimension_numbers = #tpu.dot_dimension_numbers<[1], [0], [0], [1], [0, 0, 1, 1], [], []>} : vector<8x16xf32>, vector<16x8xf32>, vector<8x8xf32> -> vector<8x8xf32>
    %167 = vector.extract_strided_slice %147 {offsets = [0, 8], sizes = [8, 8], strides = [1, 1]} : vector<8x32xf32> to vector<8x8xf32>
    %c1_92 = arith.constant 1 : index
    %c0_93 = arith.constant 0 : index
    %c0_94 = arith.constant 0 : index
    %168 = vector.load %arg36[%c1_92, %c0_93, %c0_94] : memref<4x16x8xf32, #tpu.memory_space<vmem>>, vector<1x16x8xf32>
    %169 = vector.shape_cast %168 : vector<1x16x8xf32> to vector<16x8xf32>
    %c1_95 = arith.constant 1 : index
    %c0_96 = arith.constant 0 : index
    %c0_97 = arith.constant 0 : index
    %170 = vector.load %arg37[%c1_95, %c0_96, %c0_97] : memref<4x16x8xf32, #tpu.memory_space<vmem>>, vector<1x16x8xf32>
    %171 = vector.shape_cast %170 : vector<1x16x8xf32> to vector<16x8xf32>
    %cst_98 = arith.constant dense<0.000000e+00> : vector<8x16xf32>
    %172 = tpu.matmul %167, %169, %cst_98 {dimension_numbers = #tpu.dot_dimension_numbers<[1], [1], [0], [0], [0, 0, 1, 0], [], []>} : vector<8x8xf32>, vector<16x8xf32>, vector<8x16xf32> -> vector<8x16xf32>
    %173 = vector.broadcast %8 : vector<1x16xf32> to vector<8x16xf32>
    %174 = arith.addf %172, %173 : vector<8x16xf32>
    %cst_99 = arith.constant dense<0xFF800000> : vector<8xf32>
    %175 = vector.multi_reduction <maximumf>, %174, %cst_99 [1] : vector<8x16xf32> to vector<8xf32>
    %176 = vector.shape_cast %175 : vector<8xf32> to vector<8x1xf32>
    %177 = vector.broadcast %176 : vector<8x1xf32> to vector<8x16xf32>
    %178 = arith.subf %174, %177 : vector<8x16xf32>
    %179 = math.exp %178 : vector<8x16xf32>
    %cst_100 = arith.constant dense<0.000000e+00> : vector<8xf32>
    %180 = vector.multi_reduction <add>, %179, %cst_100 [1] : vector<8x16xf32> to vector<8xf32>
    %181 = vector.shape_cast %180 : vector<8xf32> to vector<8x1xf32>
    %182 = tpu.reciprocal %181 {approx = true} : vector<8x1xf32> -> vector<8x1xf32>
    %183 = vector.broadcast %182 : vector<8x1xf32> to vector<8x16xf32>
    %184 = arith.mulf %179, %183 : vector<8x16xf32>
    %cst_101 = arith.constant dense<0.000000e+00> : vector<8x8xf32>
    %185 = tpu.matmul %184, %171, %cst_101 {dimension_numbers = #tpu.dot_dimension_numbers<[1], [0], [0], [1], [0, 0, 1, 1], [], []>} : vector<8x16xf32>, vector<16x8xf32>, vector<8x8xf32> -> vector<8x8xf32>
    %186 = vector.extract_strided_slice %147 {offsets = [0, 16], sizes = [8, 8], strides = [1, 1]} : vector<8x32xf32> to vector<8x8xf32>
    %c2_102 = arith.constant 2 : index
    %c0_103 = arith.constant 0 : index
    %c0_104 = arith.constant 0 : index
    %187 = vector.load %arg36[%c2_102, %c0_103, %c0_104] : memref<4x16x8xf32, #tpu.memory_space<vmem>>, vector<1x16x8xf32>
    %188 = vector.shape_cast %187 : vector<1x16x8xf32> to vector<16x8xf32>
    %c2_105 = arith.constant 2 : index
    %c0_106 = arith.constant 0 : index
    %c0_107 = arith.constant 0 : index
    %189 = vector.load %arg37[%c2_105, %c0_106, %c0_107] : memref<4x16x8xf32, #tpu.memory_space<vmem>>, vector<1x16x8xf32>
    %190 = vector.shape_cast %189 : vector<1x16x8xf32> to vector<16x8xf32>
    %cst_108 = arith.constant dense<0.000000e+00> : vector<8x16xf32>
    %191 = tpu.matmul %186, %188, %cst_108 {dimension_numbers = #tpu.dot_dimension_numbers<[1], [1], [0], [0], [0, 0, 1, 0], [], []>} : vector<8x8xf32>, vector<16x8xf32>, vector<8x16xf32> -> vector<8x16xf32>
    %192 = vector.broadcast %8 : vector<1x16xf32> to vector<8x16xf32>
    %193 = arith.addf %191, %192 : vector<8x16xf32>
    %cst_109 = arith.constant dense<0xFF800000> : vector<8xf32>
    %194 = vector.multi_reduction <maximumf>, %193, %cst_109 [1] : vector<8x16xf32> to vector<8xf32>
    %195 = vector.shape_cast %194 : vector<8xf32> to vector<8x1xf32>
    %196 = vector.broadcast %195 : vector<8x1xf32> to vector<8x16xf32>
    %197 = arith.subf %193, %196 : vector<8x16xf32>
    %198 = math.exp %197 : vector<8x16xf32>
    %cst_110 = arith.constant dense<0.000000e+00> : vector<8xf32>
    %199 = vector.multi_reduction <add>, %198, %cst_110 [1] : vector<8x16xf32> to vector<8xf32>
    %200 = vector.shape_cast %199 : vector<8xf32> to vector<8x1xf32>
    %201 = tpu.reciprocal %200 {approx = true} : vector<8x1xf32> -> vector<8x1xf32>
    %202 = vector.broadcast %201 : vector<8x1xf32> to vector<8x16xf32>
    %203 = arith.mulf %198, %202 : vector<8x16xf32>
    %cst_111 = arith.constant dense<0.000000e+00> : vector<8x8xf32>
    %204 = tpu.matmul %203, %190, %cst_111 {dimension_numbers = #tpu.dot_dimension_numbers<[1], [0], [0], [1], [0, 0, 1, 1], [], []>} : vector<8x16xf32>, vector<16x8xf32>, vector<8x8xf32> -> vector<8x8xf32>
    %205 = vector.extract_strided_slice %147 {offsets = [0, 24], sizes = [8, 8], strides = [1, 1]} : vector<8x32xf32> to vector<8x8xf32>
    %c3_112 = arith.constant 3 : index
    %c0_113 = arith.constant 0 : index
    %c0_114 = arith.constant 0 : index
    %206 = vector.load %arg36[%c3_112, %c0_113, %c0_114] : memref<4x16x8xf32, #tpu.memory_space<vmem>>, vector<1x16x8xf32>
    %207 = vector.shape_cast %206 : vector<1x16x8xf32> to vector<16x8xf32>
    %c3_115 = arith.constant 3 : index
    %c0_116 = arith.constant 0 : index
    %c0_117 = arith.constant 0 : index
    %208 = vector.load %arg37[%c3_115, %c0_116, %c0_117] : memref<4x16x8xf32, #tpu.memory_space<vmem>>, vector<1x16x8xf32>
    %209 = vector.shape_cast %208 : vector<1x16x8xf32> to vector<16x8xf32>
    %cst_118 = arith.constant dense<0.000000e+00> : vector<8x16xf32>
    %210 = tpu.matmul %205, %207, %cst_118 {dimension_numbers = #tpu.dot_dimension_numbers<[1], [1], [0], [0], [0, 0, 1, 0], [], []>} : vector<8x8xf32>, vector<16x8xf32>, vector<8x16xf32> -> vector<8x16xf32>
    %211 = vector.broadcast %8 : vector<1x16xf32> to vector<8x16xf32>
    %212 = arith.addf %210, %211 : vector<8x16xf32>
    %cst_119 = arith.constant dense<0xFF800000> : vector<8xf32>
    %213 = vector.multi_reduction <maximumf>, %212, %cst_119 [1] : vector<8x16xf32> to vector<8xf32>
    %214 = vector.shape_cast %213 : vector<8xf32> to vector<8x1xf32>
    %215 = vector.broadcast %214 : vector<8x1xf32> to vector<8x16xf32>
    %216 = arith.subf %212, %215 : vector<8x16xf32>
    %217 = math.exp %216 : vector<8x16xf32>
    %cst_120 = arith.constant dense<0.000000e+00> : vector<8xf32>
    %218 = vector.multi_reduction <add>, %217, %cst_120 [1] : vector<8x16xf32> to vector<8xf32>
    %219 = vector.shape_cast %218 : vector<8xf32> to vector<8x1xf32>
    %220 = tpu.reciprocal %219 {approx = true} : vector<8x1xf32> -> vector<8x1xf32>
    %221 = vector.broadcast %220 : vector<8x1xf32> to vector<8x16xf32>
    %222 = arith.mulf %217, %221 : vector<8x16xf32>
    %cst_121 = arith.constant dense<0.000000e+00> : vector<8x8xf32>
    %223 = tpu.matmul %222, %209, %cst_121 {dimension_numbers = #tpu.dot_dimension_numbers<[1], [0], [0], [1], [0, 0, 1, 1], [], []>} : vector<8x16xf32>, vector<16x8xf32>, vector<8x8xf32> -> vector<8x8xf32>
    %224 = tpu.concatenate %166, %185, %204, %223 in 1 : vector<8x8xf32>, vector<8x8xf32>, vector<8x8xf32>, vector<8x8xf32> -> vector<8x32xf32>
    %cst_122 = arith.constant dense<0.000000e+00> : vector<8x32xf32>
    %225 = tpu.matmul %224, %143, %cst_122 {dimension_numbers = #tpu.dot_dimension_numbers<[1], [0], [0], [1], [0, 0, 1, 1], [], []>} : vector<8x32xf32>, vector<32x32xf32>, vector<8x32xf32> -> vector<8x32xf32>
    %226 = vector.broadcast %144 : vector<1x32xf32> to vector<8x32xf32>
    %227 = arith.addf %225, %226 : vector<8x32xf32>
    %228 = arith.addf %116, %227 : vector<8x32xf32>
    %c0_123 = arith.constant 0 : index
    %c0_124 = arith.constant 0 : index
    %229 = vector.load %arg27[%c0_123, %c0_124] : memref<1x32xf32, #tpu.memory_space<vmem>>, vector<1x32xf32>
    %c0_125 = arith.constant 0 : index
    %c0_126 = arith.constant 0 : index
    %230 = vector.load %arg28[%c0_125, %c0_126] : memref<1x32xf32, #tpu.memory_space<vmem>>, vector<1x32xf32>
    %cst_127 = arith.constant dense<0.000000e+00> : vector<8xf32>
    %231 = vector.multi_reduction <add>, %228, %cst_127 [1] : vector<8x32xf32> to vector<8xf32>
    %232 = vector.shape_cast %231 : vector<8xf32> to vector<8x1xf32>
    %cst_128 = arith.constant 3.200000e+01 : f32
    %233 = vector.broadcast %cst_128 : f32 to vector<8x1xf32>
    %234 = arith.divf %232, %233 : vector<8x1xf32>
    %235 = vector.broadcast %234 : vector<8x1xf32> to vector<8x32xf32>
    %236 = arith.subf %228, %235 : vector<8x32xf32>
    %237 = arith.mulf %236, %236 : vector<8x32xf32>
    %cst_129 = arith.constant dense<0.000000e+00> : vector<8xf32>
    %238 = vector.multi_reduction <add>, %237, %cst_129 [1] : vector<8x32xf32> to vector<8xf32>
    %239 = vector.shape_cast %238 : vector<8xf32> to vector<8x1xf32>
    %cst_130 = arith.constant 3.200000e+01 : f32
    %240 = vector.broadcast %cst_130 : f32 to vector<8x1xf32>
    %241 = arith.divf %239, %240 : vector<8x1xf32>
    %242 = vector.broadcast %234 : vector<8x1xf32> to vector<8x32xf32>
    %243 = arith.subf %228, %242 : vector<8x32xf32>
    %cst_131 = arith.constant 9.99999974E-6 : f32
    %244 = vector.broadcast %cst_131 : f32 to vector<8x1xf32>
    %245 = arith.addf %241, %244 : vector<8x1xf32>
    %246 = math.rsqrt %245 : vector<8x1xf32>
    %247 = vector.broadcast %246 : vector<8x1xf32> to vector<8x32xf32>
    %248 = arith.mulf %243, %247 : vector<8x32xf32>
    %249 = vector.broadcast %229 : vector<1x32xf32> to vector<8x32xf32>
    %250 = arith.mulf %248, %249 : vector<8x32xf32>
    %251 = vector.broadcast %230 : vector<1x32xf32> to vector<8x32xf32>
    %252 = arith.addf %250, %251 : vector<8x32xf32>
    %c0_132 = arith.constant 0 : index
    %c0_133 = arith.constant 0 : index
    %253 = vector.load %arg29[%c0_132, %c0_133] : memref<32x64xf32, #tpu.memory_space<vmem>>, vector<32x64xf32>
    %cst_134 = arith.constant dense<0.000000e+00> : vector<8x64xf32>
    %254 = tpu.matmul %252, %253, %cst_134 {dimension_numbers = #tpu.dot_dimension_numbers<[1], [0], [0], [1], [0, 0, 1, 1], [], []>} : vector<8x32xf32>, vector<32x64xf32>, vector<8x64xf32> -> vector<8x64xf32>
    %c0_135 = arith.constant 0 : index
    %c0_136 = arith.constant 0 : index
    %255 = vector.load %arg30[%c0_135, %c0_136] : memref<1x64xf32, #tpu.memory_space<vmem>>, vector<1x64xf32>
    %256 = vector.broadcast %255 : vector<1x64xf32> to vector<8x64xf32>
    %257 = arith.addf %254, %256 : vector<8x64xf32>
    %cst_137 = arith.constant 0.000000e+00 : f32
    %258 = vector.broadcast %cst_137 : f32 to vector<8x64xf32>
    %259 = arith.maximumf %257, %258 : vector<8x64xf32>
    %c0_138 = arith.constant 0 : index
    %c0_139 = arith.constant 0 : index
    %260 = vector.load %arg31[%c0_138, %c0_139] : memref<64x32xf32, #tpu.memory_space<vmem>>, vector<64x32xf32>
    %cst_140 = arith.constant dense<0.000000e+00> : vector<8x32xf32>
    %261 = tpu.matmul %259, %260, %cst_140 {dimension_numbers = #tpu.dot_dimension_numbers<[1], [0], [0], [1], [0, 0, 1, 1], [], []>} : vector<8x64xf32>, vector<64x32xf32>, vector<8x32xf32> -> vector<8x32xf32>
    %c0_141 = arith.constant 0 : index
    %c0_142 = arith.constant 0 : index
    %262 = vector.load %arg32[%c0_141, %c0_142] : memref<1x32xf32, #tpu.memory_space<vmem>>, vector<1x32xf32>
    %263 = vector.broadcast %262 : vector<1x32xf32> to vector<8x32xf32>
    %264 = arith.addf %261, %263 : vector<8x32xf32>
    %265 = arith.addf %228, %264 : vector<8x32xf32>
    %c0_143 = arith.constant 0 : index
    %c0_144 = arith.constant 0 : index
    %c0_145 = arith.constant 0 : index
    %266 = vector.load %arg33[%c0_143, %c0_144, %c0_145] : memref<1x8x32xf32, #tpu.memory_space<vmem>>, vector<1x8x32xf32>
    %267 = vector.shape_cast %266 : vector<1x8x32xf32> to vector<8x32xf32>
    %268 = vector.shape_cast %265 : vector<8x32xf32> to vector<1x8x32xf32>
    tpu.vector_store %arg33[%c0_143, %c0_144, %c0_145], %268 {strides = array<i32>} : memref<1x8x32xf32, #tpu.memory_space<vmem>>, vector<1x8x32xf32>,
    return
  }
  func.func @transform_0(%arg0: i32, %arg1: i32) -> (i32, i32, i32) {
    %c0_i32 = arith.constant 0 : i32
    %c0_i32_0 = arith.constant 0 : i32
    return %arg0, %arg1, %c0_i32 : i32, i32, i32
  }
  func.func @transform_1(%arg0: i32, %arg1: i32) -> (i32, i32, i32) {
    %c0_i32 = arith.constant 0 : i32
    %c0_i32_0 = arith.constant 0 : i32
    %c0_i32_1 = arith.constant 0 : i32
    return %arg0, %c0_i32, %c0_i32_0 : i32, i32, i32
  }
  func.func @transform_2(%arg0: i32, %arg1: i32) -> (i32, i32, i32) {
    %c0_i32 = arith.constant 0 : i32
    %c0_i32_0 = arith.constant 0 : i32
    %c0_i32_1 = arith.constant 0 : i32
    return %arg0, %c0_i32, %c0_i32_0 : i32, i32, i32
  }
  func.func @transform_3(%arg0: i32, %arg1: i32) -> (i32, i32, i32) {
    %c0_i32 = arith.constant 0 : i32
    %c0_i32_0 = arith.constant 0 : i32
    return %arg0, %arg1, %c0_i32 : i32, i32, i32
  }
  func.func @transform_4(%arg0: i32, %arg1: i32) -> (i32, i32, i32) {
    %c0_i32 = arith.constant 0 : i32
    %c0_i32_0 = arith.constant 0 : i32
    %c0_i32_1 = arith.constant 0 : i32
    return %arg0, %c0_i32, %c0_i32_0 : i32, i32, i32
  }
  func.func @transform_5(%arg0: i32, %arg1: i32) -> (i32, i32) {
    %c0_i32 = arith.constant 0 : i32
    %c0_i32_0 = arith.constant 0 : i32
    %c0_i32_1 = arith.constant 0 : i32
    return %c0_i32, %c0_i32_0 : i32, i32
  }
  func.func @transform_6(%arg0: i32, %arg1: i32) -> (i32, i32) {
    %c0_i32 = arith.constant 0 : i32
    %c0_i32_0 = arith.constant 0 : i32
    %c0_i32_1 = arith.constant 0 : i32
    return %c0_i32, %c0_i32_0 : i32, i32
  }
  func.func @transform_7(%arg0: i32, %arg1: i32) -> (i32, i32) {
    %c0_i32 = arith.constant 0 : i32
    %c0_i32_0 = arith.constant 0 : i32
    %c0_i32_1 = arith.constant 0 : i32
    return %c0_i32, %c0_i32_0 : i32, i32
  }
  func.func @transform_8(%arg0: i32, %arg1: i32) -> (i32, i32) {
    %c0_i32 = arith.constant 0 : i32
    %c0_i32_0 = arith.constant 0 : i32
    %c0_i32_1 = arith.constant 0 : i32
    return %c0_i32, %c0_i32_0 : i32, i32
  }
  func.func @transform_9(%arg0: i32, %arg1: i32) -> (i32, i32) {
    %c0_i32 = arith.constant 0 : i32
    %c0_i32_0 = arith.constant 0 : i32
    %c0_i32_1 = arith.constant 0 : i32
    return %c0_i32, %c0_i32_0 : i32, i32
  }
  func.func @transform_10(%arg0: i32, %arg1: i32) -> (i32, i32) {
    %c0_i32 = arith.constant 0 : i32
    %c0_i32_0 = arith.constant 0 : i32
    %c0_i32_1 = arith.constant 0 : i32
    return %c0_i32, %c0_i32_0 : i32, i32
  }
  func.func @transform_11(%arg0: i32, %arg1: i32) -> (i32, i32) {
    %c0_i32 = arith.constant 0 : i32
    %c0_i32_0 = arith.constant 0 : i32
    %c0_i32_1 = arith.constant 0 : i32
    return %c0_i32, %c0_i32_0 : i32, i32
  }
  func.func @transform_12(%arg0: i32, %arg1: i32) -> (i32, i32) {
    %c0_i32 = arith.constant 0 : i32
    %c0_i32_0 = arith.constant 0 : i32
    %c0_i32_1 = arith.constant 0 : i32
    return %c0_i32, %c0_i32_0 : i32, i32
  }
  func.func @transform_13(%arg0: i32, %arg1: i32) -> (i32, i32) {
    %c0_i32 = arith.constant 0 : i32
    %c0_i32_0 = arith.constant 0 : i32
    %c0_i32_1 = arith.constant 0 : i32
    return %c0_i32, %c0_i32_0 : i32, i32
  }
  func.func @transform_14(%arg0: i32, %arg1: i32) -> (i32, i32) {
    %c0_i32 = arith.constant 0 : i32
    %c0_i32_0 = arith.constant 0 : i32
    %c0_i32_1 = arith.constant 0 : i32
    return %c0_i32, %c0_i32_0 : i32, i32
  }
  func.func @transform_15(%arg0: i32, %arg1: i32) -> (i32, i32) {
    %c0_i32 = arith.constant 0 : i32
    %c0_i32_0 = arith.constant 0 : i32
    %c0_i32_1 = arith.constant 0 : i32
    return %c0_i32, %c0_i32_0 : i32, i32
  }
  func.func @transform_16(%arg0: i32, %arg1: i32) -> (i32, i32) {
    %c0_i32 = arith.constant 0 : i32
    %c0_i32_0 = arith.constant 0 : i32
    %c0_i32_1 = arith.constant 0 : i32
    return %c0_i32, %c0_i32_0 : i32, i32
  }
  func.func @transform_17(%arg0: i32, %arg1: i32) -> (i32, i32) {
    %c0_i32 = arith.constant 0 : i32
    %c0_i32_0 = arith.constant 0 : i32
    %c0_i32_1 = arith.constant 0 : i32
    return %c0_i32, %c0_i32_0 : i32, i32
  }
  func.func @transform_18(%arg0: i32, %arg1: i32) -> (i32, i32) {
    %c0_i32 = arith.constant 0 : i32
    %c0_i32_0 = arith.constant 0 : i32
    %c0_i32_1 = arith.constant 0 : i32
    return %c0_i32, %c0_i32_0 : i32, i32
  }
  func.func @transform_19(%arg0: i32, %arg1: i32) -> (i32, i32) {
    %c0_i32 = arith.constant 0 : i32
    %c0_i32_0 = arith.constant 0 : i32
    %c0_i32_1 = arith.constant 0 : i32
    return %c0_i32, %c0_i32_0 : i32, i32
  }
  func.func @transform_20(%arg0: i32, %arg1: i32) -> (i32, i32) {
    %c0_i32 = arith.constant 0 : i32
    %c0_i32_0 = arith.constant 0 : i32
    %c0_i32_1 = arith.constant 0 : i32
    return %c0_i32, %c0_i32_0 : i32, i32
  }
  func.func @transform_21(%arg0: i32, %arg1: i32) -> (i32, i32) {
    %c0_i32 = arith.constant 0 : i32
    %c0_i32_0 = arith.constant 0 : i32
    %c0_i32_1 = arith.constant 0 : i32
    return %c0_i32, %c0_i32_0 : i32, i32
  }
  func.func @transform_22(%arg0: i32, %arg1: i32) -> (i32, i32) {
    %c0_i32 = arith.constant 0 : i32
    %c0_i32_0 = arith.constant 0 : i32
    %c0_i32_1 = arith.constant 0 : i32
    return %c0_i32, %c0_i32_0 : i32, i32
  }
  func.func @transform_23(%arg0: i32, %arg1: i32) -> (i32, i32) {
    %c0_i32 = arith.constant 0 : i32
    %c0_i32_0 = arith.constant 0 : i32
    %c0_i32_1 = arith.constant 0 : i32
    return %c0_i32, %c0_i32_0 : i32, i32
  }
  func.func @transform_24(%arg0: i32, %arg1: i32) -> (i32, i32) {
    %c0_i32 = arith.constant 0 : i32
    %c0_i32_0 = arith.constant 0 : i32
    %c0_i32_1 = arith.constant 0 : i32
    return %c0_i32, %c0_i32_0 : i32, i32
  }
  func.func @transform_25(%arg0: i32, %arg1: i32) -> (i32, i32) {
    %c0_i32 = arith.constant 0 : i32
    %c0_i32_0 = arith.constant 0 : i32
    %c0_i32_1 = arith.constant 0 : i32
    return %c0_i32, %c0_i32_0 : i32, i32
  }
  func.func @transform_26(%arg0: i32, %arg1: i32) -> (i32, i32) {
    %c0_i32 = arith.constant 0 : i32
    %c0_i32_0 = arith.constant 0 : i32
    %c0_i32_1 = arith.constant 0 : i32
    return %c0_i32, %c0_i32_0 : i32, i32
  }
  func.func @transform_27(%arg0: i32, %arg1: i32) -> (i32, i32) {
    %c0_i32 = arith.constant 0 : i32
    %c0_i32_0 = arith.constant 0 : i32
    %c0_i32_1 = arith.constant 0 : i32
    return %c0_i32, %c0_i32_0 : i32, i32
  }
  func.func @transform_28(%arg0: i32, %arg1: i32) -> (i32, i32) {
    %c0_i32 = arith.constant 0 : i32
    %c0_i32_0 = arith.constant 0 : i32
    %c0_i32_1 = arith.constant 0 : i32
    return %c0_i32, %c0_i32_0 : i32, i32
  }
  func.func @transform_29(%arg0: i32, %arg1: i32) -> (i32, i32) {
    %c0_i32 = arith.constant 0 : i32
    %c0_i32_0 = arith.constant 0 : i32
    %c0_i32_1 = arith.constant 0 : i32
    return %c0_i32, %c0_i32_0 : i32, i32
  }
  func.func @transform_30(%arg0: i32, %arg1: i32) -> (i32, i32) {
    %c0_i32 = arith.constant 0 : i32
    %c0_i32_0 = arith.constant 0 : i32
    %c0_i32_1 = arith.constant 0 : i32
    return %c0_i32, %c0_i32_0 : i32, i32
  }
  func.func @transform_31(%arg0: i32, %arg1: i32) -> (i32, i32, i32) {
    %c0_i32 = arith.constant 0 : i32
    %c0_i32_0 = arith.constant 0 : i32
    return %arg0, %arg1, %c0_i32 : i32, i32, i32
  }
}

</mosaic_0001>

<bundles_post_ra>
// kernel: tpu_custom_call.1
= control target key start
LH: loop header
LB: loop body
LE: loop exit
PB: predicated region body
PF: predicated region fallthrough
CT: control target
= control target key end

     0   :  { %s6045_s6 = smov 1   ;;  %s6046_s10 = smov 2   ;;  %s7163_s0 = inlined_call_operand.smem [shape: u32[32], index: -1, kind: input, shape index: {}] }
   0x1   :  { %s6120_s5 = sld [smem:[%s7163_s0]]   ;;  %s6047_s14 = smov 3  }
   0x2   :  { %s6125_s9 = sld [smem:[%s7163_s0 + %s6045_s6]]   ;;  %s6048_s18 = smov 4  }
   0x3   :  { %s6130_s13 = sld [smem:[%s7163_s0 + %s6046_s10]]   ;;  %s6049_s22 = smov 5  }
   0x4   :  { %s6135_s17 = sld [smem:[%s7163_s0 + %s6047_s14]]   ;;  %s6050_s26 = smov 6  }
   0x5   :  { %s6140_s21 = sld [smem:[%s7163_s0 + %s6048_s18]]   ;;  %s6051_s30 = smov 7  }
   0x6   :  { %s6145_s25 = sld [smem:[%s7163_s0 + %s6049_s22]]   ;;  %s6052_s4 = smov 8  }
   0x7   :  { %7209 = sst [smem:[#allocation53_spill]] %s6120_s5  ;;  %s6053_s10 = smov 9  }
   0x8   :  { %7210 = sst [smem:[#allocation54_spill]] %s6125_s9  ;;  %s6054_s15 = smov 10  }
   0x9   :  { %7211 = sst [smem:[#allocation55_spill]] %s6130_s13  ;;  %s6055_s20 = smov 11  }
   0xa   :  { %7212 = sst [smem:[#allocation56_spill]] %s6135_s17  ;;  %s6057_s1 = smov 13  }
   0xb   :  { %7213 = sst [smem:[#allocation57_spill]] %s6140_s21  ;;  %s6058_s7 = smov 14  }
   0xc   :  { %7214 = sst [smem:[#allocation58_spill]] %s6145_s25  ;;  %s6060_s22 = smov 16  }
   0xd   :  { %s6150_s29 = sld [smem:[%s7163_s0 + %s6050_s26]]   ;;  %s6056_s26 = smov 12  }
   0xe   :  { %s6155_s3 = sld [smem:[%s7163_s0 + %s6051_s30]]   ;;  %s6061_s28 = smov 17  }
   0xf   :  { %s6160_s8 = sld [smem:[%s7163_s0 + %s6052_s4]]  }
  0x10   :  { %s6165_s14 = sld [smem:[%s7163_s0 + %s6053_s10]]  }
  0x11   :  { %s6170_s19 = sld [smem:[%s7163_s0 + %s6054_s15]]   ;;  %s6059_s15 = smov 15  }
  0x12   :  { %s6175_s24 = sld [smem:[%s7163_s0 + %s6055_s20]]  }
  0x13   :  { %7215 = sst [smem:[#allocation59_spill]] %s6150_s29 }
  0x14   :  { %7216 = sst [smem:[#allocation60_spill]] %s6155_s3 }
  0x15   :  { %7217 = sst [smem:[#allocation61_spill]] %s6160_s8 }
  0x16   :  { %7218 = sst [smem:[#allocation62_spill]] %s6165_s14 }
  0x17   :  { %7219 = sst [smem:[#allocation63_spill]] %s6170_s19 }
  0x18   :  { %7220 = sst [smem:[#allocation64_spill]] %s6175_s24 }
  0x19   :  { %s6180_s30 = sld [smem:[%s7163_s0 + %s6056_s26]]  }
  0x1a   :  { %s6185_s6 = sld [smem:[%s7163_s0 + %s6057_s1]]  }
  0x1b   :  { %s6190_s12 = sld [smem:[%s7163_s0 + %s6058_s7]]   ;;  %s6062_s7 = smov 18  }
  0x1c   :  { %s6195_s20 = sld [smem:[%s7163_s0 + %s6059_s15]]   ;;  %s6063_s15 = smov 19  }
  0x1d   :  { %s6200_s27 = sld [smem:[%s7163_s0 + %s6060_s22]]   ;;  %s6064_s22 = smov 20  }
  0x1e   :  { %s6205_s4 = sld [smem:[%s7163_s0 + %s6061_s28]]   ;;  %s6065_s28 = smov 21  }
  0x1f   :  { %7221 = sst [smem:[#allocation65_spill]] %s6180_s30 }
  0x20   :  { %7222 = sst [smem:[#allocation66_spill]] %s6185_s6 }
  0x21   :  { %7223 = sst [smem:[#allocation67_spill]] %s6190_s12 }
  0x22   :  { %7224 = sst [smem:[#allocation68_spill]] %s6195_s20 }
  0x23   :  { %7225 = sst [smem:[#allocation69_spill]] %s6200_s27 }
  0x24   :  { %7226 = sst [smem:[#allocation70_spill]] %s6205_s4 }
  0x25   :  { %s6210_s14 = sld [smem:[%s7163_s0 + %s6062_s7]]   ;;  %s6066_s7 = smov 22  }
  0x26   :  { %s6215_s5 = sld [smem:[%s7163_s0 + %s6063_s15]]   ;;  %s6067_s15 = smov 23  }
  0x27   :  { %s6220_s13 = sld [smem:[%s7163_s0 + %s6064_s22]]   ;;  %s6068_s22 = smov 24  }
  0x28   :  { %s6225_s9 = sld [smem:[%s7163_s0 + %s6065_s28]]   ;;  %s6069_s28 = smov 25  }
  0x29   :  { %s6235_s21 = sld [smem:[%s7163_s0 + %s6067_s15]]   ;;  %s6071_s15 = smov 27  }
  0x2a   :  { %s6245_s17 = sld [smem:[%s7163_s0 + %s6069_s28]]   ;;  %s6073_s28 = smov 29  }
  0x2b   :  { %7227 = sst [smem:[#allocation71_spill]] %s6210_s14 }
  0x2c   :  { %7228 = sst [smem:[#allocation72_spill]] %s6215_s5 }
  0x2d   :  { %7229 = sst [smem:[#allocation73_spill]] %s6220_s13 }
  0x2e   :  { %7230 = sst [smem:[#allocation74_spill]] %s6225_s9 }
  0x2f   :  { %s6230_s14 = sld [smem:[%s7163_s0 + %s6066_s7]]   ;;  %s6070_s7 = smov 26  }
  0x30   :  { %7232 = sst [smem:[#allocation76_spill]] %s6235_s21 }
  0x31   :  { %s6240_s13 = sld [smem:[%s7163_s0 + %s6068_s22]]   ;;  %s6072_s22 = smov 28  }
  0x32   :  { %7234 = sst [smem:[#allocation78_spill]] %s6245_s17 }
  0x33   :  { %s6255_s5 = sld [smem:[%s7163_s0 + %s6071_s15]]   ;;  %s6075_s15 = smov 31  }
  0x34   :  { %s6265_s27 = sld [smem:[%s7163_s0 + %s6073_s28]]  }
  0x35   :  { %7231 = sst [smem:[#allocation75_spill]] %s6230_s14 }
  0x36   :  { %s6250_s14 = sld [smem:[%s7163_s0 + %s6070_s7]]   ;;  %s6074_s7 = smov 30  }
  0x37   :  { %7233 = sst [smem:[#allocation77_spill]] %s6240_s13 }
  0x38   :  { %s6260_s13 = sld [smem:[%s7163_s0 + %s6072_s22]]  }
  0x39   :  { %7236 = sst [smem:[#allocation80_spill]] %s6255_s5 }
  0x3a   :  { %7238 = sst [smem:[#allocation82_spill]] %s6265_s27 }
  0x3b   :  { %s6275_s5 = sld [smem:[%s7163_s0 + %s6075_s15]]  }
  0x3c   :  { %7235 = sst [smem:[#allocation79_spill]] %s6250_s14 }
  0x3d   :  { %s6270_s14 = sld [smem:[%s7163_s0 + %s6074_s7]]  }
  0x3e   :  { %7237 = sst [smem:[#allocation81_spill]] %s6260_s13 }
  0x41   :  { %7240 = sst [smem:[#allocation84_spill]] %s6275_s5 }
  0x43   :  { %7239 = sst [smem:[#allocation83_spill]] %s6270_s14 }
  0x44   :  { %68 = vsyncpa [#allocation7], 0 }
  0x45   :  { %70 = vsyncpa [#allocation7 + $0x1], 0 }
  0x46   :  { %71 = vsyncpa [#allocation10], 0 }
  0x47   :  { %73 = vsyncpa [#allocation10 + $0x1], 0 }
  0x48   :  { %74 = vsyncpa [#allocation13], 0 }
  0x49   :  { %75 = vsyncpa [#allocation16], 0 }
  0x4a   :  { %76 = vsyncpa [#allocation19], 0 }
  0x4b   :  { %77 = vsyncpa [#allocation22], 0 }
  0x4c   :  { %78 = vsyncpa [#allocation25], 0 }
  0x4d   :  { %79 = vsyncpa [#allocation28], 0 }
  0x4e   :  { %80 = vsyncpa [#allocation31], 0 }
  0x4f   :  { %81 = vsyncpa [#allocation34], 0 }
  0x50   :  { %82 = vsyncpa [#allocation37], 0 }
  0x51   :  { %83 = vsyncpa [#allocation8], 0 }
  0x52   :  { %85 = vsyncpa [#allocation8 + $0x1], 0  ;;  %s6277_s22 = smov 0   ;;  %s6279_s23 = smov 0  }
  0x53   :  { %s6281_s0 = smov 0   ;;  %s6283_s26 = smov 0  }
  0x54   :  { %s6285_s28 = smov 0   ;;  %s6287_s1 = smov 0  }
  0x55   :  { %s6289_s2 = smov 0   ;;  %s6291_s7 = smov 0  }
  0x56   :  { %s6293_s10 = smov 0   ;;  %s6295_s11 = smov 0  }
  0x57   :  { %s6297_s15 = smov 0  }
  0x58 LB: > { %s7241_s30 = sld [smem:[#allocation65_spill]]  ;;  %s7242_s24 = sld [smem:[#allocation64_spill]]  ;;  %s6011_s0 = sphi %s6281_s0, %s7336_s0   ;;  %s6007_s23 = sphi %s6279_s23, %s7335_s23   ;;  %s6003_s22 = sphi %s6277_s22, %s7333_s22   ;;  %s6043_s15 = sphi %s6297_s15, %s91_s15   ;;  %s6039_s11 = sphi %s6295_s11, %s7343_s11   ;;  %s6035_s10 = sphi %s6293_s10, %s7342_s10   ;;  %s6031_s7 = sphi %s6291_s7, %s7341_s7   ;;  %s6027_s2 = sphi %s6289_s2, %s7340_s2   ;;  %s6023_s1 = sphi %s6287_s1, %s7339_s1   ;;  %s6019_s28 = sphi %s6285_s28, %s7338_s28   ;;  %s6015_s26 = sphi %s6283_s26, %s7337_s26  }
  0x59   : > { %s7243_s21 = sld [smem:[#allocation76_spill]]  ;;  %s7245_s19 = sld [smem:[#allocation63_spill]] }
  0x5a   : > { %s7244_s20 = sld [smem:[#allocation68_spill]]  ;;  %s7246_s17 = sld [smem:[#allocation78_spill]] }
  0x5b   : > { %s7247_s12 = sld [smem:[#allocation67_spill]]  ;;  %s7248_s9 = sld [smem:[#allocation74_spill]] }
  0x5c   : > { %s7249_s6 = sld [smem:[#allocation66_spill]]  ;;  %s7250_s4 = sld [smem:[#allocation70_spill]] }
  0x5d   : > { %s7251_s3 = sld [smem:[#allocation60_spill]]  ;;  %s7252_s8 = sld [smem:[#allocation61_spill]] }
  0x5e   : > { %s7253_s29 = sld [smem:[#allocation59_spill]]  ;;  %s7254_s25 = sld [smem:[#allocation58_spill]] }
  0x5f   : > { %7255 = sst [smem:[#allocation85_spill]] %s6003_s22  ;;  %s6333_s16 = sadd.s32 4294967295, %s6043_s15  }
  0x60   : > { %7256 = sst [smem:[#allocation86_spill]] %s6007_s23  ;;  %p4302_p0 = scmp.ge.s32.totalorder %s6043_s15, 1 }
  0x61   : > { %7257 = sst [smem:[#allocation87_spill]] %s6027_s2  ;;  %p7178_p1 = scmp.eq.s32.totalorder %s6333_s16, 0 }
  0x62   : > { %7258 = sst [smem:[#allocation88_spill]] %s6031_s7  ;;  %p816_p2 = scmp.lt.s32.totalorder %s6043_s15, 5 }
  0x63   : > { %s6076_s5 = smov [#allocation11]   ;;  %s6077_s13 = smov [#allocation12]  }
  0x64   : > { %p6338_p3 = pnand %p4302_p0, %p816_p2  ;;  %s829_s14 = sshll.u32 %s6076_s5, 4  ;;  %s830_s14 = int_to_ptr.vmem [resolvable:$true] %s829_s14 }
  0x65   : > { %s840_s27 = sshll.u32 %s6077_s13, 4  ;;  %s6078_s7 = smov [#allocation15]   ;;  %s6350_s27 = int_to_ptr.vmem [resolvable:$true] %s840_s27 }
  0x66   : > { %s7259_s18 = scalar_select %p6338_p3, 1, 0 }
  0x67   : > { %p4978_p4 = pneg %p6338_p3  ;;  %s864_s22 = sshll.u32 %s6078_s7, 4  ;;  %s6352_s22 = int_to_ptr.vmem [resolvable:$true] %s864_s22 }
  0x68   : > { %s5285_s23 = scalar_lea.hbm %s7254_s25, 16 }
  0x69   : > { %p6346_p5 = pnand %p4978_p4, %p7178_p1  ;;  %p5286_p6 = scmp.ne.s32.totalorder %s7254_s25, %s5285_s23 }
  0x6a   : > { %p5292_p10 = scmp.lt.u32.totalorder %s5285_s23, %s7254_s25 }
  0x6b   : > { %p6358_p7 = pneg %p6346_p5 }
  0x6d   : > { %p5288_p8 = pnand %p6358_p7, %p5286_p6 }
  0x6f   : > { %p5289_p9 = pneg %p5288_p8 }
  0x71   : > { %p5294_p11 = pnand %p5292_p10, %p5289_p9 }
  0x73   : > { %5297 = shalt.err (!%p5294_p11)
}
  0x74   : > { %s5298_s13 = scalar_lea.vmem %s830_s14, 16  ;;  %s5305_s7 = scalar_lea.vmem %s830_s14, 32 }
  0x75   : > { %p5299_p12 = scmp.ne.s32.totalorder %s830_s14, %s5298_s13  ;;  %p5306_p2 = scmp.lt.s32.totalorder %s830_s14, %s830_s14 }
  0x76   : > { %p5307_p4 = scmp.lt.s32.totalorder %s5305_s7, %s5298_s13 }
  0x77   : > { %p5301_p13 = pnand %p5299_p12, %p6358_p7 }
  0x78   : > { %p5308_p1 = por %p5307_p4, %p5306_p2 }
  0x79   : > { %p5302_p0 = pneg %p5301_p13 }
  0x7b   : > { %p5309_p3 = pnand %p5308_p1, %p5302_p0 }
  0x7d   : > { %5312 = shalt.err (!%p5309_p3)
}
  0x7e   : > { %4981 = dma.hbm_to_vmem [thread:$0]  (!%p6346_p5), %s7254_s25, 16, %s830_s14, [#allocation10]  }
  0x7f   : > { %s5313_s23 = scalar_lea.hbm %s7253_s29, 16 }
  0x80   : > { %p5314_p6 = scmp.ne.s32.totalorder %s7253_s29, %s5313_s23  ;;  %p5320_p10 = scmp.lt.u32.totalorder %s5313_s23, %s7253_s29 }
  0x82   : > { %p5316_p8 = pnand %p5314_p6, %p6358_p7 }
  0x84   : > { %p5317_p9 = pneg %p5316_p8 }
  0x86   : > { %p5322_p11 = pnand %p5320_p10, %p5317_p9 }
  0x88   : > { %5325 = shalt.err (!%p5322_p11)
}
  0x89   : > { %s5326_s13 = scalar_lea.vmem %s6350_s27, 16  ;;  %s5333_s7 = scalar_lea.vmem %s6350_s27, 32 }
  0x8a   : > { %p5327_p1 = scmp.ne.s32.totalorder %s6350_s27, %s5326_s13  ;;  %p5334_p13 = scmp.lt.s32.totalorder %s6350_s27, %s6350_s27 }
  0x8b   : > { %p5335_p0 = scmp.lt.s32.totalorder %s5333_s7, %s5326_s13 }
  0x8c   : > { %p5329_p3 = pnand %p5327_p1, %p6358_p7 }
  0x8d   : > { %p5336_p2 = por %p5335_p0, %p5334_p13 }
  0x8e   : > { %p5330_p12 = pneg %p5329_p3 }
  0x90   : > { %p5337_p4 = pnand %p5336_p2, %p5330_p12 }
  0x92   : > { %5340 = shalt.err (!%p5337_p4)
}
  0x93   : > { %4984 = dma.hbm_to_vmem [thread:$0]  (!%p6346_p5), %s7253_s29, 16, %s6350_s27, [#allocation13]  }
  0x94   : > { %s5341_s14 = scalar_lea.hbm %s7252_s8, 16 }
  0x95   : > { %p5342_p6 = scmp.ne.s32.totalorder %s7252_s8, %s5341_s14  ;;  %p5348_p10 = scmp.lt.u32.totalorder %s5341_s14, %s7252_s8 }
  0x97   : > { %p5344_p8 = pnand %p5342_p6, %p6358_p7 }
  0x99   : > { %p5345_p9 = pneg %p5344_p8 }
  0x9b   : > { %p5350_p11 = pnand %p5348_p10, %p5345_p9 }
  0x9d   : > { %5353 = shalt.err (!%p5350_p11)
}
  0x9e   : > { %s5354_s23 = scalar_lea.vmem %s6352_s22, 16  ;;  %s5361_s13 = scalar_lea.vmem %s6352_s22, 32 }
  0x9f   : > { %p5355_p1 = scmp.ne.s32.totalorder %s6352_s22, %s5354_s23  ;;  %p5362_p13 = scmp.lt.s32.totalorder %s6352_s22, %s6352_s22 }
  0xa0   : > { %p5363_p0 = scmp.lt.s32.totalorder %s5361_s13, %s5354_s23 }
  0xa1   : > { %p5357_p3 = pnand %p5355_p1, %p6358_p7 }
  0xa2   : > { %p5364_p2 = por %p5363_p0, %p5362_p13 }
  0xa3   : > { %p5358_p12 = pneg %p5357_p3 }
  0xa5   : > { %p5365_p4 = pnand %p5364_p2, %p5358_p12 }
  0xa7   : > { %5368 = shalt.err (!%p5365_p4)
}
  0xa8   : > { %4990 = dma.hbm_to_vmem [thread:$0]  (!%p6346_p5), %s7252_s8, 16, %s6352_s22, [#allocation16]  }
  0xa9   : > { %s6079_s27 = smov [#allocation18]   ;;  %s6080_s14 = smov [#allocation21]  }
  0xaa   : > { %s888_s7 = sshll.u32 %s6079_s27, 4  ;;  %s912_s25 = sshll.u32 %s6080_s14, 4  ;;  %s889_s7 = int_to_ptr.vmem [resolvable:$true] %s888_s7  ;;  %s913_s25 = int_to_ptr.vmem [resolvable:$true] %s912_s25 }
  0xab   : > { %s5369_s29 = scalar_lea.hbm %s7242_s24, 512 }
  0xac   : > { %p5370_p6 = scmp.ne.s32.totalorder %s7242_s24, %s5369_s29  ;;  %p5376_p10 = scmp.lt.u32.totalorder %s5369_s29, %s7242_s24 }
  0xae   : > { %p5372_p8 = pnand %p5370_p6, %p6358_p7 }
  0xb0   : > { %p5373_p9 = pneg %p5372_p8 }
  0xb2   : > { %p5378_p11 = pnand %p5376_p10, %p5373_p9 }
  0xb4   : > { %5381 = shalt.err (!%p5378_p11)
}
  0xb5   : > { %s5382_s23 = scalar_lea.vmem %s889_s7, 512  ;;  %p5390_p13 = scmp.lt.s32.totalorder %s889_s7, %s889_s7 }
  0xb6   : > { %p5383_p1 = scmp.ne.s32.totalorder %s889_s7, %s5382_s23  ;;  %p5391_p0 = scmp.lt.s32.totalorder %s5382_s23, %s5382_s23 }
  0xb8   : > { %p5385_p3 = pnand %p5383_p1, %p6358_p7  ;;  %p5392_p2 = por %p5391_p0, %p5390_p13 }
  0xba   : > { %p5386_p12 = pneg %p5385_p3 }
  0xbc   : > { %p5393_p4 = pnand %p5392_p2, %p5386_p12 }
  0xbe   : > { %5396 = shalt.err (!%p5393_p4)
}
  0xbf   : > { %s7183_s22 = smov 128   ;;  %s7184_s29 = smov 8  }
  0xc0   : > { %4996 = dma.hbm_to_vmem [thread:$0]  (!%p6346_p5), %s7242_s24, 512, %s889_s7, [#allocation19], %s7183_s22, %s7183_s22, %s7184_s29  }
  0xc1   : > { %s5397_s13 = scalar_lea.hbm %s7249_s6, 512 }
  0xc2   : > { %p5398_p6 = scmp.ne.s32.totalorder %s7249_s6, %s5397_s13  ;;  %p5404_p10 = scmp.lt.u32.totalorder %s5397_s13, %s7249_s6 }
  0xc4   : > { %p5400_p8 = pnand %p5398_p6, %p6358_p7 }
  0xc6   : > { %p5401_p9 = pneg %p5400_p8 }
  0xc8   : > { %p5406_p11 = pnand %p5404_p10, %p5401_p9 }
  0xca   : > { %5409 = shalt.err (!%p5406_p11)
}
  0xcb   : > { %s5410_s27 = scalar_lea.vmem %s913_s25, 512  ;;  %p5418_p13 = scmp.lt.s32.totalorder %s913_s25, %s913_s25 }
  0xcc   : > { %p5411_p1 = scmp.ne.s32.totalorder %s913_s25, %s5410_s27  ;;  %p5419_p0 = scmp.lt.s32.totalorder %s5410_s27, %s5410_s27 }
  0xce   : > { %p5413_p3 = pnand %p5411_p1, %p6358_p7  ;;  %p5420_p2 = por %p5419_p0, %p5418_p13 }
  0xd0   : > { %p5414_p12 = pneg %p5413_p3 }
  0xd2   : > { %p5421_p4 = pnand %p5420_p2, %p5414_p12 }
  0xd4   : > { %5424 = shalt.err (!%p5421_p4)
}
  0xd5   : > { %5002 = dma.hbm_to_vmem [thread:$0]  (!%p6346_p5), %s7249_s6, 512, %s913_s25, [#allocation22], %s7183_s22, %s7183_s22, %s7184_s29  }
  0xd6   : > { %s6083_s7 = smov [#allocation24]   ;;  %s6084_s23 = smov [#allocation27]  }
  0xd7   : > { %s937_s14 = sshll.u32 %s6083_s7, 4  ;;  %s958_s13 = sshll.u32 %s6084_s23, 4  ;;  %s938_s14 = int_to_ptr.vmem [resolvable:$true] %s937_s14  ;;  %s959_s13 = int_to_ptr.vmem [resolvable:$true] %s958_s13 }
  0xd8   : > { %s5425_s27 = scalar_lea.hbm %s7244_s20, 16 }
  0xd9   : > { %p5426_p6 = scmp.ne.s32.totalorder %s7244_s20, %s5425_s27  ;;  %p5432_p10 = scmp.lt.u32.totalorder %s5425_s27, %s7244_s20 }
  0xdb   : > { %p5428_p8 = pnand %p5426_p6, %p6358_p7 }
  0xdd   : > { %p5429_p9 = pneg %p5428_p8 }
  0xdf   : > { %p5434_p11 = pnand %p5432_p10, %p5429_p9 }
  0xe1   : > { %5437 = shalt.err (!%p5434_p11)
}
  0xe2   : > { %s5438_s8 = scalar_lea.vmem %s938_s14, 16  ;;  %s5445_s25 = scalar_lea.vmem %s938_s14, 32 }
  0xe3   : > { %p5439_p1 = scmp.ne.s32.totalorder %s938_s14, %s5438_s8  ;;  %p5446_p13 = scmp.lt.s32.totalorder %s938_s14, %s938_s14 }
  0xe4   : > { %p5447_p0 = scmp.lt.s32.totalorder %s5445_s25, %s5438_s8 }
  0xe5   : > { %p5441_p3 = pnand %p5439_p1, %p6358_p7 }
  0xe6   : > { %p5448_p2 = por %p5447_p0, %p5446_p13 }
  0xe7   : > { %p5442_p12 = pneg %p5441_p3 }
  0xe9   : > { %p5449_p4 = pnand %p5448_p2, %p5442_p12 }
  0xeb   : > { %5452 = shalt.err (!%p5449_p4)
}
  0xec   : > { %5008 = dma.hbm_to_vmem [thread:$0]  (!%p6346_p5), %s7244_s20, 16, %s938_s14, [#allocation25]  }
  0xed   : > { %s5453_s7 = scalar_lea.hbm %s7250_s4, 512 }
  0xee   : > { %p5454_p6 = scmp.ne.s32.totalorder %s7250_s4, %s5453_s7  ;;  %p5460_p10 = scmp.lt.u32.totalorder %s5453_s7, %s7250_s4 }
  0xf0   : > { %p5456_p8 = pnand %p5454_p6, %p6358_p7 }
  0xf2   : > { %p5457_p9 = pneg %p5456_p8 }
  0xf4   : > { %p5462_p11 = pnand %p5460_p10, %p5457_p9 }
  0xf6   : > { %5465 = shalt.err (!%p5462_p11)
}
  0xf7   : > { %s5466_s8 = scalar_lea.vmem %s959_s13, 512  ;;  %p5474_p13 = scmp.lt.s32.totalorder %s959_s13, %s959_s13 }
  0xf8   : > { %p5467_p1 = scmp.ne.s32.totalorder %s959_s13, %s5466_s8  ;;  %p5475_p0 = scmp.lt.s32.totalorder %s5466_s8, %s5466_s8 }
  0xfa   : > { %p5469_p3 = pnand %p5467_p1, %p6358_p7  ;;  %p5476_p2 = por %p5475_p0, %p5474_p13 }
  0xfc   : > { %p5470_p12 = pneg %p5469_p3 }
  0xfe   : > { %p5477_p4 = pnand %p5476_p2, %p5470_p12 }
 0x100   : > { %5480 = shalt.err (!%p5477_p4)
}
 0x101   : > { %5014 = dma.hbm_to_vmem [thread:$0]  (!%p6346_p5), %s7250_s4, 512, %s959_s13, [#allocation28], %s7183_s22, %s7183_s22, %s7184_s29  }
 0x102   : > { %s6085_s14 = smov [#allocation30]   ;;  %s6086_s27 = smov [#allocation33]  }
 0x103   : > { %s990_s23 = sshll.u32 %s6085_s14, 4  ;;  %s1014_s25 = sshll.u32 %s6086_s27, 4  ;;  %s991_s23 = int_to_ptr.vmem [resolvable:$true] %s990_s23  ;;  %s1015_s25 = int_to_ptr.vmem [resolvable:$true] %s1014_s25 }
 0x104   : > { %s5481_s7 = scalar_lea.hbm %s7248_s9, 512 }
 0x105   : > { %p5482_p6 = scmp.ne.s32.totalorder %s7248_s9, %s5481_s7  ;;  %p5488_p10 = scmp.lt.u32.totalorder %s5481_s7, %s7248_s9 }
 0x107   : > { %p5484_p8 = pnand %p5482_p6, %p6358_p7 }
 0x109   : > { %p5485_p9 = pneg %p5484_p8 }
 0x10b   : > { %p5490_p11 = pnand %p5488_p10, %p5485_p9 }
 0x10d   : > { %5493 = shalt.err (!%p5490_p11)
}
 0x10e   : > { %s5494_s8 = scalar_lea.vmem %s991_s23, 512  ;;  %p5502_p13 = scmp.lt.s32.totalorder %s991_s23, %s991_s23 }
 0x10f   : > { %p5495_p1 = scmp.ne.s32.totalorder %s991_s23, %s5494_s8  ;;  %p5503_p0 = scmp.lt.s32.totalorder %s5494_s8, %s5494_s8 }
 0x111   : > { %p5497_p3 = pnand %p5495_p1, %p6358_p7  ;;  %p5504_p2 = por %p5503_p0, %p5502_p13 }
 0x113   : > { %p5498_p12 = pneg %p5497_p3 }
 0x115   : > { %p5505_p4 = pnand %p5504_p2, %p5498_p12 }
 0x117   : > { %5508 = shalt.err (!%p5505_p4)
}
 0x118   : > { %5020 = dma.hbm_to_vmem [thread:$0]  (!%p6346_p5), %s7248_s9, 512, %s991_s23, [#allocation31], %s7183_s22, %s7183_s22, %s7184_s29  }
 0x119   : > { %s5509_s13 = scalar_lea.hbm %s7243_s21, 512 }
 0x11a   : > { %p5510_p6 = scmp.ne.s32.totalorder %s7243_s21, %s5509_s13  ;;  %p5516_p10 = scmp.lt.u32.totalorder %s5509_s13, %s7243_s21 }
 0x11c   : > { %p5512_p8 = pnand %p5510_p6, %p6358_p7 }
 0x11e   : > { %p5513_p9 = pneg %p5512_p8 }
 0x120   : > { %p5518_p11 = pnand %p5516_p10, %p5513_p9 }
 0x122   : > { %5521 = shalt.err (!%p5518_p11)
}
 0x123   : > { %s5522_s14 = scalar_lea.vmem %s1015_s25, 512  ;;  %p5530_p13 = scmp.lt.s32.totalorder %s1015_s25, %s1015_s25 }
 0x124   : > { %p5523_p1 = scmp.ne.s32.totalorder %s1015_s25, %s5522_s14  ;;  %p5531_p0 = scmp.lt.s32.totalorder %s5522_s14, %s5522_s14 }
 0x126   : > { %p5525_p3 = pnand %p5523_p1, %p6358_p7  ;;  %p5532_p2 = por %p5531_p0, %p5530_p13 }
 0x128   : > { %p5526_p12 = pneg %p5525_p3 }
 0x12a   : > { %p5533_p4 = pnand %p5532_p2, %p5526_p12 }
 0x12c   : > { %5536 = shalt.err (!%p5533_p4)
}
 0x12d   : > { %5026 = dma.hbm_to_vmem [thread:$0]  (!%p6346_p5), %s7243_s21, 512, %s1015_s25, [#allocation34], %s7183_s22, %s7183_s22, %s7184_s29  }
 0x12e   : > { %s6087_s23 = smov [#allocation36]   ;;  %s6088_s7 = smov [#allocation14]  }
 0x12f   : > { %s1039_s27 = sshll.u32 %s6087_s23, 4  ;;  %s850_s8 = sshll.u32 %s6088_s7, 4  ;;  %s1040_s27 = int_to_ptr.vmem [resolvable:$true] %s1039_s27  ;;  %s851_s8 = int_to_ptr.vmem [resolvable:$true] %s850_s8 }
 0x130   : > { %s5537_s13 = scalar_lea.hbm %s7246_s17, 16 }
 0x131   : > { %p5538_p6 = scmp.ne.s32.totalorder %s7246_s17, %s5537_s13  ;;  %p5544_p10 = scmp.lt.u32.totalorder %s5537_s13, %s7246_s17 }
 0x133   : > { %p5540_p8 = pnand %p5538_p6, %p6358_p7 }
 0x135   : > { %p5541_p9 = pneg %p5540_p8 }
 0x137   : > { %p5546_p11 = pnand %p5544_p10, %p5541_p9 }
 0x139   : > { %5549 = shalt.err (!%p5546_p11)
}
 0x13a   : > { %s5550_s14 = scalar_lea.vmem %s1040_s27, 16  ;;  %s5557_s25 = scalar_lea.vmem %s1040_s27, 32 }
 0x13b   : > { %p5551_p1 = scmp.ne.s32.totalorder %s1040_s27, %s5550_s14  ;;  %p5558_p13 = scmp.lt.s32.totalorder %s1040_s27, %s1040_s27 }
 0x13c   : > { %p5559_p0 = scmp.lt.s32.totalorder %s5557_s25, %s5550_s14 }
 0x13d   : > { %p5553_p3 = pnand %p5551_p1, %p6358_p7 }
 0x13e   : > { %p5560_p2 = por %p5559_p0, %p5558_p13 }
 0x13f   : > { %p5554_p12 = pneg %p5553_p3 }
 0x141   : > { %p5561_p4 = pnand %p5560_p2, %p5554_p12 }
 0x143   : > { %5564 = shalt.err (!%p5561_p4)
}
 0x144   : > { %5032 = dma.hbm_to_vmem [thread:$0]  (!%p6346_p5), %s7246_s17, 16, %s1040_s27, [#allocation37]  }
 0x145   : > { %s5565_s23 = scalar_lea.hbm %s7251_s3, 512 }
 0x146   : > { %p5566_p6 = scmp.ne.s32.totalorder %s7251_s3, %s5565_s23  ;;  %p5572_p10 = scmp.lt.u32.totalorder %s5565_s23, %s7251_s3 }
 0x148   : > { %p5568_p8 = pnand %p5566_p6, %p6358_p7 }
 0x14a   : > { %p5569_p9 = pneg %p5568_p8 }
 0x14c   : > { %p5574_p11 = pnand %p5572_p10, %p5569_p9 }
 0x14e   : > { %5577 = shalt.err (!%p5574_p11)
}
 0x14f   : > { %s5578_s7 = scalar_lea.vmem %s851_s8, 512  ;;  %p5586_p13 = scmp.lt.s32.totalorder %s851_s8, %s851_s8 }
 0x150   : > { %p5579_p1 = scmp.ne.s32.totalorder %s851_s8, %s5578_s7  ;;  %p5587_p0 = scmp.lt.s32.totalorder %s5578_s7, %s5578_s7 }
 0x152   : > { %p5581_p3 = pnand %p5579_p1, %p6358_p7  ;;  %p5588_p2 = por %p5587_p0, %p5586_p13 }
 0x154   : > { %p5582_p12 = pneg %p5581_p3 }
 0x156   : > { %p5589_p4 = pnand %p5588_p2, %p5582_p12 }
 0x158   : > { %5592 = shalt.err (!%p5589_p4)
}
 0x159   : > { %4987 = dma.hbm_to_vmem [thread:$0]  (!%p6346_p5), %s7251_s3, 512, %s851_s8, [#allocation13], %s7183_s22, %s7183_s22, %s7184_s29  }
 0x15a   : > { %s6089_s27 = smov [#allocation17]   ;;  %s6090_s14 = smov [#allocation20]  }
 0x15b   : > { %s878_s13 = sshll.u32 %s6089_s27, 4  ;;  %s902_s25 = sshll.u32 %s6090_s14, 4  ;;  %s879_s13 = int_to_ptr.vmem [resolvable:$true] %s878_s13  ;;  %s903_s25 = int_to_ptr.vmem [resolvable:$true] %s902_s25 }
 0x15c   : > { %s5593_s23 = scalar_lea.hbm %s7245_s19, 16 }
 0x15d   : > { %p5594_p6 = scmp.ne.s32.totalorder %s7245_s19, %s5593_s23  ;;  %p5600_p10 = scmp.lt.u32.totalorder %s5593_s23, %s7245_s19 }
 0x15f   : > { %p5596_p8 = pnand %p5594_p6, %p6358_p7 }
 0x161   : > { %p5597_p9 = pneg %p5596_p8 }
 0x163   : > { %p5602_p11 = pnand %p5600_p10, %p5597_p9 }
 0x165   : > { %5605 = shalt.err (!%p5602_p11)
}
 0x166   : > { %s5606_s7 = scalar_lea.vmem %s879_s13, 16  ;;  %s5613_s8 = scalar_lea.vmem %s879_s13, 32 }
 0x167   : > { %p5607_p1 = scmp.ne.s32.totalorder %s879_s13, %s5606_s7  ;;  %p5614_p13 = scmp.lt.s32.totalorder %s879_s13, %s879_s13 }
 0x168   : > { %p5615_p0 = scmp.lt.s32.totalorder %s5613_s8, %s5606_s7 }
 0x169   : > { %p5609_p3 = pnand %p5607_p1, %p6358_p7 }
 0x16a   : > { %p5616_p2 = por %p5615_p0, %p5614_p13 }
 0x16b   : > { %p5610_p12 = pneg %p5609_p3 }
 0x16d   : > { %p5617_p4 = pnand %p5616_p2, %p5610_p12 }
 0x16f   : > { %5620 = shalt.err (!%p5617_p4)
}
 0x170   : > { %4993 = dma.hbm_to_vmem [thread:$0]  (!%p6346_p5), %s7245_s19, 16, %s879_s13, [#allocation16]  }
 0x171   : > { %s5621_s27 = scalar_lea.hbm %s7241_s30, 16 }
 0x172   : > { %p5622_p6 = scmp.ne.s32.totalorder %s7241_s30, %s5621_s27  ;;  %p5628_p10 = scmp.lt.u32.totalorder %s5621_s27, %s7241_s30 }
 0x174   : > { %p5624_p8 = pnand %p5622_p6, %p6358_p7 }
 0x176   : > { %p5625_p9 = pneg %p5624_p8 }
 0x178   : > { %p5630_p11 = pnand %p5628_p10, %p5625_p9 }
 0x17a   : > { %5633 = shalt.err (!%p5630_p11)
}
 0x17b   : > { %s5634_s14 = scalar_lea.vmem %s903_s25, 16  ;;  %s5641_s23 = scalar_lea.vmem %s903_s25, 32 }
 0x17c   : > { %p5635_p1 = scmp.ne.s32.totalorder %s903_s25, %s5634_s14  ;;  %p5642_p13 = scmp.lt.s32.totalorder %s903_s25, %s903_s25 }
 0x17d   : > { %p5643_p0 = scmp.lt.s32.totalorder %s5641_s23, %s5634_s14 }
 0x17e   : > { %p5637_p3 = pnand %p5635_p1, %p6358_p7 }
 0x17f   : > { %p5644_p2 = por %p5643_p0, %p5642_p13 }
 0x180   : > { %p5638_p12 = pneg %p5637_p3 }
 0x182   : > { %p5645_p4 = pnand %p5644_p2, %p5638_p12 }
 0x184   : > { %5648 = shalt.err (!%p5645_p4)
}
 0x185   : > { %4999 = dma.hbm_to_vmem [thread:$0]  (!%p6346_p5), %s7241_s30, 16, %s903_s25, [#allocation19]  }
 0x186   : > { %s6091_s13 = smov [#allocation23]   ;;  %s6092_s8 = smov [#allocation26]  }
 0x187   : > { %s926_s7 = sshll.u32 %s6091_s13, 4  ;;  %s948_s27 = sshll.u32 %s6092_s8, 4  ;;  %s927_s7 = int_to_ptr.vmem [resolvable:$true] %s926_s7  ;;  %s949_s27 = int_to_ptr.vmem [resolvable:$true] %s948_s27 }
 0x188   : > { %s5649_s22 = scalar_lea.hbm %s7247_s12, 16 }
 0x189   : > { %p5650_p6 = scmp.ne.s32.totalorder %s7247_s12, %s5649_s22  ;;  %p5656_p10 = scmp.lt.u32.totalorder %s5649_s22, %s7247_s12 }
 0x18b   : > { %p5652_p8 = pnand %p5650_p6, %p6358_p7 }
 0x18d   : > { %p5653_p9 = pneg %p5652_p8 }
 0x18f   : > { %p5658_p11 = pnand %p5656_p10, %p5653_p9 }
 0x191   : > { %5661 = shalt.err (!%p5658_p11)
}
 0x192   : > { %s5662_s14 = scalar_lea.vmem %s927_s7, 16  ;;  %s5669_s25 = scalar_lea.vmem %s927_s7, 32 }
 0x193   : > { %p5663_p1 = scmp.ne.s32.totalorder %s927_s7, %s5662_s14  ;;  %p5670_p13 = scmp.lt.s32.totalorder %s927_s7, %s927_s7 }
 0x194   : > { %p5671_p0 = scmp.lt.s32.totalorder %s5669_s25, %s5662_s14 }
 0x195   : > { %p5665_p3 = pnand %p5663_p1, %p6358_p7 }
 0x196   : > { %p5672_p2 = por %p5671_p0, %p5670_p13 }
 0x197   : > { %p5666_p12 = pneg %p5665_p3 }
 0x199   : > { %p5673_p4 = pnand %p5672_p2, %p5666_p12 }
 0x19b   : > { %5676 = shalt.err (!%p5673_p4)
}
 0x19c   : > { %s7262_s23 = sld [smem:[#allocation69_spill]] }
 0x19d   : > { %5005 = dma.hbm_to_vmem [thread:$0]  (!%p6346_p5), %s7247_s12, 16, %s927_s7, [#allocation22]  }
 0x1a2   : > { %s7263_s13 = smov %s7262_s23  ;;  %s5677_s22 = scalar_lea.hbm %s7262_s23, 16 }
 0x1a3   : > { %p5678_p6 = scmp.ne.s32.totalorder %s7263_s13, %s5677_s22  ;;  %p5684_p10 = scmp.lt.u32.totalorder %s5677_s22, %s7263_s13 }
 0x1a5   : > { %p5680_p8 = pnand %p5678_p6, %p6358_p7 }
 0x1a7   : > { %p5681_p9 = pneg %p5680_p8 }
 0x1a9   : > { %p5686_p11 = pnand %p5684_p10, %p5681_p9 }
 0x1ab   : > { %5689 = shalt.err (!%p5686_p11)
}
 0x1ac   : > { %s5690_s8 = scalar_lea.vmem %s949_s27, 16  ;;  %s5697_s14 = scalar_lea.vmem %s949_s27, 32 }
 0x1ad   : > { %p5691_p1 = scmp.ne.s32.totalorder %s949_s27, %s5690_s8  ;;  %p5698_p13 = scmp.lt.s32.totalorder %s949_s27, %s949_s27 }
 0x1ae   : > { %p5699_p0 = scmp.lt.s32.totalorder %s5697_s14, %s5690_s8 }
 0x1af   : > { %p5693_p3 = pnand %p5691_p1, %p6358_p7 }
 0x1b0   : > { %p5700_p2 = por %p5699_p0, %p5698_p13 }
 0x1b1   : > { %p5694_p12 = pneg %p5693_p3 }
 0x1b3   : > { %p5701_p4 = pnand %p5700_p2, %p5694_p12 }
 0x1b5   : > { %5704 = shalt.err (!%p5701_p4)
}
 0x1b6   : > { %s7264_s7 = sld [smem:[#allocation72_spill]]  ;;  %s6093_s23 = smov [#allocation29]  }
 0x1b7   : > { %5011 = dma.hbm_to_vmem [thread:$0]  (!%p6346_p5), %s7263_s13, 16, %s949_s27, [#allocation25]  }
 0x1b8   : > { %s974_s22 = sshll.u32 %s6093_s23, 4  ;;  %s6094_s29 = smov [#allocation32]   ;;  %s975_s22 = int_to_ptr.vmem [resolvable:$true] %s974_s22 }
 0x1b9   : > { %s1004_s3 = sshll.u32 %s6094_s29, 4  ;;  %s1005_s3 = int_to_ptr.vmem [resolvable:$true] %s1004_s3 }
 0x1bc   : > { %s7265_s25 = smov %s7264_s7  ;;  %s5705_s4 = scalar_lea.hbm %s7264_s7, 512 }
 0x1bd   : > { %p5706_p6 = scmp.ne.s32.totalorder %s7265_s25, %s5705_s4  ;;  %p5712_p10 = scmp.lt.u32.totalorder %s5705_s4, %s7265_s25 }
 0x1bf   : > { %p5708_p8 = pnand %p5706_p6, %p6358_p7 }
 0x1c1   : > { %p5709_p9 = pneg %p5708_p8 }
 0x1c3   : > { %p5714_p11 = pnand %p5712_p10, %p5709_p9 }
 0x1c5   : > { %5717 = shalt.err (!%p5714_p11)
}
 0x1c6   : > { %s5718_s8 = scalar_lea.vmem %s975_s22, 512  ;;  %p5726_p13 = scmp.lt.s32.totalorder %s975_s22, %s975_s22 }
 0x1c7   : > { %p5719_p1 = scmp.ne.s32.totalorder %s975_s22, %s5718_s8  ;;  %p5727_p0 = scmp.lt.s32.totalorder %s5718_s8, %s5718_s8 }
 0x1c9   : > { %p5721_p3 = pnand %p5719_p1, %p6358_p7  ;;  %p5728_p2 = por %p5727_p0, %p5726_p13 }
 0x1cb   : > { %p5722_p12 = pneg %p5721_p3 }
 0x1cd   : > { %p5729_p4 = pnand %p5728_p2, %p5722_p12 }
 0x1cf   : > { %5732 = shalt.err (!%p5729_p4)
}
 0x1d0   : > { %s7266_s29 = smov 8   ;;  %s7267_s27 = smov 128  }
 0x1d1   : > { %s7268_s4 = sld [smem:[#allocation75_spill]] }
 0x1d2   : > { %5017 = dma.hbm_to_vmem [thread:$0]  (!%p6346_p5), %s7265_s25, 512, %s975_s22, [#allocation28], %s7267_s27, %s7267_s27, %s7266_s29  }
 0x1d7   : > { %s5733_s14 = scalar_lea.hbm %s7268_s4, 16 }
 0x1d8   : > { %p5734_p6 = scmp.ne.s32.totalorder %s7268_s4, %s5733_s14  ;;  %p5740_p10 = scmp.lt.u32.totalorder %s5733_s14, %s7268_s4 }
 0x1da   : > { %p5736_p8 = pnand %p5734_p6, %p6358_p7 }
 0x1dc   : > { %p5737_p9 = pneg %p5736_p8 }
 0x1de   : > { %p5742_p11 = pnand %p5740_p10, %p5737_p9 }
 0x1e0   : > { %5745 = shalt.err (!%p5742_p11)
}
 0x1e1   : > { %s5746_s7 = scalar_lea.vmem %s1005_s3, 16  ;;  %s5753_s23 = scalar_lea.vmem %s1005_s3, 32 }
 0x1e2   : > { %p5747_p1 = scmp.ne.s32.totalorder %s1005_s3, %s5746_s7  ;;  %p5754_p13 = scmp.lt.s32.totalorder %s1005_s3, %s1005_s3 }
 0x1e3   : > { %p5755_p0 = scmp.lt.s32.totalorder %s5753_s23, %s5746_s7 }
 0x1e4   : > { %p5749_p3 = pnand %p5747_p1, %p6358_p7 }
 0x1e5   : > { %p5756_p2 = por %p5755_p0, %p5754_p13 }
 0x1e6   : > { %p5750_p12 = pneg %p5749_p3 }
 0x1e8   : > { %p5757_p4 = pnand %p5756_p2, %p5750_p12 }
 0x1ea   : > { %5760 = shalt.err (!%p5757_p4)
}
 0x1eb   : > { %s7269_s22 = sld [smem:[#allocation77_spill]]  ;;  %s6095_s29 = smov [#allocation35]  }
 0x1ec   : > { %5023 = dma.hbm_to_vmem [thread:$0]  (!%p6346_p5), %s7268_s4, 16, %s1005_s3, [#allocation31]  }
 0x1ed   : > { %s1028_s27 = sshll.u32 %s6095_s29, 4  ;;  %s6096_s14 = smov [#allocation38]   ;;  %s1029_s27 = int_to_ptr.vmem [resolvable:$true] %s1028_s27 }
 0x1ee   : > { %s1050_s6 = sshll.u32 %s6096_s14, 4  ;;  %s1051_s6 = int_to_ptr.vmem [resolvable:$true] %s1050_s6 }
 0x1f1   : > { %s7270_s8 = smov %s7269_s22  ;;  %s5761_s9 = scalar_lea.hbm %s7269_s22, 16 }
 0x1f2   : > { %p5762_p6 = scmp.ne.s32.totalorder %s7270_s8, %s5761_s9  ;;  %p5768_p10 = scmp.lt.u32.totalorder %s5761_s9, %s7270_s8 }
 0x1f4   : > { %p5764_p8 = pnand %p5762_p6, %p6358_p7 }
 0x1f6   : > { %p5765_p9 = pneg %p5764_p8 }
 0x1f8   : > { %p5770_p11 = pnand %p5768_p10, %p5765_p9 }
 0x1fa   : > { %5773 = shalt.err (!%p5770_p11)
}
 0x1fb   : > { %s5774_s7 = scalar_lea.vmem %s1029_s27, 16  ;;  %s5781_s3 = scalar_lea.vmem %s1029_s27, 32 }
 0x1fc   : > { %p5775_p1 = scmp.ne.s32.totalorder %s1029_s27, %s5774_s7  ;;  %p5782_p13 = scmp.lt.s32.totalorder %s1029_s27, %s1029_s27 }
 0x1fd   : > { %p5783_p0 = scmp.lt.s32.totalorder %s5781_s3, %s5774_s7 }
 0x1fe   : > { %p5777_p3 = pnand %p5775_p1, %p6358_p7 }
 0x1ff   : > { %p5784_p2 = por %p5783_p0, %p5782_p13 }
 0x200   : > { %p5778_p12 = pneg %p5777_p3 }
 0x202   : > { %p5785_p4 = pnand %p5784_p2, %p5778_p12 }
 0x204   : > { %5788 = shalt.err (!%p5785_p4)
}
 0x205   : > { %s7271_s23 = sld [smem:[#allocation79_spill]] }
 0x206   : > { %5029 = dma.hbm_to_vmem [thread:$0]  (!%p6346_p5), %s7270_s8, 16, %s1029_s27, [#allocation34]  }
 0x20b   : > { %s7272_s29 = smov %s7271_s23  ;;  %s5789_s9 = scalar_lea.hbm %s7271_s23, 16 }
 0x20c   : > { %p5790_p6 = scmp.ne.s32.totalorder %s7272_s29, %s5789_s9  ;;  %p5796_p10 = scmp.lt.u32.totalorder %s5789_s9, %s7272_s29 }
 0x20e   : > { %p5792_p8 = pnand %p5790_p6, %p6358_p7 }
 0x210   : > { %p5793_p9 = pneg %p5792_p8 }
 0x212   : > { %p5798_p11 = pnand %p5796_p10, %p5793_p9 }
 0x214   : > { %5801 = shalt.err (!%p5798_p11)
}
 0x215   : > { %s5802_s22 = scalar_lea.vmem %s1051_s6, 16  ;;  %s5809_s14 = scalar_lea.vmem %s1051_s6, 32 }
 0x216   : > { %p5803_p1 = scmp.ne.s32.totalorder %s1051_s6, %s5802_s22  ;;  %p5810_p13 = scmp.lt.s32.totalorder %s1051_s6, %s1051_s6 }
 0x217   : > { %p5811_p0 = scmp.lt.s32.totalorder %s5809_s14, %s5802_s22 }
 0x218   : > { %p5805_p3 = pnand %p5803_p1, %p6358_p7 }
 0x219   : > { %p5812_p2 = por %p5811_p0, %p5810_p13 }
 0x21a   : > { %p5806_p12 = pneg %p5805_p3 }
 0x21c   : > { %p5813_p4 = pnand %p5812_p2, %p5806_p12 }
 0x21e   : > { %5816 = shalt.err (!%p5813_p4)
}
 0x21f   : > { %5035 = dma.hbm_to_vmem [thread:$0]  (!%p6346_p5), %s7272_s29, 16, %s1051_s6, [#allocation37]  }
 0x220   : > { %s4301_s5 = sadd.s32 4294967294, %s6043_s15   ;;  %s100_s27 = sadd.s32 1, %s6035_s10 }
 0x221   : > { %s103_s7 = sadd.s32 1, %s6039_s11  ;;  %p101_p7 = scmp.ge.s32.totalorder %s100_s27, 2 }
 0x222   : > { %s192_s2 = sadd.s32 1, %s6023_s1  ;;  %p199_p6 = scmp.ne.s32.totalorder %s6023_s1, %s6019_s28 }
 0x223   : > { %p7199_p8 = scmp.eq.s32.totalorder %s6043_s15, 0  ;;  %s7345_s27 = smov (%p101_p7, %s100_s27), 0 }
 0x224   : > { %s7347_s7 = smov (!%p101_p7, %s103_s7), %s6039_s11  ;;  %s188_s3 = ssub.s32 %s6035_s10, %s7345_s27 }
 0x225   : > { %p6597_p9 = por %p7199_p8, %p199_p6  ;;  %p105_p5 = scmp.ge.s32.totalorder %s7347_s7, 2 }
 0x226   : > { %p205_p10 = scmp.ne.s32.totalorder %s6019_s28, %s6015_s26  ;;  %p803_p11 = scmp.eq.s32.totalorder %s6333_s16, 3 }
 0x227   : > { %p809_p1 = scmp.eq.s32.totalorder %s4301_s5, 3  ;;  %s7349_s7 = smov (%p105_p5, %s7347_s7), 0 }
 0x228   : > { %p7274_p3 = scmp.eq.s32.totalorder %s6333_s16, 0  ;;  %s7276_s9 = sld [smem:[#allocation56_spill]] }
 0x229   : > { %p6612_p13 = por %p803_p11, %p199_p6  ;;  %s6618_s14 = ssub.s32 %s6039_s11, %s7349_s7 }
 0x22a   : > { %p6608_p12 = por %p7274_p3, %p205_p10  ;;  %p6620_p0 = por %p809_p1, %p205_p10 }
 0x22b   : > { %s7277_s22 = scalar_select %p6612_p13, 1, 0 }
 0x22c   : > { %s7275_s23 = scalar_select %p6608_p12, 1, 0 }
 0x22d   : > { %s7278_s5 = scalar_select %p6620_p0, 1, 0 }
 0x22e   : > { %s189_s4 = sor.u32 %s188_s3, %s6618_s14  ;;  %p7200_p7 = scmp.lt.s32.totalorder %s6043_s15, 4 }
 0x22f   : > { %p190_p4 = scmp.eq.s32.totalorder %s189_s4, 0  ;;  %s1100_s8 = sand.u32 1, %s6023_s1  }
 0x230   : > { %s4324_s12 = sshll.u32 %s6039_s11, 1  ;;  %s4323_s17 = sshll.u32 %s1100_s8, 3 }
 0x231   : > { %s6630_s13 = scalar_select %p190_p4, %s6023_s1, %s192_s2  }
 0x232   : > { %s1109_s19 = sadd.s32 %s6035_s10, %s4324_s12  ;;  %s1104_s21 = scalar_lea.vmem [#allocation6], %s4323_s17 }
 0x233   : > { %s4325_s20 = sshll.u32 %s1109_s19, 7  ;;  %s1113_s24 = sshll.u32 %s1104_s21, 4  ;;  %s6636_s24 = int_to_ptr.vmem [resolvable:$true] %s1113_s24 }
 0x234   : > { %s6634_s25 = scalar_lea.hbm %s7276_s9, %s4325_s20  ;;  %p6642_p6 = pnand %p7200_p7, %p6597_p9 }
 0x235   : > { %s1101_s12 = scalar_lea.sflag [#allocation7], %s1100_s8  ;;  %s5817_s19 = scalar_lea.hbm %s6634_s25, 128 }
 0x236   : > { %p5818_p5 = scmp.ne.s32.totalorder %s6634_s25, %s5817_s19  ;;  %p5819_p10 = pneg %p6642_p6 }
 0x237   : > { %s5822_s17 = scalar_lea.hbm %s7276_s9, 512  ;;  %p5823_p3 = scmp.lt.u32.totalorder %s6634_s25, %s7276_s9 }
 0x238   : > { %p5820_p11 = pnand %p5819_p10, %p5818_p5  ;;  %p5824_p4 = scmp.lt.u32.totalorder %s5822_s17, %s5817_s19 }
 0x239   : > { %p5826_p2 = scmp.lt.u32.totalorder %s5817_s19, %s6634_s25 }
 0x23a   : > { %p5821_p1 = pneg %p5820_p11  ;;  %p5825_p8 = por %p5824_p4, %p5823_p3 }
 0x23c   : > { %p5827_p9 = por %p5826_p2, %p5825_p8 }
 0x23e   : > { %p5828_p7 = pnand %p5827_p9, %p5821_p1 }
 0x240   : > { %5831 = shalt.err (!%p5828_p7)
}
 0x241   : > { %s5832_s21 = scalar_lea.vmem %s6636_s24, 128  ;;  %s6097_s20 = smov [#allocation6]  }
 0x242   : > { %p5833_p0 = scmp.ne.s32.totalorder %s6636_s24, %s5832_s21  ;;  %s5837_s8 = sshll.u32 %s6097_s20, 4  ;;  %s5838_s8 = int_to_ptr.vmem [resolvable:$false] %s5837_s8 }
 0x243   : > { %s5839_s2 = scalar_lea.vmem %s5838_s8, 256  ;;  %p5840_p5 = scmp.lt.s32.totalorder %s6636_s24, %s5838_s8 }
 0x244   : > { %p5835_p13 = pnand %p5833_p0, %p5819_p10  ;;  %p5841_p11 = scmp.lt.s32.totalorder %s5839_s2, %s5832_s21 }
 0x246   : > { %p5836_p12 = pneg %p5835_p13  ;;  %p5842_p3 = por %p5841_p11, %p5840_p5 }
 0x248   : > { %p5843_p8 = pnand %p5842_p3, %p5836_p12 }
 0x24a   : > { %5846 = shalt.err (!%p5843_p8)
}
 0x24b   : > { %s7280_s3 = sld [smem:[#allocation86_spill]]  ;;  %s7281_s6 = sld [smem:[#allocation85_spill]] }
 0x24c   : > { %s7282_s19 = sld [smem:[#allocation57_spill]]  ;;  %s218_s17 = sadd.s32 1, %s6011_s0 }
 0x24d   : > { %5039 = dma.hbm_to_vmem [thread:$0]  (!%p6642_p6), %s6634_s25, 128, %s6636_s24, %s1101_s12  }
 0x24e   : > { %p7283_p13 = scmp.eq.s32.totalorder %s6618_s14, 0  ;;  %p7284_p0 = scmp.eq.s32.totalorder %s6043_s15, 0 }
 0x24f   : > { %s1120_s21 = sand.u32 1, %s6043_s15   ;;  %s1122_s20 = sand.u32 1, %s6011_s0  }
 0x250   : > { %s6673_s4 = scalar_select %p7283_p13, %s6011_s0, %s218_s17  }
 0x251   : > { %p225_p12 = scmp.ne.s32.totalorder %s6011_s0, %s7280_s3  ;;  %p231_p7 = scmp.ne.s32.totalorder %s7280_s3, %s7281_s6 }
 0x252   : > { %p7285_p10 = scmp.eq.s32.totalorder %s6333_s16, 0  ;;  %s4326_s2 = sshll.u32 %s6039_s11, 4 }
 0x253   : > { %p227_p2 = por %p225_p12, %p7284_p0  ;;  %s6689_s9 = scalar_lea.hbm %s7282_s19, %s4326_s2 }
 0x254   : > { %p6683_p1 = por %p231_p7, %p7285_p10  ;;  %s1123_s24 = scalar_lea.vmem [#allocation9], %s1122_s20 }
 0x255   : > { %s1130_s25 = sshll.u32 %s1123_s24, 4  ;;  %p7287_p6 = scmp.lt.s32.totalorder %s6043_s15, 4  ;;  %s6691_s25 = int_to_ptr.vmem [resolvable:$true] %s1130_s25 }
 0x256   : > { %s7286_s8 = scalar_select %p6683_p1, 1, 0 }
 0x257   : > { %p6695_p4 = pnand %p7287_p6, %p227_p2  ;;  %s1121_s12 = scalar_lea.sflag [#allocation10], %s1120_s21 }
 0x258   : > { %s5847_s3 = scalar_lea.hbm %s6689_s9, 16  ;;  %s5852_s6 = scalar_lea.hbm %s7282_s19, 32 }
 0x259   : > { %p5848_p9 = scmp.ne.s32.totalorder %s6689_s9, %s5847_s3  ;;  %p5849_p5 = pneg %p6695_p4 }
 0x25a   : > { %p5853_p8 = scmp.lt.u32.totalorder %s6689_s9, %s7282_s19  ;;  %p5854_p12 = scmp.lt.u32.totalorder %s5852_s6, %s5847_s3 }
 0x25b   : > { %p5850_p11 = pnand %p5849_p5, %p5848_p9  ;;  %p5856_p0 = scmp.lt.u32.totalorder %s5847_s3, %s6689_s9 }
 0x25c   : > { %p5855_p13 = por %p5854_p12, %p5853_p8 }
 0x25d   : > { %p5851_p3 = pneg %p5850_p11 }
 0x25e   : > { %p5857_p2 = por %p5856_p0, %p5855_p13 }
 0x260   : > { %p5858_p7 = pnand %p5857_p2, %p5851_p3 }
 0x262   : > { %5861 = shalt.err (!%p5858_p7)
}
 0x263   : > { %s5862_s17 = scalar_lea.vmem %s6691_s25, 16  ;;  %s6098_s21 = smov [#allocation9]  }
 0x264   : > { %p5863_p10 = scmp.ne.s32.totalorder %s6691_s25, %s5862_s17  ;;  %s5867_s20 = sshll.u32 %s6098_s21, 4  ;;  %s5868_s20 = int_to_ptr.vmem [resolvable:$false] %s5867_s20 }
 0x265   : > { %s5869_s2 = scalar_lea.vmem %s5868_s20, 32  ;;  %p5870_p9 = scmp.lt.s32.totalorder %s6691_s25, %s5868_s20 }
 0x266   : > { %p5865_p6 = pnand %p5863_p10, %p5849_p5  ;;  %p5871_p11 = scmp.lt.s32.totalorder %s5869_s2, %s5862_s17 }
 0x268   : > { %p5866_p1 = pneg %p5865_p6  ;;  %p5872_p8 = por %p5871_p11, %p5870_p9 }
 0x26a   : > { %p5873_p12 = pnand %p5872_p8, %p5866_p1 }
 0x26c   : > { %5876 = shalt.err (!%p5873_p12)
}
 0x26d   : > { %5042 = dma.hbm_to_vmem [thread:$0]  (!%p6695_p4), %s6689_s9, 16, %s6691_s25, %s1121_s12  }
 0x26e   : > { %p7289_p3 = scmp.ne.s32.totalorder %s7259_s18, 0 }
 0x26f   : > { %s6723_s24 = sand.u32 (!%p7289_p3), 1, %s6019_s28   ;;  %p7290_p1 = scmp.ne.s32.totalorder (!%p7289_p3), %s7275_s23, 0 }
 0x270   : > { %1139 = sbr.rel (%p7289_p3) target bundleno = 8132 (0x1fc4), region = 144  ;;  %s7205_s3 = sshll.u32 (!%p7289_p3), %s6723_s24, 3 }
 0x271   : > { %s1142_s6 = scalar_lea.sflag (!%p7289_p3), [#allocation7], %s6723_s24  ;;  %s6729_s17 = scalar_lea.vmem (!%p7289_p3), [#allocation6], %s7205_s3 }
 0x277   : > { %5950 = dma.done.wait (%p7290_p1), %s1142_s6, 128  }
 0x278   : > { %5952 = vsyncadd (%p7290_p1), %s1142_s6, 4294967168  ;;  %s7291_s18 = sld [smem:[#allocation86_spill]]  ;;  %s1150_s9 = sand.u32 1, %s6333_s16  }
 0x279   : > { %s1151_s14 = scalar_lea.sflag [#allocation10], %s1150_s9  ;;  %p7292_p4 = scmp.ne.s32.totalorder %s7286_s8, 0 }
 0x27e   : > { %s1152_s25 = sand.u32 1, %s7291_s18  }
 0x27f   : > { %s6737_s12 = scalar_lea.vmem [#allocation9], %s1152_s25 }
 0x280   : > { %5954 = dma.done.wait (%p7292_p4), %s1151_s14, 16  }
 0x281   : > { %5956 = vsyncadd (%p7292_p4), %s1151_s14, 4294967280  ;;  %p7293_p5 = scmp.eq.s32.totalorder %s6333_s16, 0 }
 0x283   : > { %5958 = dma.done.wait (%p7293_p5), [#allocation10], 16   ;;  %p7294_p13 = pmov %p7293_p5 }
 0x284   : > { %p7295_p0 = pmov %p7293_p5 }
 0x285   : > { %5960 = vsyncadd (%p7294_p13), [#allocation10], 4294967280 }
 0x286   : > { %5962 = dma.done.wait (%p7295_p0), [#allocation13], 528   ;;  %p7296_p2 = pmov %p7295_p0 }
 0x287   : > { %p7297_p7 = pmov %p7295_p0 }
 0x288   : > { %5964 = vsyncadd (%p7296_p2), [#allocation13], 4294966768 }
 0x289   : > { %5966 = dma.done.wait (%p7297_p7), [#allocation16], 32   ;;  %p7298_p10 = pmov %p7295_p0 }
 0x28a   : > { %p7299_p6 = pmov %p7295_p0 }
 0x28b   : > { %5968 = vsyncadd (%p7298_p10), [#allocation16], 4294967264 }
 0x28c   : > { %5970 = dma.done.wait (%p7299_p6), [#allocation19], 528   ;;  %p7300_p9 = pmov %p7295_p0 }
 0x28d   : > { %p7301_p11 = pmov %p7295_p0 }
 0x28e   : > { %5972 = vsyncadd (%p7300_p9), [#allocation19], 4294966768 }
 0x28f   : > { %5974 = dma.done.wait (%p7301_p11), [#allocation22], 528   ;;  %p7302_p8 = pmov %p7295_p0 }
 0x290   : > { %p7303_p12 = pmov %p7295_p0 }
 0x291   : > { %5976 = vsyncadd (%p7302_p8), [#allocation22], 4294966768 }
 0x292   : > { %5978 = dma.done.wait (%p7303_p12), [#allocation25], 32   ;;  %p7304_p3 = pmov %p7295_p0 }
 0x293   : > { %p7305_p1 = pmov %p7295_p0 }
 0x294   : > { %5980 = vsyncadd (%p7304_p3), [#allocation25], 4294967264 }
 0x295   : > { %5982 = dma.done.wait (%p7305_p1), [#allocation28], 1024   ;;  %p7306_p4 = pmov %p7295_p0 }
 0x296   : > { %p7307_p5 = pmov %p7295_p0 }
 0x297   : > { %5984 = vsyncadd (%p7306_p4), [#allocation28], 4294966272 }
 0x298   : > { %5986 = dma.done.wait (%p7307_p5), [#allocation31], 528   ;;  %p7308_p13 = pmov %p7295_p0 }
 0x29a   : > { %5988 = vsyncadd (%p7308_p13), [#allocation31], 4294966768 }
 0x29b   : > { %5990 = dma.done.wait (%p7295_p0), [#allocation34], 528   ;;  %p7309_p2 = pmov %p7295_p0 }
 0x29c   : > { %p7310_p7 = pmov %p7295_p0 }
 0x29d   : > { %5992 = vsyncadd (%p7309_p2), [#allocation34], 4294966768 }
 0x29e   : > { %5994 = dma.done.wait (%p7310_p7), [#allocation37], 32   ;;  %p7311_p10 = pmov %p7295_p0 }
 0x29f   : > { %s7312_s23 = sld [smem:[#allocation88_spill]]  ;;  %s7313_s8 = sld [smem:[#allocation87_spill]] }
 0x2a0   : > { %5996 = vsyncadd (%p7311_p10), [#allocation37], 4294967264  ;;  %s7314_s21 = sld [smem:[#allocation54_spill]]  ;;  %s7315_s20 = sld [smem:[#allocation55_spill]] }
 0x2a1   : > { %s7316_s2 = sld [smem:[#allocation53_spill]]  ;;  %s7317_s29 = sshll.u32 %s6723_s24, 3 }
 0x2a2   : > { %s6794_s30 = scalar_lea.vmem [#allocation39], %s7317_s29 }
 0x2a5   : > { %p1330_p6 = scmp.lt.s32.totalorder %s7312_s23, 1  ;;  %p1332_p9 = scmp.lt.s32.totalorder %s7313_s8, 1 }
 0x2a6   : > { %p4355_p11 = scmp.ne.s32.totalorder %s7313_s8, 0 }
 0x2a7   : > { %s7351_s23 = smov (!%p1330_p6, %s7312_s23), 1  ;;  %vm1356_vm0 = vcmask (!%p4355_p11), 261120   ;;  %s7318_s29 = sld [smem:[#allocation62_spill]] (!%p4355_p11)  ;;  %v1405_v30 = vld [vmem:[#allocation18] sm:$0xff] (!%p4355_p11)  ;;  %v1406_v32 = vld [vmem:[#allocation18 + $0x8] sm:$0xff] (!%p4355_p11)  ;;  %v1407_v36 = vld [vmem:[#allocation18 + $0x10] sm:$0xff] (!%p4355_p11) }
 0x2a8   : > { %s1333_s6 = scalar_select %p1332_p9, %s7313_s8, 1 }
 0x2a9   : > { %s4349_s18 = sshll.u32 %s7351_s23, 1  ;;  %s4428_s9 = sshll.u32 %s7351_s23, 4  ;;  %v4774_v33 = vpack.c.bf16 (!%p4355_p11), %v1406_v32, %v1405_v30  ;;  %v1408_v38 = vld [vmem:[#allocation18 + $0x18] sm:$0xff] (!%p4355_p11)  ;;  %v1687_v40 = vld [vmem:[#allocation29] sm:$0xff] (!%p4355_p11)  ;;  %v1688_v41 = vld [vmem:[#allocation29 + $0x8] sm:$0xff] (!%p4355_p11)  ;;  %vm1578_vm1 = vcmask (!%p4355_p11), 64512  }
 0x2aa   : > { %s1335_s25 = sadd.s32 %s4349_s18, %s1333_s6  ;;  %s1342_s14 = scalar_lea.vmem %s7314_s21, %s4428_s9  ;;  %v4778_v39 = vpack.c.bf16 (!%p4355_p11), %v1408_v38, %v1407_v36  ;;  %v1692_v42 = vld [vmem:[#allocation30] sm:$0xff] (!%p4355_p11)  ;;  %v4782_v43 = vpack.c.bf16 (!%p4355_p11), %v1688_v41, %v1687_v40  ;;  %v1693_v44 = vld [vmem:[#allocation30 + $0x8] sm:$0xff] (!%p4355_p11)  ;;  %v4356_v59 = vld [vmem:[#allocation11] ss:$0 sm:$0xff] (!%p4355_p11) }
 0x2ab   : > { %s4350_s3 = sshll.u32 %s1335_s25, 3  ;;  %s1347_s19 = scalar_lea.vmem %s7315_s20, %s4428_s9  ;;  %v1352_v0 = vld [vmem:[%s1342_s14] sm:$0xff] (!%p4355_p11)  ;;  %v1353_v2 = vld [vmem:[%s1342_s14 + $0x8] sm:$0xff] (!%p4355_p11)  ;;  %4775 = vmatprep.subr.bf16.mxu1 (!%p4355_p11), %v4774_v33  ;;  %v4790_v45 = vpack.c.bf16 (!%p4355_p11), %v1693_v44, %v1692_v42  ;;  %v4357_v61 = vld [vmem:[#allocation12] ss:$0 sm:$0xff] (!%p4355_p11) }
 0x2ac   : > { %s6790_s16 = scalar_lea.vmem %s7316_s2, %s4350_s3  ;;  %1351 = sbr.rel (%p4355_p11) target bundleno = 1379 (0x563), region = 232  ;;  %v1641_v1 = vld [vmem:[%s1347_s19] sm:$0xff] (!%p4355_p11)  ;;  %v1357_v3 = vsel (!%p4355_p11), %vm1356_vm0, %v1352_v0, 0.0  ;;  %v1642_v5 = vld [vmem:[%s1347_s19 + $0x8] sm:$0xff] (!%p4355_p11)  ;;  %v1360_v6 = vsel (!%p4355_p11), %vm1356_vm0, %v1353_v2, 0.0  ;;  %4777 = vmatpush3.bf16.msra.mxu1 (!%p4355_p11), %v4774_v33 }
 0x2ad   : > { %v1645_v4 = vsel (!%p4355_p11), %vm1356_vm0, %v1641_v1, 0.0  ;;  %1358 = vadd.xlane.f32.xlu0 (!%p4355_p11), %v1357_v3  ;;  %v1648_v7 = vsel (!%p4355_p11), %vm1356_vm0, %v1642_v5, 0.0  ;;  %v1400_v28 = vld [vmem:[%s7318_s29] sm:$0xff] (!%p4355_p11)  ;;  %v1401_v29 = vld [vmem:[%s7318_s29 + $0x8] sm:$0xff] (!%p4355_p11)  ;;  %v1402_v34 = vld [vmem:[%s7318_s29 + $0x10] sm:$0xff] (!%p4355_p11)  ;;  %4779 = vmatprep.subr.bf16.mxu1 (!%p4355_p11), %v4778_v39  ;;  %s7319_s19 = sld [smem:[#allocation73_spill]] (!%p4355_p11) }
 0x2ae   : > { %1646 = vadd.xlane.f32.xlu1 (!%p4355_p11), %v1645_v4  ;;  %v4766_v31 = vpack.c.bf16 (!%p4355_p11), %v1401_v29, %v1400_v28  ;;  %v1403_v35 = vld [vmem:[%s7318_s29 + $0x18] sm:$0xff] (!%p4355_p11)  ;;  %v4365_v4 = vld [vmem:[#allocation26] ss:$0 sm:$0xff] (!%p4355_p11)  ;;  %s6099_s3 = smov (!%p4355_p11), 120   ;;  %s6100_s23 = smov (!%p4355_p11), 112  }
 0x2af   : > { %v4770_v37 = vpack.c.bf16 (!%p4355_p11), %v1403_v35, %v1402_v34  ;;  %v4364_v3 = vld [vmem:[#allocation24] ss:$0 sm:$0xff] (!%p4355_p11)  ;;  %s6101_s8 = smov (!%p4355_p11), 104  }
 0x2b0   : > { %4767 = vmatprep.subr.bf16.mxu0 (!%p4355_p11), %v4766_v31  ;;  %4781 = vmatpush3.bf16.msra.mxu1 (!%p4355_p11), %v4778_v39 }
 0x2b1   : > { %1361 = vadd.xlane.f32.xlu0 (!%p4355_p11), %v1360_v6  ;;  %4769 = vmatpush3.bf16.msra.mxu0 (!%p4355_p11), %v4766_v31  ;;  %v1689_v6 = vld [vmem:[#allocation29 + $0x10] sm:$0xff] (!%p4355_p11)  ;;  %v4369_v31 = vld [vmem:[#allocation32] ss:$0 sm:$0xff] (!%p4355_p11) }
 0x2b2   : > { %1649 = vadd.xlane.f32.xlu1 (!%p4355_p11), %v1648_v7  ;;  %4771 = vmatprep.subr.bf16.mxu0 (!%p4355_p11), %v4770_v37 }
 0x2b3   : > { %4791 = vmatprep.subr.bf16.mxu1 %v4790_v45  ;;  %v4366_v30 = vld [vmem:[%s7319_s19] ss:$0 sm:$0xff] }
 0x2b5   : > { %4773 = vmatpush3.bf16.msra.mxu0 %v4770_v37 }
 0x2b6   : > { %4783 = vmatprep.subr.bf16.mxu0 %v4782_v43 }
 0x33a   : > { %v1359_v8 = vpop.xlane.xlu0 %1358 }
 0x33b   : > { %v1647_v9 = vpop.xlane.xlu1 %1646  ;;  %v1364_v10 = vmul.f32 0.03125, %v1359_v8  ;;  %v1690_v8 = vld [vmem:[#allocation29 + $0x18] sm:$0xff] }
 0x33c   : > { %v1651_v11 = vmul.f32 0.03125, %v1647_v9  ;;  %v1694_v9 = vld [vmem:[#allocation30 + $0x10] sm:$0xff] }
 0x33d   : > { %v6801_v12 = vsub.f32 %v1352_v0, %v1364_v10  ;;  %v1695_v10 = vld [vmem:[#allocation30 + $0x18] sm:$0xff] }
 0x33e   : > { %v6803_v13 = vsub.f32 %v1641_v1, %v1651_v11  ;;  %v1362_v14 = vpop.xlane.xlu0 %1361 }
 0x33f   : > { %v1650_v15 = vpop.xlane.xlu1 %1649  ;;  %v1365_v16 = vmul.f32 0.03125, %v1362_v14  ;;  %v1368_v18 = vmul.f32 %v6801_v12, %v6801_v12 }
 0x340   : > { %v1652_v17 = vmul.f32 0.03125, %v1650_v15  ;;  %v1655_v19 = vmul.f32 %v6803_v13, %v6803_v13 }
 0x341   : > { %v6809_v20 = vsub.f32 %v1353_v2, %v1365_v16  ;;  %v1370_v22 = vsel %vm1356_vm0, %v1368_v18, 0.0  ;;  %v4794_v18 = vpack.c.bf16 %v1695_v10, %v1694_v9 }
 0x342   : > { %v6811_v21 = vsub.f32 %v1642_v5, %v1652_v17  ;;  %1371 = vadd.xlane.f32.xlu0 %v1370_v22  ;;  %v1657_v23 = vsel %vm1356_vm0, %v1655_v19, 0.0  ;;  %v4786_v17 = vpack.c.bf16 %v1690_v8, %v1689_v6 }
 0x343   : > { %v1369_v24 = vmul.f32 %v6809_v20, %v6809_v20 }
 0x344   : > { %v1656_v25 = vmul.f32 %v6811_v21, %v6811_v21 }
 0x345   : > { %v1373_v26 = vsel %vm1356_vm0, %v1369_v24, 0.0 }
 0x346   : > { %1658 = vadd.xlane.f32.xlu0 %v1657_v23  ;;  %1374 = vadd.xlane.f32.xlu1 %v1373_v26  ;;  %v1660_v27 = vsel %vm1356_vm0, %v1656_v25, 0.0 }
 0x34a   : > { %1661 = vadd.xlane.f32.xlu1 %v1660_v27 }
 0x3cf   : > { %v1372_v46 = vpop.xlane.xlu0 %1371 }
 0x3d0   : > { %v1376_v47 = vmul.f32 0.03125, %v1372_v46 }
 0x3d2   : > { %v1378_v48 = vadd.f32 1e-05, %v1376_v47 }
 0x3d3   : > { %v1375_v49 = vpop.xlane.xlu1 %1374  ;;  %v1659_v50 = vpop.xlane.xlu0 %1658 }
 0x3d4   : > { %5239 = vrsqrt.f32 %v1378_v48  ;;  %v1377_v51 = vmul.f32 0.03125, %v1375_v49  ;;  %v1663_v52 = vmul.f32 0.03125, %v1659_v50 }
 0x3d6   : > { %v1379_v53 = vadd.f32 1e-05, %v1377_v51  ;;  %v1665_v54 = vadd.f32 1e-05, %v1663_v52 }
 0x3d7   : > { %v1662_v55 = vpop.xlane.xlu1 %1661 }
 0x3d8   : > { %5241 = vrsqrt.f32 %v1379_v53  ;;  %v1664_v56 = vmul.f32 0.03125, %v1662_v55 }
 0x3d9   : > { %5243 = vrsqrt.f32 %v1665_v54 }
 0x3da   : > { %v1666_v57 = vadd.f32 1e-05, %v1664_v56 }
 0x3dc   : > { %5245 = vrsqrt.f32 %v1666_v57 }
 0x3de   : > { %v5240_v58 = vpop.eup %5239 }
 0x3df   : > { %v1382_v60 = vmul.f32 %v5240_v58, %v6801_v12 }
 0x3e1   : > { %v1390_v62 = vmul.f32 %v4356_v59, %v1382_v60 }
 0x3e2   : > { %v5242_v63 = vpop.eup %5241 }
 0x3e3   : > { %v5244_v0 = vpop.eup %5243  ;;  %v1383_v1 = vmul.f32 %v5242_v63, %v6809_v20  ;;  %v1398_v2 = vadd.f32 %v4357_v61, %v1390_v62  ;;  %v4358_v20 = vld [vmem:[#allocation17] ss:$0 sm:$0xff] }
 0x3e4   : > { %v1669_v5 = vmul.f32 %v5244_v0, %v6803_v13 }
 0x3e5   : > { %v1391_v7 = vmul.f32 %v4356_v59, %v1383_v1  ;;  %4544 = vmatprep.mubr.msk.f32.mxu0 %vm1356_vm0, %v1398_v2  ;;  %4555 = vmatprep.mubr.msk.f32.mxu1 %vm1356_vm0, %v1398_v2 }
 0x3e6   : > { %v5246_v11 = vpop.eup %5245  ;;  %v1677_v12 = vmul.f32 %v4364_v3, %v1669_v5 }
 0x3e7   : > { %v1670_v14 = vmul.f32 %v5246_v11, %v6811_v21  ;;  %v1399_v15 = vadd.f32 %v4357_v61, %v1391_v7  ;;  %v4361_v21 = vld [vmem:[#allocation20] ss:$0 sm:$0xff] }
 0x3e8   : > { %v1685_v16 = vadd.f32 %v4365_v4, %v1677_v12 }
 0x3e9   : > { %4545 = vmatmul.mubr.msk.f32.vlgmr.msra.gmra.mrb[0].mxu0 %vm1356_vm0, %v1399_v15  ;;  %4556 = vmatmul.mubr.msk.f32.vlgmr.msra.gmra.mrb[0].mxu1 %vm1356_vm0, %v1399_v15  ;;  %v1678_v13 = vmul.f32 %v4364_v3, %v1670_v14 }
 0x3ea   : > { %4785 = vmatpush3.bf16.msra.mxu0 %v4782_v43  ;;  %4793 = vmatpush3.bf16.msra.mxu1 %v4790_v45 }
 0x3eb   : > { %4566 = vmatprep.mubr.msk.f32.mxu0 %vm1356_vm0, %v1685_v16  ;;  %4577 = vmatprep.mubr.msk.f32.mxu1 %vm1356_vm0, %v1685_v16  ;;  %v1686_v19 = vadd.f32 %v4365_v4, %v1678_v13 }
 0x3ec   : > { %4787 = vmatprep.subr.bf16.mxu0 %v4786_v17  ;;  %4795 = vmatprep.subr.bf16.mxu1 %v4794_v18 }
 0x3ee   : > { %4789 = vmatpush3.bf16.msra.mxu0 %v4786_v17  ;;  %4797 = vmatpush3.bf16.msra.mxu1 %v4794_v18 }
 0x3f1   : > { %4567 = vmatmul.mubr.msk.f32.vlgmr.msra.gmra.mrb[2].mxu0 %vm1356_vm0, %v1686_v19  ;;  %4578 = vmatmul.mubr.msk.f32.vlgmr.msra.gmra.mrb[2].mxu1 %vm1356_vm0, %v1686_v19 }
 0x4bc   : > { %v4546_v22 = vpop.f32.mrb[0].mxu0  ;;  %v4557_v23 = vpop.f32.mrb[0].mxu1 }
 0x4bd   : > { %v1494_v24 = vadd.f32 %v4546_v22, %v4358_v20  ;;  %v1575_v25 = vadd.f32 %v4557_v23, %v4361_v21  ;;  %v1488_v26 = vpop.f32.mrb[1].mxu0  ;;  %v1569_v27 = vpop.f32.mrb[1].mxu1 }
 0x4be   : > { %v1489_v28 = vadd.f32 %v4358_v20, %v1488_v26  ;;  %v1570_v29 = vadd.f32 %v4361_v21, %v1569_v27 }
 0x4bf   : > { %1580 = vst.msk [vmem:[#allocation2 + $0x8] sm:$0xff] %vm1578_vm1, %v1494_v24  ;;  %1582 = vst.msk [vmem:[#allocation3 + $0x8] sm:$0xff] %vm1578_vm1, %v1575_v25  ;;  %1587 = vrot.lane.b32.xlu1 %v1494_v24, %s6099_s3 }
 0x4c0   : > { %1579 = vst.msk [vmem:[#allocation2] sm:$0xff] %vm1578_vm1, %v1489_v28  ;;  %1581 = vst.msk [vmem:[#allocation3] sm:$0xff] %vm1578_vm1, %v1570_v29  ;;  %1585 = vrot.lane.b32.xlu0 %v1489_v28, %s6099_s3 }
 0x4c3   : > { %1598 = vrot.lane.b32.xlu1 %v1575_v25, %s6099_s3 }
 0x4c4   : > { %v4568_v32 = vpop.f32.mrb[2].mxu0  ;;  %v4579_v33 = vpop.f32.mrb[2].mxu1  ;;  %1605 = vrot.lane.b32.xlu0 %v1489_v28, %s6100_s23 }
 0x4c5   : > { %v1781_v34 = vadd.f32 %v4568_v32, %v4366_v30  ;;  %v1862_v35 = vadd.f32 %v4579_v33, %v4369_v31  ;;  %v1775_v36 = vpop.f32.mrb[3].mxu0  ;;  %v1856_v37 = vpop.f32.mrb[3].mxu1 }
 0x4c6   : > { %v1776_v38 = vadd.f32 %v4366_v30, %v1775_v36  ;;  %v1857_v39 = vadd.f32 %v4369_v31, %v1856_v37 }
 0x4c7   : > { %1866 = vst.msk [vmem:[#allocation4 + $0x8] sm:$0xff] %vm1578_vm1, %v1781_v34  ;;  %1868 = vst.msk [vmem:[#allocation5 + $0x8] sm:$0xff] %vm1578_vm1, %v1862_v35  ;;  %1607 = vrot.lane.b32.xlu1 %v1494_v24, %s6100_s23 }
 0x4c8   : > { %1865 = vst.msk [vmem:[#allocation4] sm:$0xff] %vm1578_vm1, %v1776_v38  ;;  %1867 = vst.msk [vmem:[#allocation5] sm:$0xff] %vm1578_vm1, %v1857_v39  ;;  %1614 = vrot.lane.b32.xlu0 %v1570_v29, %s6100_s23 }
 0x4cb   : > { %1616 = vrot.lane.b32.xlu1 %v1575_v25, %s6100_s23 }
 0x4cc   : > { %1623 = vrot.lane.b32.xlu0 %v1489_v28, %s6101_s8 }
 0x4cf   : > { %1625 = vrot.lane.b32.xlu1 %v1494_v24, %s6101_s8 }
 0x4d0   : > { %1632 = vrot.lane.b32.xlu0 %v1570_v29, %s6101_s8 }
 0x4d3   : > { %1634 = vrot.lane.b32.xlu1 %v1575_v25, %s6101_s8 }
 0x4d4   : > { %1871 = vrot.lane.b32.xlu0 %v1776_v38, %s6099_s3 }
 0x4d7   : > { %1596 = vrot.lane.b32.xlu1 %v1570_v29, %s6099_s3 }
 0x4d8   : > { %1882 = vrot.lane.b32.xlu0 %v1857_v39, %s6099_s3 }
 0x4db   : > { %1873 = vrot.lane.b32.xlu1 %v1781_v34, %s6099_s3 }
 0x4dc   : > { %1891 = vrot.lane.b32.xlu0 %v1776_v38, %s6100_s23 }
 0x4df   : > { %1884 = vrot.lane.b32.xlu1 %v1862_v35, %s6099_s3 }
 0x4e0   : > { %1900 = vrot.lane.b32.xlu0 %v1857_v39, %s6100_s23 }
 0x4e3   : > { %1893 = vrot.lane.b32.xlu1 %v1781_v34, %s6100_s23 }
 0x4e4   : > { %1909 = vrot.lane.b32.xlu0 %v1776_v38, %s6101_s8 }
 0x4e7   : > { %1902 = vrot.lane.b32.xlu1 %v1862_v35, %s6100_s23 }
 0x4e8   : > { %1918 = vrot.lane.b32.xlu0 %v1857_v39, %s6101_s8 }
 0x4eb   : > { %1911 = vrot.lane.b32.xlu1 %v1781_v34, %s6101_s8 }
 0x4ef   : > { %1920 = vrot.lane.b32.xlu1 %v1862_v35, %s6101_s8 }
 0x531   : > { %v1588_v40 = vpop.permute.xlu1 %1587 }
 0x532   : > { %1593 = vst.msk [vmem:[#allocation2 + $0x18] sm:$0xff] %vm1578_vm1, %v1588_v40  ;;  %v1586_v41 = vpop.permute.xlu0 %1585 }
 0x533   : > { %1592 = vst.msk [vmem:[#allocation2 + $0x10] sm:$0xff] %vm1578_vm1, %v1586_v41 }
 0x535   : > { %v1599_v42 = vpop.permute.xlu1 %1598 }
 0x536   : > { %1604 = vst.msk [vmem:[#allocation3 + $0x18] sm:$0xff] %vm1578_vm1, %v1599_v42  ;;  %v1606_v43 = vpop.permute.xlu0 %1605 }
 0x537   : > { %1612 = vst.msk [vmem:[#allocation2 + $0x20] sm:$0xff] %vm1578_vm1, %v1606_v43 }
 0x539   : > { %v1608_v44 = vpop.permute.xlu1 %1607 }
 0x53a   : > { %1613 = vst.msk [vmem:[#allocation2 + $0x28] sm:$0xff] %vm1578_vm1, %v1608_v44  ;;  %v1615_v45 = vpop.permute.xlu0 %1614 }
 0x53b   : > { %1621 = vst.msk [vmem:[#allocation3 + $0x20] sm:$0xff] %vm1578_vm1, %v1615_v45 }
 0x53d   : > { %v1617_v46 = vpop.permute.xlu1 %1616 }
 0x53e   : > { %1622 = vst.msk [vmem:[#allocation3 + $0x28] sm:$0xff] %vm1578_vm1, %v1617_v46  ;;  %v1624_v47 = vpop.permute.xlu0 %1623 }
 0x53f   : > { %1630 = vst.msk [vmem:[#allocation2 + $0x30] sm:$0xff] %vm1578_vm1, %v1624_v47 }
 0x541   : > { %v1626_v48 = vpop.permute.xlu1 %1625 }
 0x542   : > { %1631 = vst.msk [vmem:[#allocation2 + $0x38] sm:$0xff] %vm1578_vm1, %v1626_v48  ;;  %v1633_v49 = vpop.permute.xlu0 %1632 }
 0x543   : > { %1639 = vst.msk [vmem:[#allocation3 + $0x30] sm:$0xff] %vm1578_vm1, %v1633_v49 }
 0x545   : > { %v1635_v50 = vpop.permute.xlu1 %1634 }
 0x546   : > { %1640 = vst.msk [vmem:[#allocation3 + $0x38] sm:$0xff] %vm1578_vm1, %v1635_v50  ;;  %v1872_v51 = vpop.permute.xlu0 %1871 }
 0x547   : > { %1878 = vst.msk [vmem:[#allocation4 + $0x10] sm:$0xff] %vm1578_vm1, %v1872_v51 }
 0x549   : > { %v1597_v52 = vpop.permute.xlu1 %1596 }
 0x54a   : > { %1603 = vst.msk [vmem:[#allocation3 + $0x10] sm:$0xff] %vm1578_vm1, %v1597_v52  ;;  %v1883_v53 = vpop.permute.xlu0 %1882 }
 0x54b   : > { %1889 = vst.msk [vmem:[#allocation5 + $0x10] sm:$0xff] %vm1578_vm1, %v1883_v53 }
 0x54d   : > { %v1874_v54 = vpop.permute.xlu1 %1873 }
 0x54e   : > { %1879 = vst.msk [vmem:[#allocation4 + $0x18] sm:$0xff] %vm1578_vm1, %v1874_v54  ;;  %v1892_v55 = vpop.permute.xlu0 %1891 }
 0x54f   : > { %1898 = vst.msk [vmem:[#allocation4 + $0x20] sm:$0xff] %vm1578_vm1, %v1892_v55 }
 0x551   : > { %v1885_v56 = vpop.permute.xlu1 %1884 }
 0x552   : > { %1890 = vst.msk [vmem:[#allocation5 + $0x18] sm:$0xff] %vm1578_vm1, %v1885_v56  ;;  %v1901_v57 = vpop.permute.xlu0 %1900 }
 0x553   : > { %1907 = vst.msk [vmem:[#allocation5 + $0x20] sm:$0xff] %vm1578_vm1, %v1901_v57 }
 0x555   : > { %v1894_v58 = vpop.permute.xlu1 %1893 }
 0x556   : > { %1899 = vst.msk [vmem:[#allocation4 + $0x28] sm:$0xff] %vm1578_vm1, %v1894_v58  ;;  %v1910_v59 = vpop.permute.xlu0 %1909 }
 0x557   : > { %1916 = vst.msk [vmem:[#allocation4 + $0x30] sm:$0xff] %vm1578_vm1, %v1910_v59 }
 0x559   : > { %v1903_v60 = vpop.permute.xlu1 %1902 }
 0x55a   : > { %1908 = vst.msk [vmem:[#allocation5 + $0x28] sm:$0xff] %vm1578_vm1, %v1903_v60  ;;  %v1919_v61 = vpop.permute.xlu0 %1918 }
 0x55b   : > { %1925 = vst.msk [vmem:[#allocation5 + $0x30] sm:$0xff] %vm1578_vm1, %v1919_v61 }
 0x55d   : > { %v1912_v62 = vpop.permute.xlu1 %1911 }
 0x55e   : > { %1917 = vst.msk [vmem:[#allocation4 + $0x38] sm:$0xff] %vm1578_vm1, %v1912_v62 }
 0x561   : > { %v1921_v63 = vpop.permute.xlu1 %1920 }
 0x562   : > { %1926 = vst.msk [vmem:[#allocation5 + $0x38] sm:$0xff] %vm1578_vm1, %v1921_v63 }
 0x563 PF: > { %v6879_v0 = vld [vmem:[%s6790_s16] sm:$0xff]  ;;  %vm1932_vm2 = vcmask 261120   ;;  %v1961_v7 = vld [vmem:[#allocation14] sm:$0xff]  ;;  %v6102_v10 = vmov 0.0|0.0   ;;  %v1964_v12 = vld [vmem:[#allocation14 + $0x18] sm:$0xff]  ;;  %vm6103_vm3 = vmmov 0  }
 0x564   : > { %v1933_v1 = vsel %vm1932_vm2, %v6879_v0, 0.0  ;;  %v1962_v8 = vld [vmem:[#allocation14 + $0x8] sm:$0xff]  ;;  %v1963_v9 = vld [vmem:[#allocation14 + $0x10] sm:$0xff]  ;;  %4798 = vmatprep.subr.bf16.mxu1 %v6102_v10  ;;  %v6104_v14 = vmov 0.0   ;;  %4808 = vmatprep.subr.bf16.mxu0 %v6102_v10  ;;  %v4372_v19 = vld [vmem:[#allocation11] ss:$0 sm:$0xff] }
 0x565   : > { %1934 = vadd.xlane.f32.xlu0 %v1933_v1  ;;  %v4799_v11 = vpack.c.bf16 %v1962_v8, %v1961_v7  ;;  %4588 = vmatprep.mubr.msk.f32.mxu1 %vm6103_vm3, %v6104_v14  ;;  %v4802_v15 = vpack.c.bf16 %v1964_v12, %v1963_v9  ;;  %v2050_v21 = vld [vmem:[#allocation2] sm:$0xff]  ;;  %v2051_v22 = vld [vmem:[#allocation2 + $0x8] sm:$0xff]  ;;  %v4373_v23 = vld [vmem:[#allocation12] ss:$0 sm:$0xff]  ;;  %vm2054_vm4 = vcmask 64512   ;;  %s6105_s21 = smov 120  }
 0x566   : > { %4602 = vmatprep.mubr.msk.f32.mxu0 %vm6103_vm3, %v6104_v14  ;;  %v4805_v25 = vpack.c.bf16 %v2051_v22, %v2050_v21  ;;  %vm6895_vm5 = vmpackc.low %vm2054_vm4, %vm2054_vm4  ;;  %v2220_v28 = vld [vmem:[#allocation2 + $0x10] sm:$0xff]  ;;  %v2221_v29 = vld [vmem:[#allocation2 + $0x18] sm:$0xff]  ;;  %vm2134_vm6 = vcmask 130048   ;;  %s6107_s20 = smov 104   ;;  %s6108_s2 = smov 16   ;;  %vm2743_vm7 = vcmask 195584  }
 0x567   : > { %4800 = vmatpush3.bf16.msra.mxu1 %v4799_v11  ;;  %v4374_v30 = vld [vmem:[#allocation15] ss:$0 sm:$0xff]  ;;  %v4812_v32 = vpack.c.bf16 %v2221_v29, %v2220_v28  ;;  %v6920_v36 = vld [vmem:[%s6729_s17] sm:$0xff]  ;;  %s6106_s17 = smov 112   ;;  %v2224_v60 = vld [vmem:[#allocation3 + $0x18] sm:$0xff]  ;;  %s6109_s6 = smov 8  }
 0x568   : > { %4801 = vmatprep.subr.bf16.mxu1 %v6102_v10  ;;  %v2052_v50 = vld [vmem:[#allocation3] sm:$0xff]  ;;  %v2053_v51 = vld [vmem:[#allocation3 + $0x8] sm:$0xff]  ;;  %v2223_v59 = vld [vmem:[#allocation3 + $0x10] sm:$0xff]  ;;  %s6110_s18 = smov 24   ;;  %s7322_s9 = sld [smem:[#allocation71_spill]]  ;;  %vm3850_vm8 = vcmask 523264  }
 0x569   : > { %v4809_v52 = vpack.c.bf16 %v2053_v51, %v2052_v50  ;;  %v4816_v62 = vpack.c.bf16 %v2224_v60, %v2223_v59  ;;  %v2560_v28 = vld [vmem:[#allocation2 + $0x30] sm:$0xff]  ;;  %v2561_v29 = vld [vmem:[#allocation2 + $0x38] sm:$0xff]  ;;  %s7324_s25 = sld [smem:[#allocation82_spill]]  ;;  %s7325_s14 = sld [smem:[#allocation81_spill]] }
 0x56a   : > { %v1966_v51 = vld [vmem:[#allocation21] sm:$0xff]  ;;  %s7326_s16 = sld [smem:[#allocation88_spill]]  ;;  %s7327_s19 = sld [smem:[#allocation87_spill]] }
 0x56b   : > { %4803 = vmatpush3.bf16.msra.mxu1 %v4802_v15  ;;  %4810 = vmatpush3.bf16.msra.mxu0 %v4809_v52  ;;  %v1967_v52 = vld [vmem:[#allocation21 + $0x8] sm:$0xff]  ;;  %s7328_s3 = sld [smem:[#allocation83_spill]]  ;;  %s7329_s23 = sld [smem:[#allocation84_spill]] }
 0x56c   : > { %4804 = vmatprep.subr.bf16.mxu1 %v6102_v10  ;;  %4815 = vmatprep.subr.bf16.mxu0 %v6102_v10  ;;  %p7331_p12 = scmp.ne.s32.totalorder %s7277_s22, 0 }
 0x571   : > { %s7330_s8 = smov %s7329_s23 }
 0x5f2   : > { %v1935_v2 = vpop.xlane.xlu0 %1934 }
 0x5f3   : > { %v1937_v3 = vmul.f32 0.03125, %v1935_v2  ;;  %v2390_v2 = vld [vmem:[#allocation2 + $0x20] sm:$0xff] }
 0x5f5   : > { %v1938_v4 = vsub.f32 %v6879_v0, %v1937_v3  ;;  %v2391_v3 = vld [vmem:[#allocation2 + $0x28] sm:$0xff] }
 0x5f7   : > { %v1939_v5 = vmul.f32 %v1938_v4, %v1938_v4 }
 0x5f9   : > { %v1940_v6 = vsel %vm1932_vm2, %v1939_v5, 0.0  ;;  %v4819_v5 = vpack.c.bf16 %v2391_v3, %v2390_v2  ;;  %v4392_v2 = vld [vmem:[#allocation23] ss:$0 sm:$0xff] }
 0x5fa   : > { %1941 = vadd.xlane.f32.xlu0 %v1940_v6 }
 0x687   : > { %v1942_v16 = vpop.xlane.xlu0 %1941 }
 0x688   : > { %v1943_v17 = vmul.f32 0.03125, %v1942_v16 }
 0x68a   : > { %v1944_v18 = vadd.f32 1e-05, %v1943_v17 }
 0x68c   : > { %5247 = vrsqrt.f32 %v1944_v18 }
 0x696   : > { %v5248_v13 = vpop.eup %5247 }
 0x697   : > { %v1946_v20 = vmul.f32 %v5248_v13, %v1938_v4 }
 0x699   : > { %v1953_v24 = vmul.f32 %v4372_v19, %v1946_v20 }
 0x69b   : > { %v1960_v26 = vadd.f32 %v4373_v23, %v1953_v24  ;;  %v2393_v23 = vld [vmem:[#allocation3 + $0x20] sm:$0xff]  ;;  %v2394_v24 = vld [vmem:[#allocation3 + $0x28] sm:$0xff] }
 0x69d   : > { %4589 = vmatmul.mubr.msk.f32.vlgmr.msra.gmra.mrb[0].mxu1 %vm1932_vm2, %v1960_v26 }
 0x69e   : > { %4807 = vmatpush3.bf16.xpose.msk.msra.mxu1 %vm6895_vm5, %v4805_v25  ;;  %4595 = vmatprep.mubr.msk.f32.mxu1 %vm6103_vm3, %v6104_v14  ;;  %v4823_v25 = vpack.c.bf16 %v2394_v24, %v2393_v23 }
 0x69f   : > { %4811 = vmatprep.subr.bf16.mxu1 %v6102_v10 }
 0x770   : > { %v2046_v31 = vpop.f32.mrb[0].mxu1 }
 0x771   : > { %v6905_v33 = vadd.f32 %v4374_v30, %v2046_v31  ;;  %v4590_v34 = vpop.f32.mrb[1].mxu1  ;;  %v4826_v31 = vpack.c.bf16 %v2561_v29, %v2560_v28  ;;  %v4394_v28 = vld [vmem:[#allocation24] ss:$0 sm:$0xff] }
 0x773   : > { %2225 = vrot.lane.b32.xlu1 %v6905_v33, %s6105_s21  ;;  %4596 = vmatmul.mubr.msk.f32.vlgmr.msra.gmra.mrb[2].mxu1 %vm2054_vm4, %v6905_v33 }
 0x774   : > { %4814 = vmatpush3.bf16.xpose.msk.msra.mxu1 %vm6895_vm5, %v4812_v32  ;;  %4609 = vmatprep.mubr.msk.f32.mxu1 %vm6103_vm3, %v6104_v14 }
 0x775   : > { %4822 = vmatprep.subr.bf16.mxu1 %v6102_v10 }
 0x7e5   : > { %v2226_v35 = vpop.permute.xlu1 %2225 }
 0x7e6   : > { %4610 = vmatmul.mubr.msk.f32.vlgmr.msra.gmra.mrb[4].mxu1 %vm2054_vm4, %v2226_v35 }
 0x7e7   : > { %4630 = vmatprep.mubr.msk.f32.mxu1 %vm6103_vm3, %v6104_v14  ;;  %4824 = vmatpush3.bf16.msra.mxu1 %v4823_v25 }
 0x7e8   : > { %4825 = vmatprep.subr.bf16.mxu1 %v6102_v10 }
 0x846   : > { %v2130_v37 = vpop.f32.mrb[2].mxu1 }
 0x847   : > { %v2131_v38 = vadd.f32 %v2130_v37, %v6920_v36  ;;  %v4597_v39 = vpop.f32.mrb[3].mxu1 }
 0x849   : > { %v2135_v40 = vsel %vm2134_vm6, %v2131_v38, -inf }
 0x84a   : > { %2136 = vmax.xlane.f32.xlu1 %v2135_v40 }
 0x8b9   : > { %v2301_v41 = vpop.f32.mrb[4].mxu1 }
 0x8ba   : > { %v2302_v42 = vadd.f32 %v2301_v41, %v6920_v36  ;;  %v4611_v43 = vpop.f32.mrb[5].mxu1 }
 0x8bc   : > { %v2305_v44 = vsel %vm2134_vm6, %v2302_v42, -inf }
 0x8bd   : > { %2306 = vmax.xlane.f32.xlu0 %v2305_v44 }
 0x8d7   : > { %v2137_v45 = vpop.xlane.xlu1 %2136 }
 0x8d8   : > { %v2138_v46 = vsub.f32 %v2131_v38, %v2137_v45 }
 0x8da   : > { %v2139_v47 = vmul.f32 1.442695, %v2138_v46  ;;  %v2563_v46 = vld [vmem:[#allocation3 + $0x30] sm:$0xff] }
 0x8dc   : > { %5249 = vpow2.f32 %v2139_v47  ;;  %v2564_v47 = vld [vmem:[#allocation3 + $0x38] sm:$0xff] }
 0x8e6   : > { %v5250_v48 = vpop.eup %5249 }
 0x8e7   : > { %v2141_v49 = vsel %vm2134_vm6, %v5250_v48, 0.0 }
 0x8e8   : > { %2142 = vadd.xlane.f32.xlu0 %v2141_v49 }
 0x94a   : > { %v2307_v53 = vpop.xlane.xlu0 %2306 }
 0x94b   : > { %v2308_v54 = vsub.f32 %v2302_v42, %v2307_v53  ;;  %v1968_v53 = vld [vmem:[#allocation21 + $0x10] sm:$0xff] }
 0x94d   : > { %v2309_v55 = vmul.f32 1.442695, %v2308_v54  ;;  %v4833_v54 = vpack.c.bf16 %v1967_v52, %v1966_v51  ;;  %v3117_v51 = vld [vmem:[#allocation4 + $0x10] sm:$0xff]  ;;  %v3118_v52 = vld [vmem:[#allocation4 + $0x18] sm:$0xff] }
 0x94f   : > { %5251 = vpow2.f32 %v2309_v55  ;;  %v1969_v55 = vld [vmem:[#allocation21 + $0x18] sm:$0xff] }
 0x959   : > { %v5252_v56 = vpop.eup %5251 }
 0x95a   : > { %v2311_v57 = vsel %vm2134_vm6, %v5252_v56, 0.0 }
 0x95b   : > { %2312 = vadd.xlane.f32.xlu0 %v2311_v57 }
 0x971   : > { %2395 = vrot.lane.b32.xlu0 %v6905_v33, %s6106_s17 }
 0x975   : > { %v2143_v58 = vpop.xlane.xlu0 %2142 }
 0x976   : > { %5253 = vrcp.f32 %v2143_v58 }
 0x980   : > { %v5254_v61 = vpop.eup %5253 }
 0x981   : > { %v2145_v63 = vmul.f32 %v5254_v61, %v5250_v48 }
 0x983   : > { %4603 = vmatmul.mubr.msk.f32.vlgmr.msra.gmra.mrb[0].mxu0 %vm2134_vm6, %v2145_v63 }
 0x984   : > { %4817 = vmatpush3.bf16.msra.mxu0 %v4816_v62  ;;  %4616 = vmatprep.mubr.msk.f32.mxu0 %vm6103_vm3, %v6104_v14 }
 0x985   : > { %4818 = vmatprep.subr.bf16.mxu0 %v6102_v10 }
 0x9e8   : > { %v2313_v1 = vpop.xlane.xlu0 %2312 }
 0x9e9   : > { %5255 = vrcp.f32 %v2313_v1 }
 0x9ec   : > { %v2396_v7 = vpop.permute.xlu0 %2395 }
 0x9f3   : > { %v5256_v4 = vpop.eup %5255 }
 0x9f4   : > { %v2315_v6 = vmul.f32 %v5256_v4, %v5252_v56  ;;  %v4836_v56 = vpack.c.bf16 %v1969_v55, %v1968_v53 }
 0x9f6   : > { %4617 = vmatmul.mubr.msk.f32.vlgmr.msra.gmra.mrb[2].mxu0 %vm2134_vm6, %v2315_v6 }
 0x9f7   : > { %4821 = vmatpush3.bf16.xpose.msk.msra.mxu0 %vm6895_vm5, %v4819_v5  ;;  %4623 = vmatprep.mubr.msk.f32.mxu0 %vm6103_vm3, %v6104_v14 }
 0x9f8   : > { %4829 = vmatprep.subr.bf16.mxu0 %v6102_v10 }
 0x9fe   : > { %4624 = vmatmul.mubr.msk.f32.vlgmr.msra.gmra.mrb[4].mxu0 %vm2054_vm4, %v2396_v7 }
 0x9ff   : > { %4644 = vmatprep.mubr.msk.f32.mxu0 %vm6103_vm3, %v6104_v14 }
 0xa56   : > { %v6944_v8 = vpop.f32.mrb[0].mxu0 }
 0xa57   : > { %v4604_v9 = vpop.f32.mrb[1].mxu0 }
 0xac9   : > { %v2385_v11 = vpop.f32.mrb[2].mxu0 }
 0xaca   : > { %v4618_v12 = vpop.f32.mrb[3].mxu0 }
 0xad1   : > { %v2471_v15 = vpop.f32.mrb[4].mxu0 }
 0xad2   : > { %v2472_v16 = vadd.f32 %v2471_v15, %v6920_v36  ;;  %v4625_v17 = vpop.f32.mrb[5].mxu0 }
 0xad3   : > { %v2855_v17 = vld [vmem:[#allocation27 + $0x8] sm:$0xff] }
 0xad4   : > { %v2475_v18 = vsel %vm2134_vm6, %v2472_v16, -inf }
 0xad5   : > { %2476 = vmax.xlane.f32.xlu1 %v2475_v18 }
 0xae6   : > { %2565 = vrot.lane.b32.xlu1 %v6905_v33, %s6107_s20 }
 0xb62   : > { %v2477_v13 = vpop.xlane.xlu1 %2476 }
 0xb63   : > { %v2478_v19 = vsub.f32 %v2472_v16, %v2477_v13  ;;  %v2854_v16 = vld [vmem:[#allocation27] sm:$0xff]  ;;  %v2857_v13 = vld [vmem:[#allocation27 + $0x18] sm:$0xff] }
 0xb64   : > { %v4839_v18 = vpack.c.bf16 %v2855_v17, %v2854_v16 }
 0xb65   : > { %v2479_v20 = vmul.f32 1.442695, %v2478_v19 }
 0xb66   : > { %v2566_v33 = vpop.permute.xlu1 %2565 }
 0xb67   : > { %5257 = vpow2.f32 %v2479_v20  ;;  %v2943_v20 = vld [vmem:[#allocation4] sm:$0xff] }
 0xb71   : > { %v5258_v21 = vpop.eup %5257 }
 0xb72   : > { %v2481_v22 = vsel %vm2134_vm6, %v5258_v21, 0.0 }
 0xb73   : > { %2482 = vadd.xlane.f32.xlu0 %v2481_v22 }
 0xc00   : > { %v2483_v26 = vpop.xlane.xlu0 %2482 }
 0xc01   : > { %5259 = vrcp.f32 %v2483_v26 }
 0xc0b   : > { %v5260_v30 = vpop.eup %5259 }
 0xc0c   : > { %v2485_v32 = vmul.f32 %v5260_v30, %v5258_v21  ;;  %v2944_v21 = vld [vmem:[#allocation4 + $0x8] sm:$0xff]  ;;  %v4395_v30 = vld [vmem:[#allocation26] ss:$0 sm:$0xff] }
 0xc0d   : > { %v4845_v22 = vpack.c.bf16 %v2944_v21, %v2943_v20 }
 0xc0e   : > { %4631 = vmatmul.mubr.msk.f32.vlgmr.msra.gmra.mrb[6].mxu1 %vm2134_vm6, %v2485_v32 }
 0xc0f   : > { %4828 = vmatpush3.bf16.xpose.msk.msra.mxu1 %vm6895_vm5, %v4826_v31  ;;  %4637 = vmatprep.mubr.msk.f32.mxu1 %vm6103_vm3, %v6104_v14 }
 0xc10   : > { %4838 = vmatprep.subr.bf16.mxu1 %v6102_v10 }
 0xc16   : > { %4638 = vmatmul.mubr.msk.f32.vlgmr.msra.gmra.mrb[8].mxu1 %vm2054_vm4, %v2566_v33  ;;  %v4396_v33 = vld [vmem:[%s7322_s9] ss:$0 sm:$0xff] }
 0xc17   : > { %4666 = vmatprep.mubr.msk.f32.mxu1 %vm6103_vm3, %v6104_v14  ;;  %4840 = vmatpush3.bf16.msra.mxu1 %v4839_v18 }
 0xc18   : > { %4841 = vmatprep.subr.bf16.mxu1 %v6102_v10 }
 0xce1   : > { %v2555_v34 = vpop.f32.mrb[6].mxu1 }
 0xce2   : > { %v4632_v35 = vpop.f32.mrb[7].mxu1 }
 0xce9   : > { %v2641_v37 = vpop.f32.mrb[8].mxu1 }
 0xcea   : > { %v2642_v38 = vadd.f32 %v2641_v37, %v6920_v36  ;;  %v4639_v39 = vpop.f32.mrb[9].mxu1  ;;  %v4830_v36 = vpack.c.bf16 %v2564_v47, %v2563_v46 }
 0xcec   : > { %v2645_v40 = vsel %vm2134_vm6, %v2642_v38, -inf  ;;  %4831 = vmatpush3.bf16.msra.mxu0 %v4830_v36  ;;  %v2945_v36 = vld [vmem:[#allocation5] sm:$0xff] }
 0xced   : > { %2646 = vmax.xlane.f32.xlu1 %v2645_v40  ;;  %4832 = vmatprep.subr.bf16.mxu0 %v6102_v10 }
 0xcfe   : > { %2734 = vrot.lane.b32.xlu1 %v2555_v34, %s6108_s2 }
 0xd7a   : > { %v2647_v41 = vpop.xlane.xlu1 %2646 }
 0xd7b   : > { %v2648_v42 = vsub.f32 %v2642_v38, %v2647_v41  ;;  %v7003_v38 = vld [vmem:[%s6737_s12] ss:$0 sm:$0xff]  ;;  %s7323_s12 = sld [smem:[#allocation80_spill]] }
 0xd7d   : > { %v2649_v43 = vmul.f32 1.442695, %v2648_v42 }
 0xd7e   : > { %v2735_v61 = vpop.permute.xlu1 %2734 }
 0xd7f   : > { %5261 = vpow2.f32 %v2649_v43 }
 0xd89   : > { %v5262_v44 = vpop.eup %5261 }
 0xd8a   : > { %v2651_v45 = vsel %vm2134_vm6, %v5262_v44, 0.0 }
 0xd8b   : > { %2652 = vadd.xlane.f32.xlu0 %v2651_v45 }
 0xda1   : > { %2730 = vrot.lane.b32.xlu0 %v2385_v11, %s6109_s6 }
 0xe18   : > { %v2653_v48 = vpop.xlane.xlu0 %2652 }
 0xe19   : > { %5263 = vrcp.f32 %v2653_v48  ;;  %v2946_v48 = vld [vmem:[#allocation5 + $0x8] sm:$0xff] }
 0xe1c   : > { %v2731_v59 = vpop.permute.xlu0 %2730 }
 0xe1d   : > { %v2741_v60 = vsel %vm2054_vm4, %v6944_v8, %v2731_v59 }
 0xe1e   : > { %v2742_v63 = vsel %vm2134_vm6, %v2741_v60, %v2735_v61 }
 0xe23   : > { %v5264_v49 = vpop.eup %5263 }
 0xe24   : > { %v2655_v50 = vmul.f32 %v5264_v49, %v5262_v44  ;;  %v4849_v49 = vpack.c.bf16 %v2946_v48, %v2945_v36 }
 0xe26   : > { %4645 = vmatmul.mubr.msk.f32.vlgmr.msra.gmra.mrb[6].mxu0 %vm2134_vm6, %v2655_v50 }
 0xe27   : > { %4655 = vmatprep.mubr.msk.f32.mxu0 %vm6103_vm3, %v6104_v14  ;;  %4834 = vmatpush3.bf16.msra.mxu0 %v4833_v54  ;;  %v4852_v54 = vpack.c.bf16 %v3118_v52, %v3117_v51  ;;  %v3461_v51 = vld [vmem:[#allocation5 + $0x38] sm:$0xff] }
 0xe28   : > { %4835 = vmatprep.subr.bf16.mxu0 %v6102_v10 }
 0xe2b   : > { %4837 = vmatpush3.bf16.msra.mxu0 %v4836_v56 }
 0xe2c   : > { %4844 = vmatprep.subr.bf16.mxu0 %v6102_v10 }
 0xef9   : > { %v2725_v57 = vpop.f32.mrb[6].mxu0 }
 0xefa   : > { %2738 = vrot.lane.b32.xlu0 %v2725_v57, %s6110_s18  ;;  %v4646_v58 = vpop.f32.mrb[7].mxu0 }
 0xf6c   : > { %v2739_v62 = vpop.permute.xlu0 %2738 }
 0xf6d   : > { %v2744_v1 = vsel %vm2743_vm7, %v2742_v63, %v2739_v62 }
 0xf6e   : > { %4656 = vmatmul.mubr.msk.f32.vlgmr.msra.gmra.mrb[8].mxu0 %vm1932_vm2, %v2744_v1 }
 0xf6f   : > { %4673 = vmatprep.mubr.msk.f32.mxu0 %vm6103_vm3, %v6104_v14  ;;  %4847 = vmatpush3.bf16.xpose.msk.msra.mxu0 %vm6895_vm5, %v4845_v22 }
 0xf70   : > { %4855 = vmatprep.subr.bf16.mxu0 %v6102_v10 }
0x1041   : > { %v2820_v3 = vpop.f32.mrb[8].mxu0 }
0x1042   : > { %v2821_v4 = vadd.f32 %v4392_v2, %v2820_v3  ;;  %v4657_v5 = vpop.f32.mrb[9].mxu0 }
0x1043   : > { %v3120_v5 = vld [vmem:[#allocation5 + $0x10] sm:$0xff] }
0x1044   : > { %v6981_v6 = vadd.f32 %v2821_v4, %v6879_v0  ;;  %v2856_v0 = vld [vmem:[#allocation27 + $0x10] sm:$0xff] }
0x1045   : > { %v4842_v19 = vpack.c.bf16 %v2857_v13, %v2856_v0 }
0x1046   : > { %v2827_v7 = vsel %vm1932_vm2, %v6981_v6, 0.0 }
0x1047   : > { %2828 = vadd.xlane.f32.xlu0 %v2827_v7  ;;  %4843 = vmatpush3.bf16.msra.mxu1 %v4842_v19  ;;  %v3121_v7 = vld [vmem:[#allocation5 + $0x18] sm:$0xff] }
0x1048   : > { %4848 = vmatprep.subr.bf16.mxu1 %v6102_v10 }
0x10d4   : > { %v2829_v8 = vpop.xlane.xlu0 %2828 }
0x10d5   : > { %v2830_v9 = vmul.f32 0.03125, %v2829_v8  ;;  %v4856_v8 = vpack.c.bf16 %v3121_v7, %v3120_v5 }
0x10d7   : > { %v2831_v11 = vsub.f32 %v6981_v6, %v2830_v9 }
0x10d9   : > { %v2832_v12 = vmul.f32 %v2831_v11, %v2831_v11 }
0x10db   : > { %v2833_v15 = vsel %vm1932_vm2, %v2832_v12, 0.0  ;;  %v3288_v12 = vld [vmem:[#allocation4 + $0x28] sm:$0xff] }
0x10dc   : > { %2834 = vadd.xlane.f32.xlu1 %v2833_v15 }
0x1169   : > { %v2835_v23 = vpop.xlane.xlu1 %2834 }
0x116a   : > { %v2836_v24 = vmul.f32 0.03125, %v2835_v23 }
0x116c   : > { %v2837_v25 = vadd.f32 1e-05, %v2836_v24 }
0x116e   : > { %5265 = vrsqrt.f32 %v2837_v25 }
0x1178   : > { %v5266_v26 = vpop.eup %5265 }
0x1179   : > { %v2839_v29 = vmul.f32 %v5266_v26, %v2831_v11  ;;  %v3287_v11 = vld [vmem:[#allocation4 + $0x20] sm:$0xff] }
0x117a   : > { %v4859_v16 = vpack.c.bf16 %v3288_v12, %v3287_v11 }
0x117b   : > { %v2846_v31 = vmul.f32 %v4394_v28, %v2839_v29  ;;  %v3290_v29 = vld [vmem:[#allocation5 + $0x20] sm:$0xff] }
0x117d   : > { %v2853_v32 = vadd.f32 %v4395_v30, %v2846_v31  ;;  %v3291_v30 = vld [vmem:[#allocation5 + $0x28] sm:$0xff] }
0x117e   : > { %v4863_v31 = vpack.c.bf16 %v3291_v30, %v3290_v29  ;;  %v3839_v30 = vld [vmem:[%s7324_s25 + $0x20] sm:$0xff] }
0x117f   : > { %4667 = vmatmul.mubr.msk.f32.vlgmr.msra.gmra.mrb[10].mxu1 %vm1932_vm2, %v2853_v32 }
0x1180   : > { %4680 = vmatprep.mubr.msk.f32.mxu1 %vm6103_vm3, %v6104_v14  ;;  %4850 = vmatpush3.bf16.msra.mxu1 %v4849_v49 }
0x1181   : > { %4851 = vmatprep.subr.bf16.mxu1 %v6102_v10 }
0x1252   : > { %v2939_v34 = vpop.f32.mrb[10].mxu1 }
0x1253   : > { %v6996_v35 = vadd.f32 %v4396_v33, %v2939_v34  ;;  %v4668_v37 = vpop.f32.mrb[11].mxu1  ;;  %v3457_v33 = vld [vmem:[#allocation4 + $0x30] sm:$0xff]  ;;  %v3458_v34 = vld [vmem:[#allocation4 + $0x38] sm:$0xff] }
0x1254   : > { %v4866_v37 = vpack.c.bf16 %v3458_v34, %v3457_v33 }
0x1255   : > { %4674 = vmatmul.mubr.msk.f32.vlgmr.msra.gmra.mrb[10].mxu0 %vm2054_vm4, %v6996_v35 }
0x1256   : > { %4694 = vmatprep.mubr.msk.f32.mxu0 %vm6103_vm3, %v6104_v14  ;;  %4857 = vmatpush3.bf16.msra.mxu0 %v4856_v8  ;;  %v4415_v8 = vld [vmem:[#allocation35] ss:$0 sm:$0xff] }
0x1257   : > { %4858 = vmatprep.subr.bf16.mxu0 %v6102_v10 }
0x1328   : > { %v3028_v39 = vpop.f32.mrb[10].mxu0 }
0x1329   : > { %v3029_v40 = vadd.f32 %v7003_v38, %v3028_v39  ;;  %v4675_v41 = vpop.f32.mrb[11].mxu0 }
0x132b   : > { %v3032_v42 = vsel %vm2134_vm6, %v3029_v40, -inf }
0x132c   : > { %3033 = vmax.xlane.f32.xlu0 %v3032_v42 }
0x13b9   : > { %v3034_v43 = vpop.xlane.xlu0 %3033 }
0x13ba   : > { %v3035_v44 = vsub.f32 %v3029_v40, %v3034_v43 }
0x13bc   : > { %v3036_v45 = vmul.f32 1.442695, %v3035_v44 }
0x13be   : > { %5267 = vpow2.f32 %v3036_v45 }
0x13c8   : > { %v5268_v46 = vpop.eup %5267 }
0x13c9   : > { %v3038_v47 = vsel %vm2134_vm6, %v5268_v46, 0.0 }
0x13ca   : > { %3039 = vadd.xlane.f32.xlu0 %v3038_v47 }
0x13e0   : > { %3122 = vrot.lane.b32.xlu0 %v6996_v35, %s6105_s21  ;;  %s4424_s21 = sshll.u32 %s7326_s16, 1 }
0x1457   : > { %v3040_v50 = vpop.xlane.xlu0 %3039 }
0x1458   : > { %5269 = vrcp.f32 %v3040_v50  ;;  %v3460_v50 = vld [vmem:[#allocation5 + $0x30] sm:$0xff] }
0x1459   : > { %v4870_v52 = vpack.c.bf16 %v3461_v51, %v3460_v50 }
0x145b   : > { %v3123_v56 = vpop.permute.xlu0 %3122 }
0x1462   : > { %v5270_v53 = vpop.eup %5269 }
0x1463   : > { %v3042_v55 = vmul.f32 %v5270_v53, %v5268_v46 }
0x1465   : > { %4681 = vmatmul.mubr.msk.f32.vlgmr.msra.gmra.mrb[12].mxu1 %vm2134_vm6, %v3042_v55  ;;  %v2859_v55 = vld [vmem:[#allocation33] sm:$0xff] }
0x1466   : > { %4854 = vmatpush3.bf16.xpose.msk.msra.mxu1 %vm6895_vm5, %v4852_v54  ;;  %4687 = vmatprep.mubr.msk.f32.mxu1 %vm6103_vm3, %v6104_v14 }
0x1467   : > { %4862 = vmatprep.subr.bf16.mxu1 %v6102_v10 }
0x146d   : > { %4688 = vmatmul.mubr.msk.f32.vlgmr.msra.gmra.mrb[14].mxu1 %vm2054_vm4, %v3123_v56  ;;  %v2860_v56 = vld [vmem:[#allocation33 + $0x8] sm:$0xff] }
0x146e   : > { %4708 = vmatprep.mubr.msk.f32.mxu1 %vm6103_vm3, %v6104_v14  ;;  %4864 = vmatpush3.bf16.msra.mxu1 %v4863_v31  ;;  %v3840_v31 = vld [vmem:[%s7324_s25 + $0x28] sm:$0xff] }
0x146f   : > { %4865 = vmatprep.subr.bf16.mxu1 %v6102_v10 }
0x1538   : > { %v7020_v57 = vpop.f32.mrb[12].mxu1 }
0x1539   : > { %v4682_v58 = vpop.f32.mrb[13].mxu1 }
0x153a   : > { %v2861_v58 = vld [vmem:[#allocation33 + $0x10] sm:$0xff] }
0x1540   : > { %v3198_v59 = vpop.f32.mrb[14].mxu1 }
0x1541   : > { %v3199_v60 = vadd.f32 %v7003_v38, %v3198_v59  ;;  %v4689_v61 = vpop.f32.mrb[15].mxu1  ;;  %v4873_v59 = vpack.c.bf16 %v2860_v56, %v2859_v55 }
0x1543   : > { %v3202_v62 = vsel %vm2134_vm6, %v3199_v60, -inf }
0x1544   : > { %3203 = vmax.xlane.f32.xlu1 %v3202_v62 }
0x15d1   : > { %v3204_v63 = vpop.xlane.xlu1 %3203 }
0x15d2   : > { %v3205_v1 = vsub.f32 %v3199_v60, %v3204_v63  ;;  %v2862_v60 = vld [vmem:[#allocation33 + $0x18] sm:$0xff] }
0x15d3   : > { %v4876_v61 = vpack.c.bf16 %v2862_v60, %v2861_v58 }
0x15d4   : > { %v3206_v2 = vmul.f32 1.442695, %v3205_v1 }
0x15d6   : > { %5271 = vpow2.f32 %v3206_v2 }
0x15e0   : > { %v5272_v3 = vpop.eup %5271 }
0x15e1   : > { %v3208_v4 = vsel %vm2134_vm6, %v5272_v3, 0.0 }
0x15e2   : > { %3209 = vadd.xlane.f32.xlu1 %v3208_v4 }
0x15f3   : > { %3292 = vrot.lane.b32.xlu1 %v6996_v35, %s6106_s17  ;;  %s3938_s17 = sadd.s32 %s7327_s19, %s4424_s21 }
0x166f   : > { %v3210_v9 = vpop.xlane.xlu1 %3209 }
0x1670   : > { %5273 = vrcp.f32 %v3210_v9 }
0x1673   : > { %v3293_v18 = vpop.permute.xlu1 %3292 }
0x167a   : > { %v5274_v15 = vpop.eup %5273 }
0x167b   : > { %v3212_v17 = vmul.f32 %v5274_v15, %v5272_v3 }
0x167d   : > { %4695 = vmatmul.mubr.msk.f32.vlgmr.msra.gmra.mrb[12].mxu0 %vm2134_vm6, %v3212_v17 }
0x167e   : > { %4861 = vmatpush3.bf16.xpose.msk.msra.mxu0 %vm6895_vm5, %v4859_v16  ;;  %4701 = vmatprep.mubr.msk.f32.mxu0 %vm6103_vm3, %v6104_v14 }
0x167f   : > { %4869 = vmatprep.subr.bf16.mxu0 %v6102_v10 }
0x1685   : > { %4702 = vmatmul.mubr.msk.f32.vlgmr.msra.gmra.mrb[14].mxu0 %vm2054_vm4, %v3293_v18 }
0x1686   : > { %4722 = vmatprep.mubr.msk.f32.mxu0 %vm6103_vm3, %v6104_v14  ;;  %4871 = vmatpush3.bf16.msra.mxu0 %v4870_v52 }
0x1687   : > { %4872 = vmatprep.subr.bf16.mxu0 %v6102_v10 }
0x1750   : > { %v3282_v0 = vpop.f32.mrb[12].mxu0 }
0x1751   : > { %v4696_v13 = vpop.f32.mrb[13].mxu0 }
0x1752   : > { %v3750_v13 = vld [vmem:[%s7323_s12] sm:$0xff] }
0x1758   : > { %v3368_v19 = vpop.f32.mrb[14].mxu0 }
0x1759   : > { %v3369_v20 = vadd.f32 %v7003_v38, %v3368_v19  ;;  %v4703_v21 = vpop.f32.mrb[15].mxu0  ;;  %v3751_v19 = vld [vmem:[%s7323_s12 + $0x8] sm:$0xff] }
0x175a   : > { %v3753_v21 = vld [vmem:[%s7323_s12 + $0x18] sm:$0xff] }
0x175b   : > { %v3372_v22 = vsel %vm2134_vm6, %v3369_v20, -inf }
0x175c   : > { %3373 = vmax.xlane.f32.xlu0 %v3372_v22 }
0x1772   : > { %3462 = vrot.lane.b32.xlu0 %v6996_v35, %s6107_s20  ;;  %s4425_s20 = sshll.u32 %s3938_s17, 7 }
0x1776   : > { %3627 = vrot.lane.b32.xlu0 %v3282_v0, %s6109_s6  ;;  %s7102_s6 = scalar_lea.hbm %s7329_s23, %s4425_s20 }
0x17e9   : > { %v3374_v23 = vpop.xlane.xlu0 %3373 }
0x17ea   : > { %v3375_v24 = vsub.f32 %v3369_v20, %v3374_v23  ;;  %v3752_v20 = vld [vmem:[%s7323_s12 + $0x10] sm:$0xff]  ;;  %v3835_v23 = vld [vmem:[%s7324_s25] sm:$0xff] }
0x17eb   : > { %v4882_v22 = vpack.c.bf16 %v3753_v21, %v3752_v20 }
0x17ec   : > { %v3376_v25 = vmul.f32 1.442695, %v3375_v24  ;;  %v3836_v24 = vld [vmem:[%s7324_s25 + $0x8] sm:$0xff] }
0x17ed   : > { %v3463_v40 = vpop.permute.xlu0 %3462 }
0x17ee   : > { %5275 = vpow2.f32 %v3376_v25  ;;  %v3837_v25 = vld [vmem:[%s7324_s25 + $0x10] sm:$0xff] }
0x17f1   : > { %v3628_v1 = vpop.permute.xlu0 %3627 }
0x17f2   : > { %v3638_v3 = vsel %vm2054_vm4, %v7020_v57, %v3628_v1 }
0x17f8   : > { %v5276_v26 = vpop.eup %5275 }
0x17f9   : > { %v3378_v28 = vsel %vm2134_vm6, %v5276_v26, 0.0 }
0x17fa   : > { %3379 = vadd.xlane.f32.xlu1 %v3378_v28  ;;  %v3838_v28 = vld [vmem:[%s7324_s25 + $0x18] sm:$0xff] }
0x17fb   : > { %v4888_v29 = vpack.c.bf16 %v3838_v28, %v3837_v25 }
0x1887   : > { %v3380_v32 = vpop.xlane.xlu1 %3379 }
0x1888   : > { %5277 = vrcp.f32 %v3380_v32  ;;  %v4891_v32 = vpack.c.bf16 %v3840_v31, %v3839_v30 }
0x1892   : > { %v5278_v35 = vpop.eup %5277 }
0x1893   : > { %v3382_v39 = vmul.f32 %v5278_v35, %v5276_v26  ;;  %v4885_v26 = vpack.c.bf16 %v3836_v24, %v3835_v23 }
0x1895   : > { %4709 = vmatmul.mubr.msk.f32.vlgmr.msra.gmra.mrb[16].mxu1 %vm2134_vm6, %v3382_v39  ;;  %v4417_v39 = vld [vmem:[#allocation36] ss:$0 sm:$0xff] }
0x1896   : > { %4868 = vmatpush3.bf16.xpose.msk.msra.mxu1 %vm6895_vm5, %v4866_v37  ;;  %4715 = vmatprep.mubr.msk.f32.mxu1 %vm6103_vm3, %v6104_v14 }
0x1897   : > { %4878 = vmatprep.subr.bf16.mxu1 %v6102_v10 }
0x189d   : > { %4716 = vmatmul.mubr.msk.f32.vlgmr.msra.gmra.mrb[18].mxu1 %vm2054_vm4, %v3463_v40 }
0x189e   : > { %4744 = vmatprep.mubr.msk.f32.mxu1 %vm6103_vm3, %v6104_v14 }
0x1968   : > { %v3452_v41 = vpop.f32.mrb[16].mxu1 }
0x1969   : > { %v4710_v42 = vpop.f32.mrb[17].mxu1 }
0x1970   : > { %v3538_v43 = vpop.f32.mrb[18].mxu1 }
0x1971   : > { %v3539_v44 = vadd.f32 %v7003_v38, %v3538_v43  ;;  %v4717_v45 = vpop.f32.mrb[19].mxu1 }
0x1972   : > { %v3842_v45 = vld [vmem:[%s7324_s25 + $0x38] sm:$0xff] }
0x1973   : > { %v3542_v27 = vsel %vm2134_vm6, %v3539_v44, -inf }
0x1974   : > { %3543 = vmax.xlane.f32.xlu1 %v3542_v27  ;;  %v4419_v27 = vld [vmem:[%s7325_s14] ss:$0 sm:$0xff]  ;;  %s6111_s14 = smov [#allocation39]  }
0x1975   : > { %s5881_s16 = sshll.u32 %s6111_s14, 4  ;;  %s5882_s16 = int_to_ptr.vmem [resolvable:$false] %s5881_s16 }
0x1976   : > { %s5883_s19 = scalar_lea.vmem %s5882_s16, 256 }
0x1a01   : > { %v3544_v46 = vpop.xlane.xlu1 %3543 }
0x1a02   : > { %v3545_v47 = vsub.f32 %v3539_v44, %v3544_v46  ;;  %v3841_v44 = vld [vmem:[%s7324_s25 + $0x30] sm:$0xff] }
0x1a04   : > { %v3546_v36 = vmul.f32 1.442695, %v3545_v47 }
0x1a06   : > { %5279 = vpow2.f32 %v3546_v36 }
0x1a10   : > { %v5280_v48 = vpop.eup %5279 }
0x1a11   : > { %v3548_v49 = vsel %vm2134_vm6, %v5280_v48, 0.0 }
0x1a12   : > { %3549 = vadd.xlane.f32.xlu1 %v3548_v49  ;;  %v4421_v49 = vld [vmem:[%s7328_s3] ss:$0 sm:$0xff] }
0x1a23   : > { %3631 = vrot.lane.b32.xlu1 %v3452_v41, %s6108_s2  ;;  %v4418_v41 = vld [vmem:[#allocation38] ss:$0 sm:$0xff]  ;;  %s3942_s2 = sshll.u32 %s6794_s30, 4  ;;  %s7104_s2 = int_to_ptr.vmem [resolvable:$true] %s3942_s2 }
0x1a24   : > { %s5877_s9 = scalar_lea.vmem %s7104_s2, 128  ;;  %p5884_p4 = scmp.lt.s32.totalorder %s7104_s2, %s5882_s16 }
0x1a25   : > { %p5878_p8 = scmp.ne.s32.totalorder %s7104_s2, %s5877_s9  ;;  %p5885_p5 = scmp.lt.s32.totalorder %s5883_s19, %s5877_s9 }
0x1a27   : > { %p5879_p3 = pnand %p5878_p8, %p7331_p12  ;;  %p5886_p13 = por %p5885_p5, %p5884_p4 }
0x1a29   : > { %p5880_p1 = pneg %p5879_p3 }
0x1a2b   : > { %p5887_p0 = pnand %p5886_p13, %p5880_p1 }
0x1a9f   : > { %v3550_v38 = vpop.xlane.xlu1 %3549 }
0x1aa0   : > { %5281 = vrcp.f32 %v3550_v38 }
0x1aa3   : > { %v3632_v2 = vpop.permute.xlu1 %3631 }
0x1aa4   : > { %v3639_v4 = vsel %vm2134_vm6, %v3638_v3, %v3632_v2 }
0x1aaa   : > { %v5282_v53 = vpop.eup %5281 }
0x1aab   : > { %v3552_v54 = vmul.f32 %v5282_v53, %v5280_v48 }
0x1aad   : > { %4723 = vmatmul.mubr.msk.f32.vlgmr.msra.gmra.mrb[16].mxu0 %vm2134_vm6, %v3552_v54 }
0x1aae   : > { %4733 = vmatprep.mubr.msk.f32.mxu0 %vm6103_vm3, %v6104_v14  ;;  %4874 = vmatpush3.bf16.msra.mxu0 %v4873_v59 }
0x1aaf   : > { %4875 = vmatprep.subr.bf16.mxu0 %v6102_v10 }
0x1ab2   : > { %4877 = vmatpush3.bf16.msra.mxu0 %v4876_v61 }
0x1ab3   : > { %4884 = vmatprep.subr.bf16.mxu0 %v6102_v10 }
0x1b80   : > { %v3622_v62 = vpop.f32.mrb[16].mxu0 }
0x1b81   : > { %3635 = vrot.lane.b32.xlu0 %v3622_v62, %s6110_s18  ;;  %v4724_v63 = vpop.f32.mrb[17].mxu0  ;;  %s3927_s18 = scalar_lea.sflag [#allocation8], %s6723_s24 }
0x1bf3   : > { %v3636_v5 = vpop.permute.xlu0 %3635 }
0x1bf4   : > { %v3640_v7 = vsel %vm2743_vm7, %v3639_v4, %v3636_v5 }
0x1bf5   : > { %4734 = vmatmul.mubr.msk.f32.vlgmr.msra.gmra.mrb[18].mxu0 %vm1932_vm2, %v3640_v7 }
0x1bf6   : > { %4763 = vmatprep.mubr.msk.f32.mxu0 %vm6103_vm3, %v6104_v14  ;;  %4886 = vmatpush3.bf16.msra.mxu0 %v4885_v26 }
0x1bf7   : > { %4887 = vmatprep.subr.bf16.mxu0 %v6102_v10 }
0x1bfa   : > { %4889 = vmatpush3.bf16.msra.mxu0 %v4888_v29 }
0x1bfb   : > { %4890 = vmatprep.subr.bf16.mxu0 %v6102_v10 }
0x1bfe   : > { %4892 = vmatpush3.bf16.msra.mxu0 %v4891_v32 }
0x1bff   : > { %4893 = vmatprep.subr.bf16.mxu0 %v6102_v10 }
0x1cc8   : > { %v3716_v9 = vpop.f32.mrb[18].mxu0 }
0x1cc9   : > { %v3717_v11 = vadd.f32 %v4415_v8, %v3716_v9  ;;  %v4735_v12 = vpop.f32.mrb[19].mxu0 }
0x1ccb   : > { %v7072_v57 = vadd.f32 %v3717_v11, %v6981_v6  ;;  %v4879_v6 = vpack.c.bf16 %v3751_v19, %v3750_v13 }
0x1ccd   : > { %v3723_v15 = vsel %vm1932_vm2, %v7072_v57, 0.0  ;;  %4880 = vmatpush3.bf16.msra.mxu1 %v4879_v6 }
0x1cce   : > { %3724 = vadd.xlane.f32.xlu0 %v3723_v15  ;;  %4881 = vmatprep.subr.bf16.mxu1 %v6102_v10  ;;  %v4894_v10 = vpack.c.bf16 %v3842_v45, %v3841_v44 }
0x1cd0   : > { %4895 = vmatpush3.bf16.msra.mxu0 %v4894_v10 }
0x1cd1   : > { %4883 = vmatpush3.bf16.msra.mxu1 %v4882_v22 }
0x1d5b   : > { %v3725_v16 = vpop.xlane.xlu0 %3724 }
0x1d5c   : > { %v3726_v17 = vmul.f32 0.03125, %v3725_v16 }
0x1d5e   : > { %v3727_v14 = vsub.f32 %v7072_v57, %v3726_v17 }
0x1d60   : > { %v3728_v18 = vmul.f32 %v3727_v14, %v3727_v14 }
0x1d62   : > { %v3729_v0 = vsel %vm1932_vm2, %v3728_v18, 0.0 }
0x1d63   : > { %3730 = vadd.xlane.f32.xlu1 %v3729_v0 }
0x1df0   : > { %v3731_v33 = vpop.xlane.xlu1 %3730 }
0x1df1   : > { %v3732_v34 = vmul.f32 0.03125, %v3731_v33 }
0x1df3   : > { %v3733_v35 = vadd.f32 1e-05, %v3732_v34 }
0x1df5   : > { %5283 = vrsqrt.f32 %v3733_v35 }
0x1dff   : > { %v5284_v37 = vpop.eup %5283 }
0x1e00   : > { %v3735_v40 = vmul.f32 %v5284_v37, %v3727_v14 }
0x1e02   : > { %v3742_v42 = vmul.f32 %v4417_v39, %v3735_v40 }
0x1e04   : > { %v3749_v43 = vadd.f32 %v4418_v41, %v3742_v42 }
0x1e06   : > { %4745 = vmatmul.mubr.msk.f32.vlgmr.msra.gmra.mrb[20].mxu1 %vm1932_vm2, %v3749_v43 }
0x1ed9   : > { %v3830_v46 = vpop.f32.mrb[20].mxu1 }
0x1eda   : > { %v3831_v47 = vadd.f32 %v4419_v27, %v3830_v46  ;;  %v4746_v36 = vpop.f32.mrb[21].mxu1 }
0x1edc   : > { %v3834_v48 = vmax.f32 %v3831_v47, 0.0 }
0x1ede   : > { %4764 = vmatmul.mubr.msk.f32.vlgmr.msra.gmra.mrb[20].mxu0 %vm3850_vm8, %v3834_v48 }
0x1fb1   : > { %v3920_v50 = vpop.f32.mrb[20].mxu0 }
0x1fb2   : > { %v3921_v51 = vadd.f32 %v4421_v49, %v3920_v50  ;;  %v4765_v52 = vpop.f32.mrb[21].mxu0 }
0x1fb4   : > { %v3924_v38 = vadd.f32 %v3921_v51, %v7072_v57 }
0x1fb6   : > { %3925 = vst.msk [vmem:[%s6794_s30] sm:$0xff] %vm1932_vm2, %v3924_v38 }
0x1fb7   : > { %5890 = shalt.err (!%p5887_p0)
}
0x1fb8   : > { %s5891_s30 = scalar_lea.hbm %s7102_s6, 128  ;;  %s5895_s24 = scalar_lea.hbm %s7330_s8, 512 }
0x1fb9   : > { %p5892_p2 = scmp.ne.s32.totalorder %s7102_s6, %s5891_s30  ;;  %p5896_p6 = scmp.lt.u32.totalorder %s7102_s6, %s7330_s8 }
0x1fba   : > { %p5897_p9 = scmp.lt.u32.totalorder %s5895_s24, %s5891_s30  ;;  %p5899_p8 = scmp.lt.u32.totalorder %s5891_s30, %s7102_s6 }
0x1fbb   : > { %p5893_p7 = pnand %p5892_p2, %p7331_p12 }
0x1fbc   : > { %p5898_p11 = por %p5897_p9, %p5896_p6 }
0x1fbd   : > { %p5894_p10 = pneg %p5893_p7 }
0x1fbe   : > { %p5900_p3 = por %p5899_p8, %p5898_p11 }
0x1fc0   : > { %p5901_p1 = pnand %p5900_p3, %p5894_p10 }
0x1fc2   : > { %5904 = shalt.err (!%p5901_p1)
}
0x1fc3   : > { %4976 = dma.vmem_to_hbm [thread:$0]  (%p7331_p12), %s7104_s2, 128, %s7102_s6, %s3927_s18  }
0x1fc4 PF: > { %p5086_p4 = scmp.ge.s32.totalorder %s6043_s15, 2  ;;  %s3954_s3 = sand.u32 1, %s6015_s26  }
0x1fc5   : > { %p7332_p5 = scmp.ne.s32.totalorder %s7278_s5, 0  ;;  %s3955_s23 = scalar_lea.sflag [#allocation8], %s3954_s3 }
0x1fc7   : > { %p5044_p13 = pnand %p5086_p4, %p7332_p5 }
0x1fc9   : > { %5998 = dma.done.wait (!%p5044_p13), %s3955_s23, 128  }
0x1fca   : > { %6000 = vsyncadd (!%p5044_p13), %s3955_s23, 4294967168  ;;  %s91_s15 = sadd.s32 1, %s6043_s15   ;;  %s7333_s22 = sld [smem:[#allocation86_spill]] }
0x1fcb   : > { %p88_p0 = scmp.ge.s32.totalorder %s91_s15, 6   ;;  %s7334_s21 = smov %s7349_s7 }
0x1fcc   : > { %s7335_s23 = smov %s6011_s0  ;;  %s7336_s0 = smov %s6673_s4 }
0x1fcd   : > { %s7337_s26 = smov %s6019_s28  ;;  %s7338_s28 = smov %s6023_s1 }
0x1fce   : > { %s7339_s1 = smov %s6630_s13  ;;  %s7340_s2 = smov %s6035_s10 }
0x1fcf   : > { %s7341_s7 = smov %s6039_s11  ;;  %s7342_s10 = smov %s7345_s27 }
0x1fd0   : > { %s7343_s11 = smov %s7334_s21  ;;  %90 = sbr.rel (!%p88_p0) target bundleno = 88 (0x58), region = 346 }
0x1fd7   :  { %3960 = vsyncpa [#allocation7], 1 }
0x1fd8   :  { %3962 = vsyncpa [#allocation7 + $0x1], 1 }
0x1fd9   :  { %3963 = vsyncpa [#allocation10], 1 }
0x1fda   :  { %3965 = vsyncpa [#allocation10 + $0x1], 1 }
0x1fdb   :  { %3966 = vsyncpa [#allocation13], 1 }
0x1fdc   :  { %3967 = vsyncpa [#allocation16], 1 }
0x1fdd   :  { %3968 = vsyncpa [#allocation19], 1 }
0x1fde   :  { %3969 = vsyncpa [#allocation22], 1 }
0x1fdf   :  { %3970 = vsyncpa [#allocation25], 1 }
0x1fe0   :  { %3971 = vsyncpa [#allocation28], 1 }
0x1fe1   :  { %3972 = vsyncpa [#allocation31], 1 }
0x1fe2   :  { %3973 = vsyncpa [#allocation34], 1 }
0x1fe3   :  { %3974 = vsyncpa [#allocation37], 1 }
0x1fe4   :  { %3975 = vsyncpa [#allocation8], 1 }
0x1fe5   :  { %3977 = vsyncpa [#allocation8 + $0x1], 1 }

</bundles_post_ra>
